<compile_context>
chip_gen: v6e
topology: v6e:2x2x1
jax: 0.10.0
libtpu: 0.0.40
codegen_flags: <defaults>
</compile_context>

<pallas_src>
import jax
import jax.numpy as jnp
from jax import lax
from jax.experimental import pallas as pl
from jax.experimental.pallas import tpu as pltpu

EPS = 1e-5
_HI = jax.lax.Precision.HIGHEST


def _round_up(a, b):
    return (a + b - 1) // b * b


def _sigmoid(x):
    return 1.0 / (1.0 + jnp.exp(-x))


def _log_sigmoid(x):
    # stable: -softplus(-x), written with ops that lower cleanly in Mosaic
    return jnp.minimum(x, 0.0) - jnp.log(1.0 + jnp.exp(-jnp.abs(x)))


# -----------------------------------------------------------------------------
# Pallas kernel.  Grid = (batch tiles ["parallel"], time chunks ["arbitrary"]).
# The sLSTM state (y, c, n, m) and the causal-conv tail are carried across the
# time-chunk axis in VMEM scratch and reset at chunk == 0.
# -----------------------------------------------------------------------------
def slstm_layer_kernel(x_ref, wconv_ref, bconv_ref, wif_ref, wzo_ref,
                       rblk_ref, bias_ref, gamma_ref, havg_ref, hexp_ref,
                       out_ref,
                       xpad_scr, wx_scr, yall_scr, y_st, c_st, n_st, m_st):
    K = wconv_ref.shape[0]
    Tc, Bt, D = out_ref.shape
    TB = Tc * Bt
    chunk = pl.program_id(1)

    # --- per-batch-tile init (first time chunk) ----------------------------
    @pl.when(chunk == 0)
    def _init():
        if K > 1:
            xpad_scr[0:K - 1] = jnp.zeros((K - 1, Bt, D), jnp.float32)
        y_st[...] = jnp.zeros_like(y_st)
        c_st[...] = jnp.zeros_like(c_st)
        n_st[...] = jnp.zeros_like(n_st)
        # m = -1e30 makes step 0 reduce to m_new = i_raw (vanilla-backend
        # init), so no per-step t==0 branch is needed.
        m_st[...] = jnp.full_like(m_st, -1e30)

    # --- stage this chunk behind the carried conv tail; causal conv + SiLU -
    xpad_scr[K - 1:K - 1 + Tc] = x_ref[...]
    conv = bconv_ref[...]                                      # (1, D)
    for k in range(K):
        conv = conv + xpad_scr[k:k + Tc] * wconv_ref[k:k + 1, :]
    x_conv = conv * _sigmoid(conv)                             # (Tc, Bt, D)
    x_cur = x_ref[...]                                         # (Tc, Bt, D)
    if K > 1:                                                  # carry conv tail
        tail = xpad_scr[Tc:Tc + K - 1]
        xpad_scr[0:K - 1] = tail

    # --- gate projections (structural zeros stripped): two bf16 MXU matmuls
    bias = bias_ref[...]                                       # (1, 4D)
    xc_flat = x_conv.reshape(TB, D).astype(jnp.bfloat16)
    x_flat = x_cur.reshape(TB, D).astype(jnp.bfloat16)
    wx_scr[:, 0:2 * D] = (jnp.dot(xc_flat, wif_ref[...],
                                  preferred_element_type=jnp.float32)
                          + bias[:, 0:2 * D])                  # [i | f]
    wx_scr[:, 2 * D:4 * D] = (jnp.dot(x_flat, wzo_ref[...],
                                      preferred_element_type=jnp.float32)
                              + bias[:, 2 * D:4 * D])          # [z | o]

    # --- batched sLSTM recurrence (state in vregs, carried via scratch) ----
    unroll = max(u for u in (8, 4, 2, 1) if Tc % u == 0)

    def step(t, carry):
        y, c, n, m = carry
        off = pl.multiple_of(t * Bt, Bt)
        wx_t = wx_scr[pl.ds(off, Bt), :]                       # (Bt, 4D)
        raw = wx_t + jnp.dot(y.astype(jnp.bfloat16), rblk_ref[...],
                             preferred_element_type=jnp.float32)
        iraw = raw[:, 0 * D:1 * D]
        fraw = raw[:, 1 * D:2 * D]
        zraw = raw[:, 2 * D:3 * D]
        oraw = raw[:, 3 * D:4 * D]

        logfplusm = m + _log_sigmoid(fraw)
        mnew = jnp.maximum(iraw, logfplusm)
        ogate = _sigmoid(oraw)
        igate = jnp.exp(iraw - mnew)
        fgate = jnp.exp(logfplusm - mnew)
        cnew = fgate * c + igate * jnp.tanh(zraw)
        nnew = fgate * n + igate
        ynew = ogate * cnew * pl.reciprocal(nnew, approx=True)

        yall_scr[pl.ds(off, Bt), :] = ynew
        return ynew, cnew, nnew, mnew

    yl, cl, nl, ml = lax.fori_loop(
        0, Tc, step, (y_st[...], c_st[...], n_st[...], m_st[...]),
        unroll=unroll)
    y_st[...] = yl
    c_st[...] = cl
    n_st[...] = nl
    m_st[...] = ml

    # --- MultiHeadLayerNorm: GroupNorm(num_groups=NH), weight, no bias -----
    # Per-head mean/var via skinny head-average (D,NH) / head-expand (NH,D)
    # matmuls at default MXU precision; one refinement pass on the mean
    # removes the bf16-pass rounding without precision=HIGHEST emulation.
    Y = yall_scr[...]                                          # (TB, D)
    m1 = jnp.dot(jnp.dot(Y, havg_ref[...],
                         preferred_element_type=jnp.float32),
                 hexp_ref[...], preferred_element_type=jnp.float32)
    cent = Y - m1
    dm = jnp.dot(jnp.dot(cent, havg_ref[...],
                         preferred_element_type=jnp.float32),
                 hexp_ref[...], preferred_element_type=jnp.float32)
    cent = cent - dm
    var = jnp.dot(jnp.dot(cent * cent, havg_ref[...],
                          preferred_element_type=jnp.float32),
                  hexp_ref[...], preferred_element_type=jnp.float32)
    out = gamma_ref[...] * cent * lax.rsqrt(var + EPS)
    out_ref[...] = out.reshape(Tc, Bt, D).astype(out_ref.dtype)


# -----------------------------------------------------------------------------
# Wrapper: tile selection, parameter packing (glue) + pallas_call.
# -----------------------------------------------------------------------------
def slstm_layer_forward(x, p, num_heads, *, block_b=128, max_time_chunk=256):
    B, S, D = x.shape
    NH = num_heads
    DH = D // NH
    K = p["w_conv"].shape[0]

    # ---- tile-size / VMEM-budget selection ---------------------------------
    try:
        phys_vmem = int(pltpu.get_tpu_info().vmem_capacity_bytes)
    except Exception:
        phys_vmem = 64 * 1024 * 1024            # conservative (v7x per-core)
    budget = max(min(phys_vmem - 24 * 1024 * 1024, 96 * 1024 * 1024),
                 24 * 1024 * 1024)

    Bt = min(block_b, _round_up(B, 8))
    if B <= Bt and B > 8 and Bt >= 16:
        # keep >=2 batch tiles so the "parallel" axis can feed both v7x cores
        Bt = _round_up(-(-B // 2), 8)

    def vmem_need(tc, bt):
        need = 4 * tc * bt * D * 4                   # x + out blocks, 2x buf
        need += (tc + K - 1) * bt * D * 4            # conv staging scratch
        need += tc * bt * 4 * D * 4                  # gate pre-activations
        need += tc * bt * D * 4                      # hidden states
        need += 4 * bt * D * 4                       # carried (y, c, n, m)
        need += 2 * (2 * (D * 2 * D * 2) + D * 4 * D * 2)   # bf16 weights
        need += 2 * 4 * (4 * D + 3 * D + K * D + 2 * D * NH)
        return need

    Tc = min(_round_up(S, 8), max_time_chunk)
    while Tc > 8 and vmem_need(Tc, Bt) > budget:
        Tc = max(8, _round_up(Tc // 2, 8))
    while Bt > 8 and vmem_need(Tc, Bt) > budget:
        Bt = max(8, _round_up(Bt // 2, 8))

    Bp = _round_up(B, Bt)
    Sp = _round_up(S, Tc)
    n_tiles = Bp // Bt
    n_chunks = Sp // Tc
    vmem_limit = int(min(max(vmem_need(Tc, Bt) + 8 * 1024 * 1024,
                             32 * 1024 * 1024),
                         max(phys_vmem - 2 * 1024 * 1024, 32 * 1024 * 1024)))

    # ---- parameter packing (glue, plain XLA) --------------------------------
    def blockdiag(w):   # (NH, DHo, DHi) -> (D, D) so x @ blk == headwise(x, w)
        nh, dho, dhi = w.shape
        blk = jnp.zeros((nh * dhi, nh * dho), jnp.float32)
        for h in range(nh):
            blk = blk.at[h * dhi:(h + 1) * dhi,
                         h * dho:(h + 1) * dho].set(w[h].T)
        return blk

    # Layer quirk: "i" stream <- fgate module, "f" <- igate module.
    w_if = jnp.concatenate([blockdiag(p["w_f"]), blockdiag(p["w_i"])],
                           axis=1).astype(jnp.bfloat16)          # (D, 2D)
    w_zo = jnp.concatenate([blockdiag(p["w_z"]), blockdiag(p["w_o"])],
                           axis=1).astype(jnp.bfloat16)          # (D, 2D)

    # Per-head recurrent kernel, block-diagonal, gate-major output columns.
    # TODO(synk): for DH >= 128 exploit the block structure with per-head
    #             (Bt,DH)@(DH,4DH) matmuls instead of the dense (D,4D) form.
    r_blk = jnp.zeros((D, 4 * D), jnp.float32)
    for h in range(NH):
        for g in range(4):
            r_blk = r_blk.at[h * DH:(h + 1) * DH,
                             g * D + h * DH: g * D + (h + 1) * DH].set(
                p["r"][h][:, g * DH:(g + 1) * DH])
    r_blk = r_blk.astype(jnp.bfloat16)

    bias2 = p["bias"].reshape(1, 4 * D).astype(jnp.float32)
    gamma2 = p["gamma"].reshape(1, D).astype(jnp.float32)
    bconv2 = p["b_conv"].reshape(1, D).astype(jnp.float32)
    wconv2 = p["w_conv"].astype(jnp.float32)

    # GroupNorm helpers: head-average (D, NH) and head-expand (NH, D).
    h_avg = jnp.kron(jnp.eye(NH, dtype=jnp.float32),
                     jnp.ones((DH, 1), jnp.float32) / DH)
    h_exp = jnp.kron(jnp.eye(NH, dtype=jnp.float32),
                     jnp.ones((1, DH), jnp.float32))

    # time-major; pad batch to a tile multiple and time to a chunk multiple
    # (padded rows/steps are computed and discarded).
    x_tm = jnp.pad(x.astype(jnp.float32),
                   ((0, Bp - B), (0, Sp - S), (0, 0))).transpose(1, 0, 2)

    flops = int(n_tiles * n_chunks * (
        8 * Tc * Bt * D * D          # gate projections
        + 8 * Tc * Bt * D * D        # recurrent matmuls
        + 2 * Tc * Bt * D * K        # depthwise conv
        + 12 * Tc * Bt * D * NH      # group-norm skinny matmuls
        + 60 * Tc * Bt * D))         # element-wise recurrence / norm
    transc = int(n_tiles * n_chunks * 8 * Tc * Bt * D)
    bytes_accessed = int(
        8 * Sp * Bp * D
        + n_tiles * 2 * (int(w_if.size) + int(w_zo.size) + int(r_blk.size))
        + n_tiles * 4 * (int(bias2.size) + int(gamma2.size) + int(bconv2.size)
                         + int(wconv2.size) + int(h_avg.size)
                         + int(h_exp.size)))

    def build(single_buffer_consts):
        if single_buffer_consts:
            def cspec(shape):
                return pl.BlockSpec(shape, lambda g, c: (0, 0),
                                    pipeline_mode=pl.Buffered(1))
        else:
            def cspec(shape):
                return pl.BlockSpec(shape, lambda g, c: (0, 0))
        grid_spec = pltpu.PrefetchScalarGridSpec(
            num_scalar_prefetch=0,
            grid=(n_tiles, n_chunks),
            in_specs=[
                pl.BlockSpec((Tc, Bt, D), lambda g, c: (c, g, 0)),   # x
                cspec((K, D)),             # conv weight
                cspec((1, D)),             # conv bias
                cspec((D, 2 * D)),         # gate weights [i|f] (bf16)
                cspec((D, 2 * D)),         # gate weights [z|o] (bf16)
                cspec((D, 4 * D)),         # recurrent weights (bf16)
                cspec((1, 4 * D)),         # cell bias
                cspec((1, D)),             # group-norm weight
                cspec((D, NH)),            # head-average
                cspec((NH, D)),            # head-expand
            ],
            out_specs=pl.BlockSpec((Tc, Bt, D), lambda g, c: (c, g, 0)),
            scratch_shapes=[
                pltpu.VMEM((Tc + K - 1, Bt, D), jnp.float32),   # conv staging
                pltpu.VMEM((Tc * Bt, 4 * D), jnp.float32),      # gate pre-acts
                pltpu.VMEM((Tc * Bt, D), jnp.float32),          # hidden states
                pltpu.VMEM((Bt, D), jnp.float32),               # y carry
                pltpu.VMEM((Bt, D), jnp.float32),               # c carry
                pltpu.VMEM((Bt, D), jnp.float32),               # n carry
                pltpu.VMEM((Bt, D), jnp.float32),               # m carry
            ],
        )
        return pl.pallas_call(
            slstm_layer_kernel,
            out_shape=jax.ShapeDtypeStruct((Sp, Bp, D), jnp.float32),
            grid_spec=grid_spec,
            compiler_params=pltpu.CompilerParams(
                dimension_semantics=("parallel", "arbitrary"),
                vmem_limit_bytes=vmem_limit),
            cost_estimate=pl.CostEstimate(flops=flops, transcendentals=transc,
                                          bytes_accessed=bytes_accessed),
        )

    args = (x_tm, wconv2, bconv2, w_if, w_zo, r_blk, bias2, gamma2,
            h_avg, h_exp)
    try:
        out_tm = build(True)(*args)
    except Exception:
        # pl.Buffered(1) single-buffering of grid-invariant weights is not
        # supported on every jax/Mosaic version; fall back to the default
        # double-buffered constant specs.
        out_tm = build(False)(*args)

    return out_tm.transpose(1, 0, 2)[:B, :S]                    # (B, S, D)


# -----------------------------------------------------------------------------
# Pure-JAX reference (mirrors PyTorch semantics, full f32) for verification.
# -----------------------------------------------------------------------------
def reference_forward(x, p, num_heads):
    B, S, D = x.shape
    NH = num_heads
    DH = D // NH
    K = p["w_conv"].shape[0]

    xpad = jnp.pad(x, ((0, 0), (K - 1, 0), (0, 0)))
    conv = jnp.broadcast_to(p["b_conv"][None, None, :], (B, S, D))
    for k in range(K):
        conv = conv + xpad[:, k:k + S, :] * p["w_conv"][k][None, None, :]
    x_conv = conv * _sigmoid(conv)

    def headwise(v, W):  # torch einsum "...hd,hod->...ho"
        vh = v.reshape(B, S, NH, DH)
        return jnp.einsum("bshd,hod->bsho", vh, W,
                          precision=_HI).reshape(B, S, D)

    gi = headwise(x_conv, p["w_f"])   # layer quirk: i <- fgate(x_conv)
    gf = headwise(x_conv, p["w_i"])
    gz = headwise(x, p["w_z"])
    go = headwise(x, p["w_o"])
    Wx = jnp.concatenate([gi, gf, gz, go], axis=-1) + p["bias"].reshape(1, 1, 4 * D)

    y = jnp.zeros((B, D)); c = jnp.zeros((B, D))
    n = jnp.zeros((B, D)); m = jnp.zeros((B, D))
    ys = []
    for t in range(S):
        ryh = jnp.einsum("bhd,hdg->bhg", y.reshape(B, NH, DH), p["r"],
                         precision=_HI)                         # (B, NH, 4*DH)
        ry = ryh.reshape(B, NH, 4, DH).transpose(0, 2, 1, 3).reshape(B, 4 * D)
        raw = Wx[:, t] + ry
        iraw, fraw, zraw, oraw = jnp.split(raw, 4, axis=-1)
        logfplusm = m + _log_sigmoid(fraw)
        mnew = iraw if t == 0 else jnp.maximum(iraw, logfplusm)
        ogate = _sigmoid(oraw)
        igate = jnp.exp(iraw - mnew)
        fgate = jnp.exp(logfplusm - mnew)
        cnew = fgate * c + igate * jnp.tanh(zraw)
        nnew = fgate * n + igate
        ynew = ogate * cnew / nnew
        y, c, n, m = ynew, cnew, nnew, mnew
        ys.append(ynew)
    Y = jnp.stack(ys, axis=1)                                   # (B, S, D)

    Yh = Y.reshape(B, S, NH, DH)
    mean = Yh.mean(-1, keepdims=True)
    var = ((Yh - mean) ** 2).mean(-1, keepdims=True)
    out = (Yh - mean) * jax.lax.rsqrt(var + EPS)
    return out.reshape(B, S, D) * p["gamma"][None, None, :]


# -----------------------------------------------------------------------------
def make_params(key, D, NH, K):
    DH = D // NH
    ks = jax.random.split(key, 9)
    small = (2.0 / (5.0 * D)) ** 0.5   # small_init_ std
    return {
        "w_f": small * jax.random.normal(ks[0], (NH, DH, DH), jnp.float32),
        "w_i": small * jax.random.normal(ks[1], (NH, DH, DH), jnp.float32),
        "w_z": small * jax.random.normal(ks[2], (NH, DH, DH), jnp.float32),
        "w_o": small * jax.random.normal(ks[3], (NH, DH, DH), jnp.float32),
        "w_conv": 0.3 * jax.random.normal(ks[4], (K, D), jnp.float32),
        "b_conv": 0.1 * jax.random.normal(ks[5], (D,), jnp.float32),
        "r": jax.random.normal(ks[6], (NH, DH, 4 * DH), jnp.float32) / (DH ** 0.5),
        "bias": 0.1 * jax.random.normal(ks[7], (4, NH, DH), jnp.float32),
        "gamma": 1.0 + 0.1 * jax.random.normal(ks[8], (D,), jnp.float32),
    }


if __name__ == "__main__":
    D, NH, K = 32, 4, 4   # embedding_dim=32, num_heads=4, conv kernel=4
    keys = jax.random.split(jax.random.PRNGKey(0), 4)
    ref_fn = jax.jit(reference_forward, static_argnums=(2,))

    # ---- config 1: module-default small shapes (single chunk / tile) -------
    B, S = 2, 8
    x = jax.random.normal(keys[0], (B, S, D), jnp.float32)
    params = make_params(keys[1], D, NH, K)
    out = jax.block_until_ready(slstm_layer_forward(x, params, NH))
    ref = jax.block_until_ready(ref_fn(x, params, NH))
    assert out.shape == (B, S, D)
    assert bool(jnp.all(jnp.isfinite(out)))
    max_err = float(jnp.max(jnp.abs(out - ref)))
    mean_err = float(jnp.mean(jnp.abs(out - ref)))
    # bf16-operand MXU matmuls vs f32 reference; GroupNorm divides by the
    # per-head std which amplifies rounding, so a looser max-abs bound but a
    # tight mean-abs bound (real logic bugs produce O(1) errors on both).
    if max_err > 5e-2 or mean_err > 1e-2:
        raise AssertionError(
            f"config1 kernel/reference mismatch: max abs err = {max_err}, "
            f"mean abs err = {mean_err}")

    # ---- config 2: exercises multi-chunk state carry + multi-tile batch ----
    B2, S2 = 10, 40
    x2 = jax.random.normal(keys[2], (B2, S2, D), jnp.float32)
    params2 = make_params(keys[3], D, NH, K)
    out2 = jax.block_until_ready(
        slstm_layer_forward(x2, params2, NH, max_time_chunk=16))
    ref2 = jax.block_until_ready(ref_fn(x2, params2, NH))
    assert out2.shape == (B2, S2, D)
    assert bool(jnp.all(jnp.isfinite(out2)))
    max_err2 = float(jnp.max(jnp.abs(out2 - ref2)))
    mean_err2 = float(jnp.mean(jnp.abs(out2 - ref2)))
    # bf16 recurrent/gate matmuls drift a little over longer S; real chunk /
    # tile-carry bugs would produce O(1) errors, so this still discriminates.
    if max_err2 > 1.5e-1 or mean_err2 > 2e-2:
        raise AssertionError(
            f"config2 kernel/reference mismatch: max abs err = {max_err2}, "
            f"mean abs err = {mean_err2}")

    print("KERNEL_OK")
</pallas_src>

<mosaic_0001>
module attributes {stable_mosaic.version = 11 : i64} {
  func.func @slstm_layer_kernel(%arg0: i32, %arg1: i32, %arg2: memref<8x8x32xf32, #tpu.memory_space<vmem>>, %arg3: memref<4x32xf32, #tpu.memory_space<vmem>>, %arg4: memref<1x32xf32, #tpu.memory_space<vmem>>, %arg5: memref<32x64xbf16, #tpu.memory_space<vmem>>, %arg6: memref<32x64xbf16, #tpu.memory_space<vmem>>, %arg7: memref<32x128xbf16, #tpu.memory_space<vmem>>, %arg8: memref<1x128xf32, #tpu.memory_space<vmem>>, %arg9: memref<1x32xf32, #tpu.memory_space<vmem>>, %arg10: memref<32x4xf32, #tpu.memory_space<vmem>>, %arg11: memref<4x32xf32, #tpu.memory_space<vmem>>, %arg12: memref<8x8x32xf32, #tpu.memory_space<vmem>>, %arg13: memref<11x8x32xf32, #tpu.memory_space<vmem>>, %arg14: memref<64x128xf32, #tpu.memory_space<vmem>>, %arg15: memref<64x32xf32, #tpu.memory_space<vmem>>, %arg16: memref<8x32xf32, #tpu.memory_space<vmem>>, %arg17: memref<8x32xf32, #tpu.memory_space<vmem>>, %arg18: memref<8x32xf32, #tpu.memory_space<vmem>>, %arg19: memref<8x32xf32, #tpu.memory_space<vmem>>) attributes {dimension_semantics = [#tpu.dimension_semantics<parallel>, #tpu.dimension_semantics<arbitrary>], iteration_bounds = array<i64: 1, 1>, scalar_prefetch = 0 : i64, scratch_operands = 7 : i64, tpu.core_type = #tpu.core_type<tc>, window_params = [{transform_indices = @transform_0, window_bounds = array<i64: 8, 8, 32>}, {pipeline_mode = #tpu.pipeline_mode<synchronous>, transform_indices = @transform_1, window_bounds = array<i64: 4, 32>}, {pipeline_mode = #tpu.pipeline_mode<synchronous>, transform_indices = @transform_2, window_bounds = array<i64: 1, 32>}, {pipeline_mode = #tpu.pipeline_mode<synchronous>, transform_indices = @transform_3, window_bounds = array<i64: 32, 64>}, {pipeline_mode = #tpu.pipeline_mode<synchronous>, transform_indices = @transform_4, window_bounds = array<i64: 32, 64>}, {pipeline_mode = #tpu.pipeline_mode<synchronous>, transform_indices = @transform_5, window_bounds = array<i64: 32, 128>}, {pipeline_mode = #tpu.pipeline_mode<synchronous>, transform_indices = @transform_6, window_bounds = array<i64: 1, 128>}, {pipeline_mode = #tpu.pipeline_mode<synchronous>, transform_indices = @transform_7, window_bounds = array<i64: 1, 32>}, {pipeline_mode = #tpu.pipeline_mode<synchronous>, transform_indices = @transform_8, window_bounds = array<i64: 32, 4>}, {pipeline_mode = #tpu.pipeline_mode<synchronous>, transform_indices = @transform_9, window_bounds = array<i64: 4, 32>}, {transform_indices = @transform_10, window_bounds = array<i64: 8, 8, 32>}]} {
    %c0_i32 = arith.constant 0 : i32
    %0 = arith.cmpi eq, %arg1, %c0_i32 : i32
    %1 = arith.extui %0 : i1 to i32
    %c0_i32_0 = arith.constant 0 : i32
    %2 = arith.cmpi ne, %1, %c0_i32_0 : i32
    scf.if %2 {
      %cst_185 = arith.constant 0.000000e+00 : f32
      %461 = vector.broadcast %cst_185 : f32 to vector<3x8x32xf32>
      %c0_186 = arith.constant 0 : index
      %c0_187 = arith.constant 0 : index
      %c0_188 = arith.constant 0 : index
      %462 = vector.load %arg13[%c0_186, %c0_187, %c0_188] : memref<11x8x32xf32, #tpu.memory_space<vmem>>, vector<3x8x32xf32>
      tpu.vector_store %arg13[%c0_186, %c0_187, %c0_188], %461 {strides = array<i32>} : memref<11x8x32xf32, #tpu.memory_space<vmem>>, vector<3x8x32xf32>,
      %cst_189 = arith.constant 0.000000e+00 : f32
      %463 = vector.broadcast %cst_189 : f32 to vector<8x32xf32>
      %c0_190 = arith.constant 0 : index
      %c0_191 = arith.constant 0 : index
      %464 = vector.load %arg16[%c0_190, %c0_191] : memref<8x32xf32, #tpu.memory_space<vmem>>, vector<8x32xf32>
      tpu.vector_store %arg16[%c0_190, %c0_191], %463 {strides = array<i32>} : memref<8x32xf32, #tpu.memory_space<vmem>>, vector<8x32xf32>,
      %cst_192 = arith.constant 0.000000e+00 : f32
      %465 = vector.broadcast %cst_192 : f32 to vector<8x32xf32>
      %c0_193 = arith.constant 0 : index
      %c0_194 = arith.constant 0 : index
      %466 = vector.load %arg17[%c0_193, %c0_194] : memref<8x32xf32, #tpu.memory_space<vmem>>, vector<8x32xf32>
      tpu.vector_store %arg17[%c0_193, %c0_194], %465 {strides = array<i32>} : memref<8x32xf32, #tpu.memory_space<vmem>>, vector<8x32xf32>,
      %cst_195 = arith.constant 0.000000e+00 : f32
      %467 = vector.broadcast %cst_195 : f32 to vector<8x32xf32>
      %c0_196 = arith.constant 0 : index
      %c0_197 = arith.constant 0 : index
      %468 = vector.load %arg18[%c0_196, %c0_197] : memref<8x32xf32, #tpu.memory_space<vmem>>, vector<8x32xf32>
      tpu.vector_store %arg18[%c0_196, %c0_197], %467 {strides = array<i32>} : memref<8x32xf32, #tpu.memory_space<vmem>>, vector<8x32xf32>,
      %cst_198 = arith.constant -1.000000e+30 : f32
      %469 = vector.broadcast %cst_198 : f32 to vector<8x32xf32>
      %c0_199 = arith.constant 0 : index
      %c0_200 = arith.constant 0 : index
      %470 = vector.load %arg19[%c0_199, %c0_200] : memref<8x32xf32, #tpu.memory_space<vmem>>, vector<8x32xf32>
      tpu.vector_store %arg19[%c0_199, %c0_200], %469 {strides = array<i32>} : memref<8x32xf32, #tpu.memory_space<vmem>>, vector<8x32xf32>,
    } else {
    }
    %c0 = arith.constant 0 : index
    %c0_1 = arith.constant 0 : index
    %c0_2 = arith.constant 0 : index
    %3 = vector.load %arg2[%c0, %c0_1, %c0_2] : memref<8x8x32xf32, #tpu.memory_space<vmem>>, vector<8x8x32xf32>
    %c3 = arith.constant 3 : index
    %c0_3 = arith.constant 0 : index
    %c0_4 = arith.constant 0 : index
    %4 = vector.load %arg13[%c3, %c0_3, %c0_4] : memref<11x8x32xf32, #tpu.memory_space<vmem>>, vector<8x8x32xf32>
    tpu.vector_store %arg13[%c3, %c0_3, %c0_4], %3 {strides = array<i32>} : memref<11x8x32xf32, #tpu.memory_space<vmem>>, vector<8x8x32xf32>,
    %c0_5 = arith.constant 0 : index
    %c0_6 = arith.constant 0 : index
    %5 = vector.load %arg4[%c0_5, %c0_6] : memref<1x32xf32, #tpu.memory_space<vmem>>, vector<1x32xf32>
    %c0_7 = arith.constant 0 : index
    %c0_8 = arith.constant 0 : index
    %c0_9 = arith.constant 0 : index
    %6 = vector.load %arg13[%c0_7, %c0_8, %c0_9] : memref<11x8x32xf32, #tpu.memory_space<vmem>>, vector<8x8x32xf32>
    %c0_10 = arith.constant 0 : index
    %c0_11 = arith.constant 0 : index
    %7 = vector.load %arg3[%c0_10, %c0_11] : memref<4x32xf32, #tpu.memory_space<vmem>>, vector<1x32xf32>
    %8 = vector.shape_cast %7 : vector<1x32xf32> to vector<1x1x32xf32>
    %9 = vector.broadcast %8 : vector<1x1x32xf32> to vector<8x8x32xf32>
    %10 = arith.mulf %6, %9 : vector<8x8x32xf32>
    %11 = vector.shape_cast %5 : vector<1x32xf32> to vector<1x1x32xf32>
    %12 = vector.broadcast %11 : vector<1x1x32xf32> to vector<8x8x32xf32>
    %13 = arith.addf %12, %10 : vector<8x8x32xf32>
    %c1 = arith.constant 1 : index
    %c0_12 = arith.constant 0 : index
    %c0_13 = arith.constant 0 : index
    %14 = vector.load %arg13[%c1, %c0_12, %c0_13] : memref<11x8x32xf32, #tpu.memory_space<vmem>>, vector<8x8x32xf32>
    %c1_14 = arith.constant 1 : index
    %c0_15 = arith.constant 0 : index
    %15 = vector.load %arg3[%c1_14, %c0_15] : memref<4x32xf32, #tpu.memory_space<vmem>>, vector<1x32xf32>
    %16 = vector.shape_cast %15 : vector<1x32xf32> to vector<1x1x32xf32>
    %17 = vector.broadcast %16 : vector<1x1x32xf32> to vector<8x8x32xf32>
    %18 = arith.mulf %14, %17 : vector<8x8x32xf32>
    %19 = arith.addf %13, %18 : vector<8x8x32xf32>
    %c2 = arith.constant 2 : index
    %c0_16 = arith.constant 0 : index
    %c0_17 = arith.constant 0 : index
    %20 = vector.load %arg13[%c2, %c0_16, %c0_17] : memref<11x8x32xf32, #tpu.memory_space<vmem>>, vector<8x8x32xf32>
    %c2_18 = arith.constant 2 : index
    %c0_19 = arith.constant 0 : index
    %21 = vector.load %arg3[%c2_18, %c0_19] : memref<4x32xf32, #tpu.memory_space<vmem>>, vector<1x32xf32>
    %22 = vector.shape_cast %21 : vector<1x32xf32> to vector<1x1x32xf32>
    %23 = vector.broadcast %22 : vector<1x1x32xf32> to vector<8x8x32xf32>
    %24 = arith.mulf %20, %23 : vector<8x8x32xf32>
    %25 = arith.addf %19, %24 : vector<8x8x32xf32>
    %c3_20 = arith.constant 3 : index
    %c0_21 = arith.constant 0 : index
    %c0_22 = arith.constant 0 : index
    %26 = vector.load %arg13[%c3_20, %c0_21, %c0_22] : memref<11x8x32xf32, #tpu.memory_space<vmem>>, vector<8x8x32xf32>
    %c3_23 = arith.constant 3 : index
    %c0_24 = arith.constant 0 : index
    %27 = vector.load %arg3[%c3_23, %c0_24] : memref<4x32xf32, #tpu.memory_space<vmem>>, vector<1x32xf32>
    %28 = vector.shape_cast %27 : vector<1x32xf32> to vector<1x1x32xf32>
    %29 = vector.broadcast %28 : vector<1x1x32xf32> to vector<8x8x32xf32>
    %30 = arith.mulf %26, %29 : vector<8x8x32xf32>
    %31 = arith.addf %25, %30 : vector<8x8x32xf32>
    %cst = arith.constant 0.000000e+00 : f32
    %32 = vector.broadcast %cst : f32 to vector<8x8x32xf32>
    %33 = arith.subf %32, %31 : vector<8x8x32xf32>
    %34 = math.exp %33 : vector<8x8x32xf32>
    %cst_25 = arith.constant 1.000000e+00 : f32
    %35 = vector.broadcast %cst_25 : f32 to vector<8x8x32xf32>
    %36 = arith.addf %35, %34 : vector<8x8x32xf32>
    %cst_26 = arith.constant 1.000000e+00 : f32
    %37 = vector.broadcast %cst_26 : f32 to vector<8x8x32xf32>
    %38 = arith.divf %37, %36 : vector<8x8x32xf32>
    %39 = arith.mulf %31, %38 : vector<8x8x32xf32>
    %c0_27 = arith.constant 0 : index
    %c0_28 = arith.constant 0 : index
    %c0_29 = arith.constant 0 : index
    %40 = vector.load %arg2[%c0_27, %c0_28, %c0_29] : memref<8x8x32xf32, #tpu.memory_space<vmem>>, vector<8x8x32xf32>
    %c8 = arith.constant 8 : index
    %c0_30 = arith.constant 0 : index
    %c0_31 = arith.constant 0 : index
    %41 = vector.load %arg13[%c8, %c0_30, %c0_31] : memref<11x8x32xf32, #tpu.memory_space<vmem>>, vector<3x8x32xf32>
    %c0_32 = arith.constant 0 : index
    %c0_33 = arith.constant 0 : index
    %c0_34 = arith.constant 0 : index
    %42 = vector.load %arg13[%c0_32, %c0_33, %c0_34] : memref<11x8x32xf32, #tpu.memory_space<vmem>>, vector<3x8x32xf32>
    tpu.vector_store %arg13[%c0_32, %c0_33, %c0_34], %41 {strides = array<i32>} : memref<11x8x32xf32, #tpu.memory_space<vmem>>, vector<3x8x32xf32>,
    %c0_35 = arith.constant 0 : index
    %c0_36 = arith.constant 0 : index
    %43 = vector.load %arg8[%c0_35, %c0_36] : memref<1x128xf32, #tpu.memory_space<vmem>>, vector<1x128xf32>
    %44 = vector.shape_cast %39 : vector<8x8x32xf32> to vector<64x32xf32>
    %45 = arith.truncf %44 : vector<64x32xf32> to vector<64x32xbf16>
    %46 = vector.shape_cast %40 : vector<8x8x32xf32> to vector<64x32xf32>
    %47 = arith.truncf %46 : vector<64x32xf32> to vector<64x32xbf16>
    %c0_37 = arith.constant 0 : index
    %c0_38 = arith.constant 0 : index
    %48 = vector.load %arg5[%c0_37, %c0_38] : memref<32x64xbf16, #tpu.memory_space<vmem>>, vector<32x64xbf16>
    %cst_39 = arith.constant dense<0.000000e+00> : vector<64x64xf32>
    %49 = tpu.matmul %45, %48, %cst_39 {dimension_numbers = #tpu.dot_dimension_numbers<[1], [0], [0], [1], [0, 0, 1, 1], [], []>} : vector<64x32xbf16>, vector<32x64xbf16>, vector<64x64xf32> -> vector<64x64xf32>
    %50 = vector.extract_strided_slice %43 {offsets = [0, 0], sizes = [1, 64], strides = [1, 1]} : vector<1x128xf32> to vector<1x64xf32>
    %51 = vector.broadcast %50 : vector<1x64xf32> to vector<64x64xf32>
    %52 = arith.addf %49, %51 : vector<64x64xf32>
    %c0_40 = arith.constant 0 : index
    %c0_41 = arith.constant 0 : index
    %53 = vector.load %arg14[%c0_40, %c0_41] : memref<64x128xf32, #tpu.memory_space<vmem>>, vector<64x64xf32>
    tpu.vector_store %arg14[%c0_40, %c0_41], %52 {strides = array<i32>} : memref<64x128xf32, #tpu.memory_space<vmem>>, vector<64x64xf32>,
    %c0_42 = arith.constant 0 : index
    %c0_43 = arith.constant 0 : index
    %54 = vector.load %arg6[%c0_42, %c0_43] : memref<32x64xbf16, #tpu.memory_space<vmem>>, vector<32x64xbf16>
    %cst_44 = arith.constant dense<0.000000e+00> : vector<64x64xf32>
    %55 = tpu.matmul %47, %54, %cst_44 {dimension_numbers = #tpu.dot_dimension_numbers<[1], [0], [0], [1], [0, 0, 1, 1], [], []>} : vector<64x32xbf16>, vector<32x64xbf16>, vector<64x64xf32> -> vector<64x64xf32>
    %56 = vector.extract_strided_slice %43 {offsets = [0, 64], sizes = [1, 64], strides = [1, 1]} : vector<1x128xf32> to vector<1x64xf32>
    %57 = vector.broadcast %56 : vector<1x64xf32> to vector<64x64xf32>
    %58 = arith.addf %55, %57 : vector<64x64xf32>
    %c0_45 = arith.constant 0 : index
    %c64 = arith.constant 64 : index
    %59 = vector.load %arg14[%c0_45, %c64] : memref<64x128xf32, #tpu.memory_space<vmem>>, vector<64x64xf32>
    tpu.vector_store %arg14[%c0_45, %c64], %58 {strides = array<i32>} : memref<64x128xf32, #tpu.memory_space<vmem>>, vector<64x64xf32>,
    %c0_46 = arith.constant 0 : index
    %c0_47 = arith.constant 0 : index
    %60 = vector.load %arg16[%c0_46, %c0_47] : memref<8x32xf32, #tpu.memory_space<vmem>>, vector<8x32xf32>
    %c0_48 = arith.constant 0 : index
    %c0_49 = arith.constant 0 : index
    %61 = vector.load %arg17[%c0_48, %c0_49] : memref<8x32xf32, #tpu.memory_space<vmem>>, vector<8x32xf32>
    %c0_50 = arith.constant 0 : index
    %c0_51 = arith.constant 0 : index
    %62 = vector.load %arg18[%c0_50, %c0_51] : memref<8x32xf32, #tpu.memory_space<vmem>>, vector<8x32xf32>
    %c0_52 = arith.constant 0 : index
    %c0_53 = arith.constant 0 : index
    %63 = vector.load %arg19[%c0_52, %c0_53] : memref<8x32xf32, #tpu.memory_space<vmem>>, vector<8x32xf32>
    %c0_i32_54 = arith.constant 0 : i32
    %c8_i32 = arith.constant 8 : i32
    %64 = arith.muli %c0_i32_54, %c8_i32 : i32
    %65 = tpu.assume_multiple %64, 8 : i32
    %66 = arith.index_cast %65 : i32 to index
    %c0_55 = arith.constant 0 : index
    %67 = vector.load %arg14[%66, %c0_55] : memref<64x128xf32, #tpu.memory_space<vmem>>, vector<8x128xf32>
    %68 = arith.truncf %60 : vector<8x32xf32> to vector<8x32xbf16>
    %c0_56 = arith.constant 0 : index
    %c0_57 = arith.constant 0 : index
    %69 = vector.load %arg7[%c0_56, %c0_57] : memref<32x128xbf16, #tpu.memory_space<vmem>>, vector<32x128xbf16>
    %cst_58 = arith.constant dense<0.000000e+00> : vector<8x128xf32>
    %70 = tpu.matmul %68, %69, %cst_58 {dimension_numbers = #tpu.dot_dimension_numbers<[1], [0], [0], [1], [0, 0, 1, 1], [], []>} : vector<8x32xbf16>, vector<32x128xbf16>, vector<8x128xf32> -> vector<8x128xf32>
    %71 = arith.addf %67, %70 : vector<8x128xf32>
    %72 = vector.extract_strided_slice %71 {offsets = [0, 0], sizes = [8, 32], strides = [1, 1]} : vector<8x128xf32> to vector<8x32xf32>
    %73 = vector.extract_strided_slice %71 {offsets = [0, 32], sizes = [8, 32], strides = [1, 1]} : vector<8x128xf32> to vector<8x32xf32>
    %74 = vector.extract_strided_slice %71 {offsets = [0, 64], sizes = [8, 32], strides = [1, 1]} : vector<8x128xf32> to vector<8x32xf32>
    %75 = vector.extract_strided_slice %71 {offsets = [0, 96], sizes = [8, 32], strides = [1, 1]} : vector<8x128xf32> to vector<8x32xf32>
    %cst_59 = arith.constant 0.000000e+00 : f32
    %76 = vector.broadcast %cst_59 : f32 to vector<8x32xf32>
    %77 = arith.minimumf %73, %76 : vector<8x32xf32>
    %78 = math.absf %73 : vector<8x32xf32>
    %cst_60 = arith.constant 0.000000e+00 : f32
    %79 = vector.broadcast %cst_60 : f32 to vector<8x32xf32>
    %80 = arith.subf %79, %78 : vector<8x32xf32>
    %81 = math.exp %80 : vector<8x32xf32>
    %cst_61 = arith.constant 1.000000e+00 : f32
    %82 = vector.broadcast %cst_61 : f32 to vector<8x32xf32>
    %83 = arith.addf %82, %81 : vector<8x32xf32>
    %84 = math.log %83 : vector<8x32xf32>
    %85 = arith.subf %77, %84 : vector<8x32xf32>
    %86 = arith.addf %63, %85 : vector<8x32xf32>
    %87 = arith.maximumf %72, %86 : vector<8x32xf32>
    %cst_62 = arith.constant 0.000000e+00 : f32
    %88 = vector.broadcast %cst_62 : f32 to vector<8x32xf32>
    %89 = arith.subf %88, %75 : vector<8x32xf32>
    %90 = math.exp %89 : vector<8x32xf32>
    %cst_63 = arith.constant 1.000000e+00 : f32
    %91 = vector.broadcast %cst_63 : f32 to vector<8x32xf32>
    %92 = arith.addf %91, %90 : vector<8x32xf32>
    %cst_64 = arith.constant 1.000000e+00 : f32
    %93 = vector.broadcast %cst_64 : f32 to vector<8x32xf32>
    %94 = arith.divf %93, %92 : vector<8x32xf32>
    %95 = arith.subf %72, %87 : vector<8x32xf32>
    %96 = math.exp %95 : vector<8x32xf32>
    %97 = arith.subf %86, %87 : vector<8x32xf32>
    %98 = math.exp %97 : vector<8x32xf32>
    %99 = arith.mulf %98, %61 : vector<8x32xf32>
    %100 = math.tanh %74 : vector<8x32xf32>
    %101 = arith.mulf %96, %100 : vector<8x32xf32>
    %102 = arith.addf %99, %101 : vector<8x32xf32>
    %103 = arith.mulf %98, %62 : vector<8x32xf32>
    %104 = arith.addf %103, %96 : vector<8x32xf32>
    %105 = arith.mulf %94, %102 : vector<8x32xf32>
    %106 = tpu.reciprocal %104 {approx = true} : vector<8x32xf32> -> vector<8x32xf32>
    %107 = arith.mulf %105, %106 : vector<8x32xf32>
    %108 = arith.index_cast %65 : i32 to index
    %c0_65 = arith.constant 0 : index
    %109 = vector.load %arg15[%108, %c0_65] : memref<64x32xf32, #tpu.memory_space<vmem>>, vector<8x32xf32>
    tpu.vector_store %arg15[%108, %c0_65], %107 {strides = array<i32>} : memref<64x32xf32, #tpu.memory_space<vmem>>, vector<8x32xf32>,
    %c1_i32 = arith.constant 1 : i32
    %c8_i32_66 = arith.constant 8 : i32
    %110 = arith.muli %c1_i32, %c8_i32_66 : i32
    %111 = tpu.assume_multiple %110, 8 : i32
    %112 = arith.index_cast %111 : i32 to index
    %c0_67 = arith.constant 0 : index
    %113 = vector.load %arg14[%112, %c0_67] : memref<64x128xf32, #tpu.memory_space<vmem>>, vector<8x128xf32>
    %114 = arith.truncf %107 : vector<8x32xf32> to vector<8x32xbf16>
    %c0_68 = arith.constant 0 : index
    %c0_69 = arith.constant 0 : index
    %115 = vector.load %arg7[%c0_68, %c0_69] : memref<32x128xbf16, #tpu.memory_space<vmem>>, vector<32x128xbf16>
    %cst_70 = arith.constant dense<0.000000e+00> : vector<8x128xf32>
    %116 = tpu.matmul %114, %115, %cst_70 {dimension_numbers = #tpu.dot_dimension_numbers<[1], [0], [0], [1], [0, 0, 1, 1], [], []>} : vector<8x32xbf16>, vector<32x128xbf16>, vector<8x128xf32> -> vector<8x128xf32>
    %117 = arith.addf %113, %116 : vector<8x128xf32>
    %118 = vector.extract_strided_slice %117 {offsets = [0, 0], sizes = [8, 32], strides = [1, 1]} : vector<8x128xf32> to vector<8x32xf32>
    %119 = vector.extract_strided_slice %117 {offsets = [0, 32], sizes = [8, 32], strides = [1, 1]} : vector<8x128xf32> to vector<8x32xf32>
    %120 = vector.extract_strided_slice %117 {offsets = [0, 64], sizes = [8, 32], strides = [1, 1]} : vector<8x128xf32> to vector<8x32xf32>
    %121 = vector.extract_strided_slice %117 {offsets = [0, 96], sizes = [8, 32], strides = [1, 1]} : vector<8x128xf32> to vector<8x32xf32>
    %cst_71 = arith.constant 0.000000e+00 : f32
    %122 = vector.broadcast %cst_71 : f32 to vector<8x32xf32>
    %123 = arith.minimumf %119, %122 : vector<8x32xf32>
    %124 = math.absf %119 : vector<8x32xf32>
    %cst_72 = arith.constant 0.000000e+00 : f32
    %125 = vector.broadcast %cst_72 : f32 to vector<8x32xf32>
    %126 = arith.subf %125, %124 : vector<8x32xf32>
    %127 = math.exp %126 : vector<8x32xf32>
    %cst_73 = arith.constant 1.000000e+00 : f32
    %128 = vector.broadcast %cst_73 : f32 to vector<8x32xf32>
    %129 = arith.addf %128, %127 : vector<8x32xf32>
    %130 = math.log %129 : vector<8x32xf32>
    %131 = arith.subf %123, %130 : vector<8x32xf32>
    %132 = arith.addf %87, %131 : vector<8x32xf32>
    %133 = arith.maximumf %118, %132 : vector<8x32xf32>
    %cst_74 = arith.constant 0.000000e+00 : f32
    %134 = vector.broadcast %cst_74 : f32 to vector<8x32xf32>
    %135 = arith.subf %134, %121 : vector<8x32xf32>
    %136 = math.exp %135 : vector<8x32xf32>
    %cst_75 = arith.constant 1.000000e+00 : f32
    %137 = vector.broadcast %cst_75 : f32 to vector<8x32xf32>
    %138 = arith.addf %137, %136 : vector<8x32xf32>
    %cst_76 = arith.constant 1.000000e+00 : f32
    %139 = vector.broadcast %cst_76 : f32 to vector<8x32xf32>
    %140 = arith.divf %139, %138 : vector<8x32xf32>
    %141 = arith.subf %118, %133 : vector<8x32xf32>
    %142 = math.exp %141 : vector<8x32xf32>
    %143 = arith.subf %132, %133 : vector<8x32xf32>
    %144 = math.exp %143 : vector<8x32xf32>
    %145 = arith.mulf %144, %102 : vector<8x32xf32>
    %146 = math.tanh %120 : vector<8x32xf32>
    %147 = arith.mulf %142, %146 : vector<8x32xf32>
    %148 = arith.addf %145, %147 : vector<8x32xf32>
    %149 = arith.mulf %144, %104 : vector<8x32xf32>
    %150 = arith.addf %149, %142 : vector<8x32xf32>
    %151 = arith.mulf %140, %148 : vector<8x32xf32>
    %152 = tpu.reciprocal %150 {approx = true} : vector<8x32xf32> -> vector<8x32xf32>
    %153 = arith.mulf %151, %152 : vector<8x32xf32>
    %154 = arith.index_cast %111 : i32 to index
    %c0_77 = arith.constant 0 : index
    %155 = vector.load %arg15[%154, %c0_77] : memref<64x32xf32, #tpu.memory_space<vmem>>, vector<8x32xf32>
    tpu.vector_store %arg15[%154, %c0_77], %153 {strides = array<i32>} : memref<64x32xf32, #tpu.memory_space<vmem>>, vector<8x32xf32>,
    %c2_i32 = arith.constant 2 : i32
    %c8_i32_78 = arith.constant 8 : i32
    %156 = arith.muli %c2_i32, %c8_i32_78 : i32
    %157 = tpu.assume_multiple %156, 8 : i32
    %158 = arith.index_cast %157 : i32 to index
    %c0_79 = arith.constant 0 : index
    %159 = vector.load %arg14[%158, %c0_79] : memref<64x128xf32, #tpu.memory_space<vmem>>, vector<8x128xf32>
    %160 = arith.truncf %153 : vector<8x32xf32> to vector<8x32xbf16>
    %c0_80 = arith.constant 0 : index
    %c0_81 = arith.constant 0 : index
    %161 = vector.load %arg7[%c0_80, %c0_81] : memref<32x128xbf16, #tpu.memory_space<vmem>>, vector<32x128xbf16>
    %cst_82 = arith.constant dense<0.000000e+00> : vector<8x128xf32>
    %162 = tpu.matmul %160, %161, %cst_82 {dimension_numbers = #tpu.dot_dimension_numbers<[1], [0], [0], [1], [0, 0, 1, 1], [], []>} : vector<8x32xbf16>, vector<32x128xbf16>, vector<8x128xf32> -> vector<8x128xf32>
    %163 = arith.addf %159, %162 : vector<8x128xf32>
    %164 = vector.extract_strided_slice %163 {offsets = [0, 0], sizes = [8, 32], strides = [1, 1]} : vector<8x128xf32> to vector<8x32xf32>
    %165 = vector.extract_strided_slice %163 {offsets = [0, 32], sizes = [8, 32], strides = [1, 1]} : vector<8x128xf32> to vector<8x32xf32>
    %166 = vector.extract_strided_slice %163 {offsets = [0, 64], sizes = [8, 32], strides = [1, 1]} : vector<8x128xf32> to vector<8x32xf32>
    %167 = vector.extract_strided_slice %163 {offsets = [0, 96], sizes = [8, 32], strides = [1, 1]} : vector<8x128xf32> to vector<8x32xf32>
    %cst_83 = arith.constant 0.000000e+00 : f32
    %168 = vector.broadcast %cst_83 : f32 to vector<8x32xf32>
    %169 = arith.minimumf %165, %168 : vector<8x32xf32>
    %170 = math.absf %165 : vector<8x32xf32>
    %cst_84 = arith.constant 0.000000e+00 : f32
    %171 = vector.broadcast %cst_84 : f32 to vector<8x32xf32>
    %172 = arith.subf %171, %170 : vector<8x32xf32>
    %173 = math.exp %172 : vector<8x32xf32>
    %cst_85 = arith.constant 1.000000e+00 : f32
    %174 = vector.broadcast %cst_85 : f32 to vector<8x32xf32>
    %175 = arith.addf %174, %173 : vector<8x32xf32>
    %176 = math.log %175 : vector<8x32xf32>
    %177 = arith.subf %169, %176 : vector<8x32xf32>
    %178 = arith.addf %133, %177 : vector<8x32xf32>
    %179 = arith.maximumf %164, %178 : vector<8x32xf32>
    %cst_86 = arith.constant 0.000000e+00 : f32
    %180 = vector.broadcast %cst_86 : f32 to vector<8x32xf32>
    %181 = arith.subf %180, %167 : vector<8x32xf32>
    %182 = math.exp %181 : vector<8x32xf32>
    %cst_87 = arith.constant 1.000000e+00 : f32
    %183 = vector.broadcast %cst_87 : f32 to vector<8x32xf32>
    %184 = arith.addf %183, %182 : vector<8x32xf32>
    %cst_88 = arith.constant 1.000000e+00 : f32
    %185 = vector.broadcast %cst_88 : f32 to vector<8x32xf32>
    %186 = arith.divf %185, %184 : vector<8x32xf32>
    %187 = arith.subf %164, %179 : vector<8x32xf32>
    %188 = math.exp %187 : vector<8x32xf32>
    %189 = arith.subf %178, %179 : vector<8x32xf32>
    %190 = math.exp %189 : vector<8x32xf32>
    %191 = arith.mulf %190, %148 : vector<8x32xf32>
    %192 = math.tanh %166 : vector<8x32xf32>
    %193 = arith.mulf %188, %192 : vector<8x32xf32>
    %194 = arith.addf %191, %193 : vector<8x32xf32>
    %195 = arith.mulf %190, %150 : vector<8x32xf32>
    %196 = arith.addf %195, %188 : vector<8x32xf32>
    %197 = arith.mulf %186, %194 : vector<8x32xf32>
    %198 = tpu.reciprocal %196 {approx = true} : vector<8x32xf32> -> vector<8x32xf32>
    %199 = arith.mulf %197, %198 : vector<8x32xf32>
    %200 = arith.index_cast %157 : i32 to index
    %c0_89 = arith.constant 0 : index
    %201 = vector.load %arg15[%200, %c0_89] : memref<64x32xf32, #tpu.memory_space<vmem>>, vector<8x32xf32>
    tpu.vector_store %arg15[%200, %c0_89], %199 {strides = array<i32>} : memref<64x32xf32, #tpu.memory_space<vmem>>, vector<8x32xf32>,
    %c3_i32 = arith.constant 3 : i32
    %c8_i32_90 = arith.constant 8 : i32
    %202 = arith.muli %c3_i32, %c8_i32_90 : i32
    %203 = tpu.assume_multiple %202, 8 : i32
    %204 = arith.index_cast %203 : i32 to index
    %c0_91 = arith.constant 0 : index
    %205 = vector.load %arg14[%204, %c0_91] : memref<64x128xf32, #tpu.memory_space<vmem>>, vector<8x128xf32>
    %206 = arith.truncf %199 : vector<8x32xf32> to vector<8x32xbf16>
    %c0_92 = arith.constant 0 : index
    %c0_93 = arith.constant 0 : index
    %207 = vector.load %arg7[%c0_92, %c0_93] : memref<32x128xbf16, #tpu.memory_space<vmem>>, vector<32x128xbf16>
    %cst_94 = arith.constant dense<0.000000e+00> : vector<8x128xf32>
    %208 = tpu.matmul %206, %207, %cst_94 {dimension_numbers = #tpu.dot_dimension_numbers<[1], [0], [0], [1], [0, 0, 1, 1], [], []>} : vector<8x32xbf16>, vector<32x128xbf16>, vector<8x128xf32> -> vector<8x128xf32>
    %209 = arith.addf %205, %208 : vector<8x128xf32>
    %210 = vector.extract_strided_slice %209 {offsets = [0, 0], sizes = [8, 32], strides = [1, 1]} : vector<8x128xf32> to vector<8x32xf32>
    %211 = vector.extract_strided_slice %209 {offsets = [0, 32], sizes = [8, 32], strides = [1, 1]} : vector<8x128xf32> to vector<8x32xf32>
    %212 = vector.extract_strided_slice %209 {offsets = [0, 64], sizes = [8, 32], strides = [1, 1]} : vector<8x128xf32> to vector<8x32xf32>
    %213 = vector.extract_strided_slice %209 {offsets = [0, 96], sizes = [8, 32], strides = [1, 1]} : vector<8x128xf32> to vector<8x32xf32>
    %cst_95 = arith.constant 0.000000e+00 : f32
    %214 = vector.broadcast %cst_95 : f32 to vector<8x32xf32>
    %215 = arith.minimumf %211, %214 : vector<8x32xf32>
    %216 = math.absf %211 : vector<8x32xf32>
    %cst_96 = arith.constant 0.000000e+00 : f32
    %217 = vector.broadcast %cst_96 : f32 to vector<8x32xf32>
    %218 = arith.subf %217, %216 : vector<8x32xf32>
    %219 = math.exp %218 : vector<8x32xf32>
    %cst_97 = arith.constant 1.000000e+00 : f32
    %220 = vector.broadcast %cst_97 : f32 to vector<8x32xf32>
    %221 = arith.addf %220, %219 : vector<8x32xf32>
    %222 = math.log %221 : vector<8x32xf32>
    %223 = arith.subf %215, %222 : vector<8x32xf32>
    %224 = arith.addf %179, %223 : vector<8x32xf32>
    %225 = arith.maximumf %210, %224 : vector<8x32xf32>
    %cst_98 = arith.constant 0.000000e+00 : f32
    %226 = vector.broadcast %cst_98 : f32 to vector<8x32xf32>
    %227 = arith.subf %226, %213 : vector<8x32xf32>
    %228 = math.exp %227 : vector<8x32xf32>
    %cst_99 = arith.constant 1.000000e+00 : f32
    %229 = vector.broadcast %cst_99 : f32 to vector<8x32xf32>
    %230 = arith.addf %229, %228 : vector<8x32xf32>
    %cst_100 = arith.constant 1.000000e+00 : f32
    %231 = vector.broadcast %cst_100 : f32 to vector<8x32xf32>
    %232 = arith.divf %231, %230 : vector<8x32xf32>
    %233 = arith.subf %210, %225 : vector<8x32xf32>
    %234 = math.exp %233 : vector<8x32xf32>
    %235 = arith.subf %224, %225 : vector<8x32xf32>
    %236 = math.exp %235 : vector<8x32xf32>
    %237 = arith.mulf %236, %194 : vector<8x32xf32>
    %238 = math.tanh %212 : vector<8x32xf32>
    %239 = arith.mulf %234, %238 : vector<8x32xf32>
    %240 = arith.addf %237, %239 : vector<8x32xf32>
    %241 = arith.mulf %236, %196 : vector<8x32xf32>
    %242 = arith.addf %241, %234 : vector<8x32xf32>
    %243 = arith.mulf %232, %240 : vector<8x32xf32>
    %244 = tpu.reciprocal %242 {approx = true} : vector<8x32xf32> -> vector<8x32xf32>
    %245 = arith.mulf %243, %244 : vector<8x32xf32>
    %246 = arith.index_cast %203 : i32 to index
    %c0_101 = arith.constant 0 : index
    %247 = vector.load %arg15[%246, %c0_101] : memref<64x32xf32, #tpu.memory_space<vmem>>, vector<8x32xf32>
    tpu.vector_store %arg15[%246, %c0_101], %245 {strides = array<i32>} : memref<64x32xf32, #tpu.memory_space<vmem>>, vector<8x32xf32>,
    %c4_i32 = arith.constant 4 : i32
    %c8_i32_102 = arith.constant 8 : i32
    %248 = arith.muli %c4_i32, %c8_i32_102 : i32
    %249 = tpu.assume_multiple %248, 8 : i32
    %250 = arith.index_cast %249 : i32 to index
    %c0_103 = arith.constant 0 : index
    %251 = vector.load %arg14[%250, %c0_103] : memref<64x128xf32, #tpu.memory_space<vmem>>, vector<8x128xf32>
    %252 = arith.truncf %245 : vector<8x32xf32> to vector<8x32xbf16>
    %c0_104 = arith.constant 0 : index
    %c0_105 = arith.constant 0 : index
    %253 = vector.load %arg7[%c0_104, %c0_105] : memref<32x128xbf16, #tpu.memory_space<vmem>>, vector<32x128xbf16>
    %cst_106 = arith.constant dense<0.000000e+00> : vector<8x128xf32>
    %254 = tpu.matmul %252, %253, %cst_106 {dimension_numbers = #tpu.dot_dimension_numbers<[1], [0], [0], [1], [0, 0, 1, 1], [], []>} : vector<8x32xbf16>, vector<32x128xbf16>, vector<8x128xf32> -> vector<8x128xf32>
    %255 = arith.addf %251, %254 : vector<8x128xf32>
    %256 = vector.extract_strided_slice %255 {offsets = [0, 0], sizes = [8, 32], strides = [1, 1]} : vector<8x128xf32> to vector<8x32xf32>
    %257 = vector.extract_strided_slice %255 {offsets = [0, 32], sizes = [8, 32], strides = [1, 1]} : vector<8x128xf32> to vector<8x32xf32>
    %258 = vector.extract_strided_slice %255 {offsets = [0, 64], sizes = [8, 32], strides = [1, 1]} : vector<8x128xf32> to vector<8x32xf32>
    %259 = vector.extract_strided_slice %255 {offsets = [0, 96], sizes = [8, 32], strides = [1, 1]} : vector<8x128xf32> to vector<8x32xf32>
    %cst_107 = arith.constant 0.000000e+00 : f32
    %260 = vector.broadcast %cst_107 : f32 to vector<8x32xf32>
    %261 = arith.minimumf %257, %260 : vector<8x32xf32>
    %262 = math.absf %257 : vector<8x32xf32>
    %cst_108 = arith.constant 0.000000e+00 : f32
    %263 = vector.broadcast %cst_108 : f32 to vector<8x32xf32>
    %264 = arith.subf %263, %262 : vector<8x32xf32>
    %265 = math.exp %264 : vector<8x32xf32>
    %cst_109 = arith.constant 1.000000e+00 : f32
    %266 = vector.broadcast %cst_109 : f32 to vector<8x32xf32>
    %267 = arith.addf %266, %265 : vector<8x32xf32>
    %268 = math.log %267 : vector<8x32xf32>
    %269 = arith.subf %261, %268 : vector<8x32xf32>
    %270 = arith.addf %225, %269 : vector<8x32xf32>
    %271 = arith.maximumf %256, %270 : vector<8x32xf32>
    %cst_110 = arith.constant 0.000000e+00 : f32
    %272 = vector.broadcast %cst_110 : f32 to vector<8x32xf32>
    %273 = arith.subf %272, %259 : vector<8x32xf32>
    %274 = math.exp %273 : vector<8x32xf32>
    %cst_111 = arith.constant 1.000000e+00 : f32
    %275 = vector.broadcast %cst_111 : f32 to vector<8x32xf32>
    %276 = arith.addf %275, %274 : vector<8x32xf32>
    %cst_112 = arith.constant 1.000000e+00 : f32
    %277 = vector.broadcast %cst_112 : f32 to vector<8x32xf32>
    %278 = arith.divf %277, %276 : vector<8x32xf32>
    %279 = arith.subf %256, %271 : vector<8x32xf32>
    %280 = math.exp %279 : vector<8x32xf32>
    %281 = arith.subf %270, %271 : vector<8x32xf32>
    %282 = math.exp %281 : vector<8x32xf32>
    %283 = arith.mulf %282, %240 : vector<8x32xf32>
    %284 = math.tanh %258 : vector<8x32xf32>
    %285 = arith.mulf %280, %284 : vector<8x32xf32>
    %286 = arith.addf %283, %285 : vector<8x32xf32>
    %287 = arith.mulf %282, %242 : vector<8x32xf32>
    %288 = arith.addf %287, %280 : vector<8x32xf32>
    %289 = arith.mulf %278, %286 : vector<8x32xf32>
    %290 = tpu.reciprocal %288 {approx = true} : vector<8x32xf32> -> vector<8x32xf32>
    %291 = arith.mulf %289, %290 : vector<8x32xf32>
    %292 = arith.index_cast %249 : i32 to index
    %c0_113 = arith.constant 0 : index
    %293 = vector.load %arg15[%292, %c0_113] : memref<64x32xf32, #tpu.memory_space<vmem>>, vector<8x32xf32>
    tpu.vector_store %arg15[%292, %c0_113], %291 {strides = array<i32>} : memref<64x32xf32, #tpu.memory_space<vmem>>, vector<8x32xf32>,
    %c5_i32 = arith.constant 5 : i32
    %c8_i32_114 = arith.constant 8 : i32
    %294 = arith.muli %c5_i32, %c8_i32_114 : i32
    %295 = tpu.assume_multiple %294, 8 : i32
    %296 = arith.index_cast %295 : i32 to index
    %c0_115 = arith.constant 0 : index
    %297 = vector.load %arg14[%296, %c0_115] : memref<64x128xf32, #tpu.memory_space<vmem>>, vector<8x128xf32>
    %298 = arith.truncf %291 : vector<8x32xf32> to vector<8x32xbf16>
    %c0_116 = arith.constant 0 : index
    %c0_117 = arith.constant 0 : index
    %299 = vector.load %arg7[%c0_116, %c0_117] : memref<32x128xbf16, #tpu.memory_space<vmem>>, vector<32x128xbf16>
    %cst_118 = arith.constant dense<0.000000e+00> : vector<8x128xf32>
    %300 = tpu.matmul %298, %299, %cst_118 {dimension_numbers = #tpu.dot_dimension_numbers<[1], [0], [0], [1], [0, 0, 1, 1], [], []>} : vector<8x32xbf16>, vector<32x128xbf16>, vector<8x128xf32> -> vector<8x128xf32>
    %301 = arith.addf %297, %300 : vector<8x128xf32>
    %302 = vector.extract_strided_slice %301 {offsets = [0, 0], sizes = [8, 32], strides = [1, 1]} : vector<8x128xf32> to vector<8x32xf32>
    %303 = vector.extract_strided_slice %301 {offsets = [0, 32], sizes = [8, 32], strides = [1, 1]} : vector<8x128xf32> to vector<8x32xf32>
    %304 = vector.extract_strided_slice %301 {offsets = [0, 64], sizes = [8, 32], strides = [1, 1]} : vector<8x128xf32> to vector<8x32xf32>
    %305 = vector.extract_strided_slice %301 {offsets = [0, 96], sizes = [8, 32], strides = [1, 1]} : vector<8x128xf32> to vector<8x32xf32>
    %cst_119 = arith.constant 0.000000e+00 : f32
    %306 = vector.broadcast %cst_119 : f32 to vector<8x32xf32>
    %307 = arith.minimumf %303, %306 : vector<8x32xf32>
    %308 = math.absf %303 : vector<8x32xf32>
    %cst_120 = arith.constant 0.000000e+00 : f32
    %309 = vector.broadcast %cst_120 : f32 to vector<8x32xf32>
    %310 = arith.subf %309, %308 : vector<8x32xf32>
    %311 = math.exp %310 : vector<8x32xf32>
    %cst_121 = arith.constant 1.000000e+00 : f32
    %312 = vector.broadcast %cst_121 : f32 to vector<8x32xf32>
    %313 = arith.addf %312, %311 : vector<8x32xf32>
    %314 = math.log %313 : vector<8x32xf32>
    %315 = arith.subf %307, %314 : vector<8x32xf32>
    %316 = arith.addf %271, %315 : vector<8x32xf32>
    %317 = arith.maximumf %302, %316 : vector<8x32xf32>
    %cst_122 = arith.constant 0.000000e+00 : f32
    %318 = vector.broadcast %cst_122 : f32 to vector<8x32xf32>
    %319 = arith.subf %318, %305 : vector<8x32xf32>
    %320 = math.exp %319 : vector<8x32xf32>
    %cst_123 = arith.constant 1.000000e+00 : f32
    %321 = vector.broadcast %cst_123 : f32 to vector<8x32xf32>
    %322 = arith.addf %321, %320 : vector<8x32xf32>
    %cst_124 = arith.constant 1.000000e+00 : f32
    %323 = vector.broadcast %cst_124 : f32 to vector<8x32xf32>
    %324 = arith.divf %323, %322 : vector<8x32xf32>
    %325 = arith.subf %302, %317 : vector<8x32xf32>
    %326 = math.exp %325 : vector<8x32xf32>
    %327 = arith.subf %316, %317 : vector<8x32xf32>
    %328 = math.exp %327 : vector<8x32xf32>
    %329 = arith.mulf %328, %286 : vector<8x32xf32>
    %330 = math.tanh %304 : vector<8x32xf32>
    %331 = arith.mulf %326, %330 : vector<8x32xf32>
    %332 = arith.addf %329, %331 : vector<8x32xf32>
    %333 = arith.mulf %328, %288 : vector<8x32xf32>
    %334 = arith.addf %333, %326 : vector<8x32xf32>
    %335 = arith.mulf %324, %332 : vector<8x32xf32>
    %336 = tpu.reciprocal %334 {approx = true} : vector<8x32xf32> -> vector<8x32xf32>
    %337 = arith.mulf %335, %336 : vector<8x32xf32>
    %338 = arith.index_cast %295 : i32 to index
    %c0_125 = arith.constant 0 : index
    %339 = vector.load %arg15[%338, %c0_125] : memref<64x32xf32, #tpu.memory_space<vmem>>, vector<8x32xf32>
    tpu.vector_store %arg15[%338, %c0_125], %337 {strides = array<i32>} : memref<64x32xf32, #tpu.memory_space<vmem>>, vector<8x32xf32>,
    %c6_i32 = arith.constant 6 : i32
    %c8_i32_126 = arith.constant 8 : i32
    %340 = arith.muli %c6_i32, %c8_i32_126 : i32
    %341 = tpu.assume_multiple %340, 8 : i32
    %342 = arith.index_cast %341 : i32 to index
    %c0_127 = arith.constant 0 : index
    %343 = vector.load %arg14[%342, %c0_127] : memref<64x128xf32, #tpu.memory_space<vmem>>, vector<8x128xf32>
    %344 = arith.truncf %337 : vector<8x32xf32> to vector<8x32xbf16>
    %c0_128 = arith.constant 0 : index
    %c0_129 = arith.constant 0 : index
    %345 = vector.load %arg7[%c0_128, %c0_129] : memref<32x128xbf16, #tpu.memory_space<vmem>>, vector<32x128xbf16>
    %cst_130 = arith.constant dense<0.000000e+00> : vector<8x128xf32>
    %346 = tpu.matmul %344, %345, %cst_130 {dimension_numbers = #tpu.dot_dimension_numbers<[1], [0], [0], [1], [0, 0, 1, 1], [], []>} : vector<8x32xbf16>, vector<32x128xbf16>, vector<8x128xf32> -> vector<8x128xf32>
    %347 = arith.addf %343, %346 : vector<8x128xf32>
    %348 = vector.extract_strided_slice %347 {offsets = [0, 0], sizes = [8, 32], strides = [1, 1]} : vector<8x128xf32> to vector<8x32xf32>
    %349 = vector.extract_strided_slice %347 {offsets = [0, 32], sizes = [8, 32], strides = [1, 1]} : vector<8x128xf32> to vector<8x32xf32>
    %350 = vector.extract_strided_slice %347 {offsets = [0, 64], sizes = [8, 32], strides = [1, 1]} : vector<8x128xf32> to vector<8x32xf32>
    %351 = vector.extract_strided_slice %347 {offsets = [0, 96], sizes = [8, 32], strides = [1, 1]} : vector<8x128xf32> to vector<8x32xf32>
    %cst_131 = arith.constant 0.000000e+00 : f32
    %352 = vector.broadcast %cst_131 : f32 to vector<8x32xf32>
    %353 = arith.minimumf %349, %352 : vector<8x32xf32>
    %354 = math.absf %349 : vector<8x32xf32>
    %cst_132 = arith.constant 0.000000e+00 : f32
    %355 = vector.broadcast %cst_132 : f32 to vector<8x32xf32>
    %356 = arith.subf %355, %354 : vector<8x32xf32>
    %357 = math.exp %356 : vector<8x32xf32>
    %cst_133 = arith.constant 1.000000e+00 : f32
    %358 = vector.broadcast %cst_133 : f32 to vector<8x32xf32>
    %359 = arith.addf %358, %357 : vector<8x32xf32>
    %360 = math.log %359 : vector<8x32xf32>
    %361 = arith.subf %353, %360 : vector<8x32xf32>
    %362 = arith.addf %317, %361 : vector<8x32xf32>
    %363 = arith.maximumf %348, %362 : vector<8x32xf32>
    %cst_134 = arith.constant 0.000000e+00 : f32
    %364 = vector.broadcast %cst_134 : f32 to vector<8x32xf32>
    %365 = arith.subf %364, %351 : vector<8x32xf32>
    %366 = math.exp %365 : vector<8x32xf32>
    %cst_135 = arith.constant 1.000000e+00 : f32
    %367 = vector.broadcast %cst_135 : f32 to vector<8x32xf32>
    %368 = arith.addf %367, %366 : vector<8x32xf32>
    %cst_136 = arith.constant 1.000000e+00 : f32
    %369 = vector.broadcast %cst_136 : f32 to vector<8x32xf32>
    %370 = arith.divf %369, %368 : vector<8x32xf32>
    %371 = arith.subf %348, %363 : vector<8x32xf32>
    %372 = math.exp %371 : vector<8x32xf32>
    %373 = arith.subf %362, %363 : vector<8x32xf32>
    %374 = math.exp %373 : vector<8x32xf32>
    %375 = arith.mulf %374, %332 : vector<8x32xf32>
    %376 = math.tanh %350 : vector<8x32xf32>
    %377 = arith.mulf %372, %376 : vector<8x32xf32>
    %378 = arith.addf %375, %377 : vector<8x32xf32>
    %379 = arith.mulf %374, %334 : vector<8x32xf32>
    %380 = arith.addf %379, %372 : vector<8x32xf32>
    %381 = arith.mulf %370, %378 : vector<8x32xf32>
    %382 = tpu.reciprocal %380 {approx = true} : vector<8x32xf32> -> vector<8x32xf32>
    %383 = arith.mulf %381, %382 : vector<8x32xf32>
    %384 = arith.index_cast %341 : i32 to index
    %c0_137 = arith.constant 0 : index
    %385 = vector.load %arg15[%384, %c0_137] : memref<64x32xf32, #tpu.memory_space<vmem>>, vector<8x32xf32>
    tpu.vector_store %arg15[%384, %c0_137], %383 {strides = array<i32>} : memref<64x32xf32, #tpu.memory_space<vmem>>, vector<8x32xf32>,
    %c7_i32 = arith.constant 7 : i32
    %c8_i32_138 = arith.constant 8 : i32
    %386 = arith.muli %c7_i32, %c8_i32_138 : i32
    %387 = tpu.assume_multiple %386, 8 : i32
    %388 = arith.index_cast %387 : i32 to index
    %c0_139 = arith.constant 0 : index
    %389 = vector.load %arg14[%388, %c0_139] : memref<64x128xf32, #tpu.memory_space<vmem>>, vector<8x128xf32>
    %390 = arith.truncf %383 : vector<8x32xf32> to vector<8x32xbf16>
    %c0_140 = arith.constant 0 : index
    %c0_141 = arith.constant 0 : index
    %391 = vector.load %arg7[%c0_140, %c0_141] : memref<32x128xbf16, #tpu.memory_space<vmem>>, vector<32x128xbf16>
    %cst_142 = arith.constant dense<0.000000e+00> : vector<8x128xf32>
    %392 = tpu.matmul %390, %391, %cst_142 {dimension_numbers = #tpu.dot_dimension_numbers<[1], [0], [0], [1], [0, 0, 1, 1], [], []>} : vector<8x32xbf16>, vector<32x128xbf16>, vector<8x128xf32> -> vector<8x128xf32>
    %393 = arith.addf %389, %392 : vector<8x128xf32>
    %394 = vector.extract_strided_slice %393 {offsets = [0, 0], sizes = [8, 32], strides = [1, 1]} : vector<8x128xf32> to vector<8x32xf32>
    %395 = vector.extract_strided_slice %393 {offsets = [0, 32], sizes = [8, 32], strides = [1, 1]} : vector<8x128xf32> to vector<8x32xf32>
    %396 = vector.extract_strided_slice %393 {offsets = [0, 64], sizes = [8, 32], strides = [1, 1]} : vector<8x128xf32> to vector<8x32xf32>
    %397 = vector.extract_strided_slice %393 {offsets = [0, 96], sizes = [8, 32], strides = [1, 1]} : vector<8x128xf32> to vector<8x32xf32>
    %cst_143 = arith.constant 0.000000e+00 : f32
    %398 = vector.broadcast %cst_143 : f32 to vector<8x32xf32>
    %399 = arith.minimumf %395, %398 : vector<8x32xf32>
    %400 = math.absf %395 : vector<8x32xf32>
    %cst_144 = arith.constant 0.000000e+00 : f32
    %401 = vector.broadcast %cst_144 : f32 to vector<8x32xf32>
    %402 = arith.subf %401, %400 : vector<8x32xf32>
    %403 = math.exp %402 : vector<8x32xf32>
    %cst_145 = arith.constant 1.000000e+00 : f32
    %404 = vector.broadcast %cst_145 : f32 to vector<8x32xf32>
    %405 = arith.addf %404, %403 : vector<8x32xf32>
    %406 = math.log %405 : vector<8x32xf32>
    %407 = arith.subf %399, %406 : vector<8x32xf32>
    %408 = arith.addf %363, %407 : vector<8x32xf32>
    %409 = arith.maximumf %394, %408 : vector<8x32xf32>
    %cst_146 = arith.constant 0.000000e+00 : f32
    %410 = vector.broadcast %cst_146 : f32 to vector<8x32xf32>
    %411 = arith.subf %410, %397 : vector<8x32xf32>
    %412 = math.exp %411 : vector<8x32xf32>
    %cst_147 = arith.constant 1.000000e+00 : f32
    %413 = vector.broadcast %cst_147 : f32 to vector<8x32xf32>
    %414 = arith.addf %413, %412 : vector<8x32xf32>
    %cst_148 = arith.constant 1.000000e+00 : f32
    %415 = vector.broadcast %cst_148 : f32 to vector<8x32xf32>
    %416 = arith.divf %415, %414 : vector<8x32xf32>
    %417 = arith.subf %394, %409 : vector<8x32xf32>
    %418 = math.exp %417 : vector<8x32xf32>
    %419 = arith.subf %408, %409 : vector<8x32xf32>
    %420 = math.exp %419 : vector<8x32xf32>
    %421 = arith.mulf %420, %378 : vector<8x32xf32>
    %422 = math.tanh %396 : vector<8x32xf32>
    %423 = arith.mulf %418, %422 : vector<8x32xf32>
    %424 = arith.addf %421, %423 : vector<8x32xf32>
    %425 = arith.mulf %420, %380 : vector<8x32xf32>
    %426 = arith.addf %425, %418 : vector<8x32xf32>
    %427 = arith.mulf %416, %424 : vector<8x32xf32>
    %428 = tpu.reciprocal %426 {approx = true} : vector<8x32xf32> -> vector<8x32xf32>
    %429 = arith.mulf %427, %428 : vector<8x32xf32>
    %430 = arith.index_cast %387 : i32 to index
    %c0_149 = arith.constant 0 : index
    %431 = vector.load %arg15[%430, %c0_149] : memref<64x32xf32, #tpu.memory_space<vmem>>, vector<8x32xf32>
    tpu.vector_store %arg15[%430, %c0_149], %429 {strides = array<i32>} : memref<64x32xf32, #tpu.memory_space<vmem>>, vector<8x32xf32>,
    %c8_i32_150 = arith.constant 8 : i32
    %c0_151 = arith.constant 0 : index
    %c0_152 = arith.constant 0 : index
    %432 = vector.load %arg16[%c0_151, %c0_152] : memref<8x32xf32, #tpu.memory_space<vmem>>, vector<8x32xf32>
    tpu.vector_store %arg16[%c0_151, %c0_152], %429 {strides = array<i32>} : memref<8x32xf32, #tpu.memory_space<vmem>>, vector<8x32xf32>,
    %c0_153 = arith.constant 0 : index
    %c0_154 = arith.constant 0 : index
    %433 = vector.load %arg17[%c0_153, %c0_154] : memref<8x32xf32, #tpu.memory_space<vmem>>, vector<8x32xf32>
    tpu.vector_store %arg17[%c0_153, %c0_154], %424 {strides = array<i32>} : memref<8x32xf32, #tpu.memory_space<vmem>>, vector<8x32xf32>,
    %c0_155 = arith.constant 0 : index
    %c0_156 = arith.constant 0 : index
    %434 = vector.load %arg18[%c0_155, %c0_156] : memref<8x32xf32, #tpu.memory_space<vmem>>, vector<8x32xf32>
    tpu.vector_store %arg18[%c0_155, %c0_156], %426 {strides = array<i32>} : memref<8x32xf32, #tpu.memory_space<vmem>>, vector<8x32xf32>,
    %c0_157 = arith.constant 0 : index
    %c0_158 = arith.constant 0 : index
    %435 = vector.load %arg19[%c0_157, %c0_158] : memref<8x32xf32, #tpu.memory_space<vmem>>, vector<8x32xf32>
    tpu.vector_store %arg19[%c0_157, %c0_158], %409 {strides = array<i32>} : memref<8x32xf32, #tpu.memory_space<vmem>>, vector<8x32xf32>,
    %c0_159 = arith.constant 0 : index
    %c0_160 = arith.constant 0 : index
    %436 = vector.load %arg15[%c0_159, %c0_160] : memref<64x32xf32, #tpu.memory_space<vmem>>, vector<64x32xf32>
    %c0_161 = arith.constant 0 : index
    %c0_162 = arith.constant 0 : index
    %437 = vector.load %arg10[%c0_161, %c0_162] : memref<32x4xf32, #tpu.memory_space<vmem>>, vector<32x4xf32>
    %cst_163 = arith.constant dense<0.000000e+00> : vector<64x4xf32>
    %438 = tpu.matmul %436, %437, %cst_163 {dimension_numbers = #tpu.dot_dimension_numbers<[1], [0], [0], [1], [0, 0, 1, 1], [], []>} : vector<64x32xf32>, vector<32x4xf32>, vector<64x4xf32> -> vector<64x4xf32>
    %c0_164 = arith.constant 0 : index
    %c0_165 = arith.constant 0 : index
    %439 = vector.load %arg11[%c0_164, %c0_165] : memref<4x32xf32, #tpu.memory_space<vmem>>, vector<4x32xf32>
    %cst_166 = arith.constant dense<0.000000e+00> : vector<64x32xf32>
    %440 = tpu.matmul %438, %439, %cst_166 {dimension_numbers = #tpu.dot_dimension_numbers<[1], [0], [0], [1], [0, 0, 1, 1], [], []>} : vector<64x4xf32>, vector<4x32xf32>, vector<64x32xf32> -> vector<64x32xf32>
    %441 = arith.subf %436, %440 : vector<64x32xf32>
    %c0_167 = arith.constant 0 : index
    %c0_168 = arith.constant 0 : index
    %442 = vector.load %arg10[%c0_167, %c0_168] : memref<32x4xf32, #tpu.memory_space<vmem>>, vector<32x4xf32>
    %cst_169 = arith.constant dense<0.000000e+00> : vector<64x4xf32>
    %443 = tpu.matmul %441, %442, %cst_169 {dimension_numbers = #tpu.dot_dimension_numbers<[1], [0], [0], [1], [0, 0, 1, 1], [], []>} : vector<64x32xf32>, vector<32x4xf32>, vector<64x4xf32> -> vector<64x4xf32>
    %c0_170 = arith.constant 0 : index
    %c0_171 = arith.constant 0 : index
    %444 = vector.load %arg11[%c0_170, %c0_171] : memref<4x32xf32, #tpu.memory_space<vmem>>, vector<4x32xf32>
    %cst_172 = arith.constant dense<0.000000e+00> : vector<64x32xf32>
    %445 = tpu.matmul %443, %444, %cst_172 {dimension_numbers = #tpu.dot_dimension_numbers<[1], [0], [0], [1], [0, 0, 1, 1], [], []>} : vector<64x4xf32>, vector<4x32xf32>, vector<64x32xf32> -> vector<64x32xf32>
    %446 = arith.subf %441, %445 : vector<64x32xf32>
    %447 = arith.mulf %446, %446 : vector<64x32xf32>
    %c0_173 = arith.constant 0 : index
    %c0_174 = arith.constant 0 : index
    %448 = vector.load %arg10[%c0_173, %c0_174] : memref<32x4xf32, #tpu.memory_space<vmem>>, vector<32x4xf32>
    %cst_175 = arith.constant dense<0.000000e+00> : vector<64x4xf32>
    %449 = tpu.matmul %447, %448, %cst_175 {dimension_numbers = #tpu.dot_dimension_numbers<[1], [0], [0], [1], [0, 0, 1, 1], [], []>} : vector<64x32xf32>, vector<32x4xf32>, vector<64x4xf32> -> vector<64x4xf32>
    %c0_176 = arith.constant 0 : index
    %c0_177 = arith.constant 0 : index
    %450 = vector.load %arg11[%c0_176, %c0_177] : memref<4x32xf32, #tpu.memory_space<vmem>>, vector<4x32xf32>
    %cst_178 = arith.constant dense<0.000000e+00> : vector<64x32xf32>
    %451 = tpu.matmul %449, %450, %cst_178 {dimension_numbers = #tpu.dot_dimension_numbers<[1], [0], [0], [1], [0, 0, 1, 1], [], []>} : vector<64x4xf32>, vector<4x32xf32>, vector<64x32xf32> -> vector<64x32xf32>
    %c0_179 = arith.constant 0 : index
    %c0_180 = arith.constant 0 : index
    %452 = vector.load %arg9[%c0_179, %c0_180] : memref<1x32xf32, #tpu.memory_space<vmem>>, vector<1x32xf32>
    %453 = vector.broadcast %452 : vector<1x32xf32> to vector<64x32xf32>
    %454 = arith.mulf %453, %446 : vector<64x32xf32>
    %cst_181 = arith.constant 9.99999974E-6 : f32
    %455 = vector.broadcast %cst_181 : f32 to vector<64x32xf32>
    %456 = arith.addf %451, %455 : vector<64x32xf32>
    %457 = math.rsqrt %456 : vector<64x32xf32>
    %458 = arith.mulf %454, %457 : vector<64x32xf32>
    %459 = vector.shape_cast %458 : vector<64x32xf32> to vector<8x8x32xf32>
    %c0_182 = arith.constant 0 : index
    %c0_183 = arith.constant 0 : index
    %c0_184 = arith.constant 0 : index
    %460 = vector.load %arg12[%c0_182, %c0_183, %c0_184] : memref<8x8x32xf32, #tpu.memory_space<vmem>>, vector<8x8x32xf32>
    tpu.vector_store %arg12[%c0_182, %c0_183, %c0_184], %459 {strides = array<i32>} : memref<8x8x32xf32, #tpu.memory_space<vmem>>, vector<8x8x32xf32>,
    return
  }
  func.func @transform_0(%arg0: i32, %arg1: i32) -> (i32, i32, i32) {
    %c0_i32 = arith.constant 0 : i32
    %c0_i32_0 = arith.constant 0 : i32
    return %arg1, %arg0, %c0_i32 : i32, i32, i32
  }
  func.func @transform_1(%arg0: i32, %arg1: i32) -> (i32, i32) {
    %c0_i32 = arith.constant 0 : i32
    %c0_i32_0 = arith.constant 0 : i32
    %c0_i32_1 = arith.constant 0 : i32
    return %c0_i32, %c0_i32_0 : i32, i32
  }
  func.func @transform_2(%arg0: i32, %arg1: i32) -> (i32, i32) {
    %c0_i32 = arith.constant 0 : i32
    %c0_i32_0 = arith.constant 0 : i32
    %c0_i32_1 = arith.constant 0 : i32
    return %c0_i32, %c0_i32_0 : i32, i32
  }
  func.func @transform_3(%arg0: i32, %arg1: i32) -> (i32, i32) {
    %c0_i32 = arith.constant 0 : i32
    %c0_i32_0 = arith.constant 0 : i32
    %c0_i32_1 = arith.constant 0 : i32
    return %c0_i32, %c0_i32_0 : i32, i32
  }
  func.func @transform_4(%arg0: i32, %arg1: i32) -> (i32, i32) {
    %c0_i32 = arith.constant 0 : i32
    %c0_i32_0 = arith.constant 0 : i32
    %c0_i32_1 = arith.constant 0 : i32
    return %c0_i32, %c0_i32_0 : i32, i32
  }
  func.func @transform_5(%arg0: i32, %arg1: i32) -> (i32, i32) {
    %c0_i32 = arith.constant 0 : i32
    %c0_i32_0 = arith.constant 0 : i32
    %c0_i32_1 = arith.constant 0 : i32
    return %c0_i32, %c0_i32_0 : i32, i32
  }
  func.func @transform_6(%arg0: i32, %arg1: i32) -> (i32, i32) {
    %c0_i32 = arith.constant 0 : i32
    %c0_i32_0 = arith.constant 0 : i32
    %c0_i32_1 = arith.constant 0 : i32
    return %c0_i32, %c0_i32_0 : i32, i32
  }
  func.func @transform_7(%arg0: i32, %arg1: i32) -> (i32, i32) {
    %c0_i32 = arith.constant 0 : i32
    %c0_i32_0 = arith.constant 0 : i32
    %c0_i32_1 = arith.constant 0 : i32
    return %c0_i32, %c0_i32_0 : i32, i32
  }
  func.func @transform_8(%arg0: i32, %arg1: i32) -> (i32, i32) {
    %c0_i32 = arith.constant 0 : i32
    %c0_i32_0 = arith.constant 0 : i32
    %c0_i32_1 = arith.constant 0 : i32
    return %c0_i32, %c0_i32_0 : i32, i32
  }
  func.func @transform_9(%arg0: i32, %arg1: i32) -> (i32, i32) {
    %c0_i32 = arith.constant 0 : i32
    %c0_i32_0 = arith.constant 0 : i32
    %c0_i32_1 = arith.constant 0 : i32
    return %c0_i32, %c0_i32_0 : i32, i32
  }
  func.func @transform_10(%arg0: i32, %arg1: i32) -> (i32, i32, i32) {
    %c0_i32 = arith.constant 0 : i32
    %c0_i32_0 = arith.constant 0 : i32
    return %arg1, %arg0, %c0_i32 : i32, i32, i32
  }
}

module attributes {stable_mosaic.version = 11 : i64} {
  func.func @slstm_layer_kernel(%arg0: i32, %arg1: i32, %arg2: memref<8x8x32xf32, #tpu.memory_space<vmem>>, %arg3: memref<4x32xf32, #tpu.memory_space<vmem>>, %arg4: memref<1x32xf32, #tpu.memory_space<vmem>>, %arg5: memref<32x64xbf16, #tpu.memory_space<vmem>>, %arg6: memref<32x64xbf16, #tpu.memory_space<vmem>>, %arg7: memref<32x128xbf16, #tpu.memory_space<vmem>>, %arg8: memref<1x128xf32, #tpu.memory_space<vmem>>, %arg9: memref<1x32xf32, #tpu.memory_space<vmem>>, %arg10: memref<32x4xf32, #tpu.memory_space<vmem>>, %arg11: memref<4x32xf32, #tpu.memory_space<vmem>>, %arg12: memref<8x8x32xf32, #tpu.memory_space<vmem>>, %arg13: memref<11x8x32xf32, #tpu.memory_space<vmem>>, %arg14: memref<64x128xf32, #tpu.memory_space<vmem>>, %arg15: memref<64x32xf32, #tpu.memory_space<vmem>>, %arg16: memref<8x32xf32, #tpu.memory_space<vmem>>, %arg17: memref<8x32xf32, #tpu.memory_space<vmem>>, %arg18: memref<8x32xf32, #tpu.memory_space<vmem>>, %arg19: memref<8x32xf32, #tpu.memory_space<vmem>>) attributes {dimension_semantics = [#tpu.dimension_semantics<parallel>, #tpu.dimension_semantics<arbitrary>], iteration_bounds = array<i64: 1, 1>, scalar_prefetch = 0 : i64, scratch_operands = 7 : i64, tpu.core_type = #tpu.core_type<tc>, window_params = [{transform_indices = @transform_0, window_bounds = array<i64: 8, 8, 32>}, {pipeline_mode = #tpu.pipeline_mode<synchronous>, transform_indices = @transform_1, window_bounds = array<i64: 4, 32>}, {pipeline_mode = #tpu.pipeline_mode<synchronous>, transform_indices = @transform_2, window_bounds = array<i64: 1, 32>}, {pipeline_mode = #tpu.pipeline_mode<synchronous>, transform_indices = @transform_3, window_bounds = array<i64: 32, 64>}, {pipeline_mode = #tpu.pipeline_mode<synchronous>, transform_indices = @transform_4, window_bounds = array<i64: 32, 64>}, {pipeline_mode = #tpu.pipeline_mode<synchronous>, transform_indices = @transform_5, window_bounds = array<i64: 32, 128>}, {pipeline_mode = #tpu.pipeline_mode<synchronous>, transform_indices = @transform_6, window_bounds = array<i64: 1, 128>}, {pipeline_mode = #tpu.pipeline_mode<synchronous>, transform_indices = @transform_7, window_bounds = array<i64: 1, 32>}, {pipeline_mode = #tpu.pipeline_mode<synchronous>, transform_indices = @transform_8, window_bounds = array<i64: 32, 4>}, {pipeline_mode = #tpu.pipeline_mode<synchronous>, transform_indices = @transform_9, window_bounds = array<i64: 4, 32>}, {transform_indices = @transform_10, window_bounds = array<i64: 8, 8, 32>}]} {
    %c0_i32 = arith.constant 0 : i32
    %0 = arith.cmpi eq, %arg1, %c0_i32 : i32
    %1 = arith.extui %0 : i1 to i32
    %c0_i32_0 = arith.constant 0 : i32
    %2 = arith.cmpi ne, %1, %c0_i32_0 : i32
    scf.if %2 {
      %cst_185 = arith.constant 0.000000e+00 : f32
      %461 = vector.broadcast %cst_185 : f32 to vector<3x8x32xf32>
      %c0_186 = arith.constant 0 : index
      %c0_187 = arith.constant 0 : index
      %c0_188 = arith.constant 0 : index
      %462 = vector.load %arg13[%c0_186, %c0_187, %c0_188] : memref<11x8x32xf32, #tpu.memory_space<vmem>>, vector<3x8x32xf32>
      tpu.vector_store %arg13[%c0_186, %c0_187, %c0_188], %461 {strides = array<i32>} : memref<11x8x32xf32, #tpu.memory_space<vmem>>, vector<3x8x32xf32>,
      %cst_189 = arith.constant 0.000000e+00 : f32
      %463 = vector.broadcast %cst_189 : f32 to vector<8x32xf32>
      %c0_190 = arith.constant 0 : index
      %c0_191 = arith.constant 0 : index
      %464 = vector.load %arg16[%c0_190, %c0_191] : memref<8x32xf32, #tpu.memory_space<vmem>>, vector<8x32xf32>
      tpu.vector_store %arg16[%c0_190, %c0_191], %463 {strides = array<i32>} : memref<8x32xf32, #tpu.memory_space<vmem>>, vector<8x32xf32>,
      %cst_192 = arith.constant 0.000000e+00 : f32
      %465 = vector.broadcast %cst_192 : f32 to vector<8x32xf32>
      %c0_193 = arith.constant 0 : index
      %c0_194 = arith.constant 0 : index
      %466 = vector.load %arg17[%c0_193, %c0_194] : memref<8x32xf32, #tpu.memory_space<vmem>>, vector<8x32xf32>
      tpu.vector_store %arg17[%c0_193, %c0_194], %465 {strides = array<i32>} : memref<8x32xf32, #tpu.memory_space<vmem>>, vector<8x32xf32>,
      %cst_195 = arith.constant 0.000000e+00 : f32
      %467 = vector.broadcast %cst_195 : f32 to vector<8x32xf32>
      %c0_196 = arith.constant 0 : index
      %c0_197 = arith.constant 0 : index
      %468 = vector.load %arg18[%c0_196, %c0_197] : memref<8x32xf32, #tpu.memory_space<vmem>>, vector<8x32xf32>
      tpu.vector_store %arg18[%c0_196, %c0_197], %467 {strides = array<i32>} : memref<8x32xf32, #tpu.memory_space<vmem>>, vector<8x32xf32>,
      %cst_198 = arith.constant -1.000000e+30 : f32
      %469 = vector.broadcast %cst_198 : f32 to vector<8x32xf32>
      %c0_199 = arith.constant 0 : index
      %c0_200 = arith.constant 0 : index
      %470 = vector.load %arg19[%c0_199, %c0_200] : memref<8x32xf32, #tpu.memory_space<vmem>>, vector<8x32xf32>
      tpu.vector_store %arg19[%c0_199, %c0_200], %469 {strides = array<i32>} : memref<8x32xf32, #tpu.memory_space<vmem>>, vector<8x32xf32>,
    } else {
    }
    %c0 = arith.constant 0 : index
    %c0_1 = arith.constant 0 : index
    %c0_2 = arith.constant 0 : index
    %3 = vector.load %arg2[%c0, %c0_1, %c0_2] : memref<8x8x32xf32, #tpu.memory_space<vmem>>, vector<8x8x32xf32>
    %c3 = arith.constant 3 : index
    %c0_3 = arith.constant 0 : index
    %c0_4 = arith.constant 0 : index
    %4 = vector.load %arg13[%c3, %c0_3, %c0_4] : memref<11x8x32xf32, #tpu.memory_space<vmem>>, vector<8x8x32xf32>
    tpu.vector_store %arg13[%c3, %c0_3, %c0_4], %3 {strides = array<i32>} : memref<11x8x32xf32, #tpu.memory_space<vmem>>, vector<8x8x32xf32>,
    %c0_5 = arith.constant 0 : index
    %c0_6 = arith.constant 0 : index
    %5 = vector.load %arg4[%c0_5, %c0_6] : memref<1x32xf32, #tpu.memory_space<vmem>>, vector<1x32xf32>
    %c0_7 = arith.constant 0 : index
    %c0_8 = arith.constant 0 : index
    %c0_9 = arith.constant 0 : index
    %6 = vector.load %arg13[%c0_7, %c0_8, %c0_9] : memref<11x8x32xf32, #tpu.memory_space<vmem>>, vector<8x8x32xf32>
    %c0_10 = arith.constant 0 : index
    %c0_11 = arith.constant 0 : index
    %7 = vector.load %arg3[%c0_10, %c0_11] : memref<4x32xf32, #tpu.memory_space<vmem>>, vector<1x32xf32>
    %8 = vector.shape_cast %7 : vector<1x32xf32> to vector<1x1x32xf32>
    %9 = vector.broadcast %8 : vector<1x1x32xf32> to vector<8x8x32xf32>
    %10 = arith.mulf %6, %9 : vector<8x8x32xf32>
    %11 = vector.shape_cast %5 : vector<1x32xf32> to vector<1x1x32xf32>
    %12 = vector.broadcast %11 : vector<1x1x32xf32> to vector<8x8x32xf32>
    %13 = arith.addf %12, %10 : vector<8x8x32xf32>
    %c1 = arith.constant 1 : index
    %c0_12 = arith.constant 0 : index
    %c0_13 = arith.constant 0 : index
    %14 = vector.load %arg13[%c1, %c0_12, %c0_13] : memref<11x8x32xf32, #tpu.memory_space<vmem>>, vector<8x8x32xf32>
    %c1_14 = arith.constant 1 : index
    %c0_15 = arith.constant 0 : index
    %15 = vector.load %arg3[%c1_14, %c0_15] : memref<4x32xf32, #tpu.memory_space<vmem>>, vector<1x32xf32>
    %16 = vector.shape_cast %15 : vector<1x32xf32> to vector<1x1x32xf32>
    %17 = vector.broadcast %16 : vector<1x1x32xf32> to vector<8x8x32xf32>
    %18 = arith.mulf %14, %17 : vector<8x8x32xf32>
    %19 = arith.addf %13, %18 : vector<8x8x32xf32>
    %c2 = arith.constant 2 : index
    %c0_16 = arith.constant 0 : index
    %c0_17 = arith.constant 0 : index
    %20 = vector.load %arg13[%c2, %c0_16, %c0_17] : memref<11x8x32xf32, #tpu.memory_space<vmem>>, vector<8x8x32xf32>
    %c2_18 = arith.constant 2 : index
    %c0_19 = arith.constant 0 : index
    %21 = vector.load %arg3[%c2_18, %c0_19] : memref<4x32xf32, #tpu.memory_space<vmem>>, vector<1x32xf32>
    %22 = vector.shape_cast %21 : vector<1x32xf32> to vector<1x1x32xf32>
    %23 = vector.broadcast %22 : vector<1x1x32xf32> to vector<8x8x32xf32>
    %24 = arith.mulf %20, %23 : vector<8x8x32xf32>
    %25 = arith.addf %19, %24 : vector<8x8x32xf32>
    %c3_20 = arith.constant 3 : index
    %c0_21 = arith.constant 0 : index
    %c0_22 = arith.constant 0 : index
    %26 = vector.load %arg13[%c3_20, %c0_21, %c0_22] : memref<11x8x32xf32, #tpu.memory_space<vmem>>, vector<8x8x32xf32>
    %c3_23 = arith.constant 3 : index
    %c0_24 = arith.constant 0 : index
    %27 = vector.load %arg3[%c3_23, %c0_24] : memref<4x32xf32, #tpu.memory_space<vmem>>, vector<1x32xf32>
    %28 = vector.shape_cast %27 : vector<1x32xf32> to vector<1x1x32xf32>
    %29 = vector.broadcast %28 : vector<1x1x32xf32> to vector<8x8x32xf32>
    %30 = arith.mulf %26, %29 : vector<8x8x32xf32>
    %31 = arith.addf %25, %30 : vector<8x8x32xf32>
    %cst = arith.constant 0.000000e+00 : f32
    %32 = vector.broadcast %cst : f32 to vector<8x8x32xf32>
    %33 = arith.subf %32, %31 : vector<8x8x32xf32>
    %34 = math.exp %33 : vector<8x8x32xf32>
    %cst_25 = arith.constant 1.000000e+00 : f32
    %35 = vector.broadcast %cst_25 : f32 to vector<8x8x32xf32>
    %36 = arith.addf %35, %34 : vector<8x8x32xf32>
    %cst_26 = arith.constant 1.000000e+00 : f32
    %37 = vector.broadcast %cst_26 : f32 to vector<8x8x32xf32>
    %38 = arith.divf %37, %36 : vector<8x8x32xf32>
    %39 = arith.mulf %31, %38 : vector<8x8x32xf32>
    %c0_27 = arith.constant 0 : index
    %c0_28 = arith.constant 0 : index
    %c0_29 = arith.constant 0 : index
    %40 = vector.load %arg2[%c0_27, %c0_28, %c0_29] : memref<8x8x32xf32, #tpu.memory_space<vmem>>, vector<8x8x32xf32>
    %c8 = arith.constant 8 : index
    %c0_30 = arith.constant 0 : index
    %c0_31 = arith.constant 0 : index
    %41 = vector.load %arg13[%c8, %c0_30, %c0_31] : memref<11x8x32xf32, #tpu.memory_space<vmem>>, vector<3x8x32xf32>
    %c0_32 = arith.constant 0 : index
    %c0_33 = arith.constant 0 : index
    %c0_34 = arith.constant 0 : index
    %42 = vector.load %arg13[%c0_32, %c0_33, %c0_34] : memref<11x8x32xf32, #tpu.memory_space<vmem>>, vector<3x8x32xf32>
    tpu.vector_store %arg13[%c0_32, %c0_33, %c0_34], %41 {strides = array<i32>} : memref<11x8x32xf32, #tpu.memory_space<vmem>>, vector<3x8x32xf32>,
    %c0_35 = arith.constant 0 : index
    %c0_36 = arith.constant 0 : index
    %43 = vector.load %arg8[%c0_35, %c0_36] : memref<1x128xf32, #tpu.memory_space<vmem>>, vector<1x128xf32>
    %44 = vector.shape_cast %39 : vector<8x8x32xf32> to vector<64x32xf32>
    %45 = arith.truncf %44 : vector<64x32xf32> to vector<64x32xbf16>
    %46 = vector.shape_cast %40 : vector<8x8x32xf32> to vector<64x32xf32>
    %47 = arith.truncf %46 : vector<64x32xf32> to vector<64x32xbf16>
    %c0_37 = arith.constant 0 : index
    %c0_38 = arith.constant 0 : index
    %48 = vector.load %arg5[%c0_37, %c0_38] : memref<32x64xbf16, #tpu.memory_space<vmem>>, vector<32x64xbf16>
    %cst_39 = arith.constant dense<0.000000e+00> : vector<64x64xf32>
    %49 = tpu.matmul %45, %48, %cst_39 {dimension_numbers = #tpu.dot_dimension_numbers<[1], [0], [0], [1], [0, 0, 1, 1], [], []>} : vector<64x32xbf16>, vector<32x64xbf16>, vector<64x64xf32> -> vector<64x64xf32>
    %50 = vector.extract_strided_slice %43 {offsets = [0, 0], sizes = [1, 64], strides = [1, 1]} : vector<1x128xf32> to vector<1x64xf32>
    %51 = vector.broadcast %50 : vector<1x64xf32> to vector<64x64xf32>
    %52 = arith.addf %49, %51 : vector<64x64xf32>
    %c0_40 = arith.constant 0 : index
    %c0_41 = arith.constant 0 : index
    %53 = vector.load %arg14[%c0_40, %c0_41] : memref<64x128xf32, #tpu.memory_space<vmem>>, vector<64x64xf32>
    tpu.vector_store %arg14[%c0_40, %c0_41], %52 {strides = array<i32>} : memref<64x128xf32, #tpu.memory_space<vmem>>, vector<64x64xf32>,
    %c0_42 = arith.constant 0 : index
    %c0_43 = arith.constant 0 : index
    %54 = vector.load %arg6[%c0_42, %c0_43] : memref<32x64xbf16, #tpu.memory_space<vmem>>, vector<32x64xbf16>
    %cst_44 = arith.constant dense<0.000000e+00> : vector<64x64xf32>
    %55 = tpu.matmul %47, %54, %cst_44 {dimension_numbers = #tpu.dot_dimension_numbers<[1], [0], [0], [1], [0, 0, 1, 1], [], []>} : vector<64x32xbf16>, vector<32x64xbf16>, vector<64x64xf32> -> vector<64x64xf32>
    %56 = vector.extract_strided_slice %43 {offsets = [0, 64], sizes = [1, 64], strides = [1, 1]} : vector<1x128xf32> to vector<1x64xf32>
    %57 = vector.broadcast %56 : vector<1x64xf32> to vector<64x64xf32>
    %58 = arith.addf %55, %57 : vector<64x64xf32>
    %c0_45 = arith.constant 0 : index
    %c64 = arith.constant 64 : index
    %59 = vector.load %arg14[%c0_45, %c64] : memref<64x128xf32, #tpu.memory_space<vmem>>, vector<64x64xf32>
    tpu.vector_store %arg14[%c0_45, %c64], %58 {strides = array<i32>} : memref<64x128xf32, #tpu.memory_space<vmem>>, vector<64x64xf32>,
    %c0_46 = arith.constant 0 : index
    %c0_47 = arith.constant 0 : index
    %60 = vector.load %arg16[%c0_46, %c0_47] : memref<8x32xf32, #tpu.memory_space<vmem>>, vector<8x32xf32>
    %c0_48 = arith.constant 0 : index
    %c0_49 = arith.constant 0 : index
    %61 = vector.load %arg17[%c0_48, %c0_49] : memref<8x32xf32, #tpu.memory_space<vmem>>, vector<8x32xf32>
    %c0_50 = arith.constant 0 : index
    %c0_51 = arith.constant 0 : index
    %62 = vector.load %arg18[%c0_50, %c0_51] : memref<8x32xf32, #tpu.memory_space<vmem>>, vector<8x32xf32>
    %c0_52 = arith.constant 0 : index
    %c0_53 = arith.constant 0 : index
    %63 = vector.load %arg19[%c0_52, %c0_53] : memref<8x32xf32, #tpu.memory_space<vmem>>, vector<8x32xf32>
    %c0_i32_54 = arith.constant 0 : i32
    %c8_i32 = arith.constant 8 : i32
    %64 = arith.muli %c0_i32_54, %c8_i32 : i32
    %65 = tpu.assume_multiple %64, 8 : i32
    %66 = arith.index_cast %65 : i32 to index
    %c0_55 = arith.constant 0 : index
    %67 = vector.load %arg14[%66, %c0_55] : memref<64x128xf32, #tpu.memory_space<vmem>>, vector<8x128xf32>
    %68 = arith.truncf %60 : vector<8x32xf32> to vector<8x32xbf16>
    %c0_56 = arith.constant 0 : index
    %c0_57 = arith.constant 0 : index
    %69 = vector.load %arg7[%c0_56, %c0_57] : memref<32x128xbf16, #tpu.memory_space<vmem>>, vector<32x128xbf16>
    %cst_58 = arith.constant dense<0.000000e+00> : vector<8x128xf32>
    %70 = tpu.matmul %68, %69, %cst_58 {dimension_numbers = #tpu.dot_dimension_numbers<[1], [0], [0], [1], [0, 0, 1, 1], [], []>} : vector<8x32xbf16>, vector<32x128xbf16>, vector<8x128xf32> -> vector<8x128xf32>
    %71 = arith.addf %67, %70 : vector<8x128xf32>
    %72 = vector.extract_strided_slice %71 {offsets = [0, 0], sizes = [8, 32], strides = [1, 1]} : vector<8x128xf32> to vector<8x32xf32>
    %73 = vector.extract_strided_slice %71 {offsets = [0, 32], sizes = [8, 32], strides = [1, 1]} : vector<8x128xf32> to vector<8x32xf32>
    %74 = vector.extract_strided_slice %71 {offsets = [0, 64], sizes = [8, 32], strides = [1, 1]} : vector<8x128xf32> to vector<8x32xf32>
    %75 = vector.extract_strided_slice %71 {offsets = [0, 96], sizes = [8, 32], strides = [1, 1]} : vector<8x128xf32> to vector<8x32xf32>
    %cst_59 = arith.constant 0.000000e+00 : f32
    %76 = vector.broadcast %cst_59 : f32 to vector<8x32xf32>
    %77 = arith.minimumf %73, %76 : vector<8x32xf32>
    %78 = math.absf %73 : vector<8x32xf32>
    %cst_60 = arith.constant 0.000000e+00 : f32
    %79 = vector.broadcast %cst_60 : f32 to vector<8x32xf32>
    %80 = arith.subf %79, %78 : vector<8x32xf32>
    %81 = math.exp %80 : vector<8x32xf32>
    %cst_61 = arith.constant 1.000000e+00 : f32
    %82 = vector.broadcast %cst_61 : f32 to vector<8x32xf32>
    %83 = arith.addf %82, %81 : vector<8x32xf32>
    %84 = math.log %83 : vector<8x32xf32>
    %85 = arith.subf %77, %84 : vector<8x32xf32>
    %86 = arith.addf %63, %85 : vector<8x32xf32>
    %87 = arith.maximumf %72, %86 : vector<8x32xf32>
    %cst_62 = arith.constant 0.000000e+00 : f32
    %88 = vector.broadcast %cst_62 : f32 to vector<8x32xf32>
    %89 = arith.subf %88, %75 : vector<8x32xf32>
    %90 = math.exp %89 : vector<8x32xf32>
    %cst_63 = arith.constant 1.000000e+00 : f32
    %91 = vector.broadcast %cst_63 : f32 to vector<8x32xf32>
    %92 = arith.addf %91, %90 : vector<8x32xf32>
    %cst_64 = arith.constant 1.000000e+00 : f32
    %93 = vector.broadcast %cst_64 : f32 to vector<8x32xf32>
    %94 = arith.divf %93, %92 : vector<8x32xf32>
    %95 = arith.subf %72, %87 : vector<8x32xf32>
    %96 = math.exp %95 : vector<8x32xf32>
    %97 = arith.subf %86, %87 : vector<8x32xf32>
    %98 = math.exp %97 : vector<8x32xf32>
    %99 = arith.mulf %98, %61 : vector<8x32xf32>
    %100 = math.tanh %74 : vector<8x32xf32>
    %101 = arith.mulf %96, %100 : vector<8x32xf32>
    %102 = arith.addf %99, %101 : vector<8x32xf32>
    %103 = arith.mulf %98, %62 : vector<8x32xf32>
    %104 = arith.addf %103, %96 : vector<8x32xf32>
    %105 = arith.mulf %94, %102 : vector<8x32xf32>
    %106 = tpu.reciprocal %104 {approx = true} : vector<8x32xf32> -> vector<8x32xf32>
    %107 = arith.mulf %105, %106 : vector<8x32xf32>
    %108 = arith.index_cast %65 : i32 to index
    %c0_65 = arith.constant 0 : index
    %109 = vector.load %arg15[%108, %c0_65] : memref<64x32xf32, #tpu.memory_space<vmem>>, vector<8x32xf32>
    tpu.vector_store %arg15[%108, %c0_65], %107 {strides = array<i32>} : memref<64x32xf32, #tpu.memory_space<vmem>>, vector<8x32xf32>,
    %c1_i32 = arith.constant 1 : i32
    %c8_i32_66 = arith.constant 8 : i32
    %110 = arith.muli %c1_i32, %c8_i32_66 : i32
    %111 = tpu.assume_multiple %110, 8 : i32
    %112 = arith.index_cast %111 : i32 to index
    %c0_67 = arith.constant 0 : index
    %113 = vector.load %arg14[%112, %c0_67] : memref<64x128xf32, #tpu.memory_space<vmem>>, vector<8x128xf32>
    %114 = arith.truncf %107 : vector<8x32xf32> to vector<8x32xbf16>
    %c0_68 = arith.constant 0 : index
    %c0_69 = arith.constant 0 : index
    %115 = vector.load %arg7[%c0_68, %c0_69] : memref<32x128xbf16, #tpu.memory_space<vmem>>, vector<32x128xbf16>
    %cst_70 = arith.constant dense<0.000000e+00> : vector<8x128xf32>
    %116 = tpu.matmul %114, %115, %cst_70 {dimension_numbers = #tpu.dot_dimension_numbers<[1], [0], [0], [1], [0, 0, 1, 1], [], []>} : vector<8x32xbf16>, vector<32x128xbf16>, vector<8x128xf32> -> vector<8x128xf32>
    %117 = arith.addf %113, %116 : vector<8x128xf32>
    %118 = vector.extract_strided_slice %117 {offsets = [0, 0], sizes = [8, 32], strides = [1, 1]} : vector<8x128xf32> to vector<8x32xf32>
    %119 = vector.extract_strided_slice %117 {offsets = [0, 32], sizes = [8, 32], strides = [1, 1]} : vector<8x128xf32> to vector<8x32xf32>
    %120 = vector.extract_strided_slice %117 {offsets = [0, 64], sizes = [8, 32], strides = [1, 1]} : vector<8x128xf32> to vector<8x32xf32>
    %121 = vector.extract_strided_slice %117 {offsets = [0, 96], sizes = [8, 32], strides = [1, 1]} : vector<8x128xf32> to vector<8x32xf32>
    %cst_71 = arith.constant 0.000000e+00 : f32
    %122 = vector.broadcast %cst_71 : f32 to vector<8x32xf32>
    %123 = arith.minimumf %119, %122 : vector<8x32xf32>
    %124 = math.absf %119 : vector<8x32xf32>
    %cst_72 = arith.constant 0.000000e+00 : f32
    %125 = vector.broadcast %cst_72 : f32 to vector<8x32xf32>
    %126 = arith.subf %125, %124 : vector<8x32xf32>
    %127 = math.exp %126 : vector<8x32xf32>
    %cst_73 = arith.constant 1.000000e+00 : f32
    %128 = vector.broadcast %cst_73 : f32 to vector<8x32xf32>
    %129 = arith.addf %128, %127 : vector<8x32xf32>
    %130 = math.log %129 : vector<8x32xf32>
    %131 = arith.subf %123, %130 : vector<8x32xf32>
    %132 = arith.addf %87, %131 : vector<8x32xf32>
    %133 = arith.maximumf %118, %132 : vector<8x32xf32>
    %cst_74 = arith.constant 0.000000e+00 : f32
    %134 = vector.broadcast %cst_74 : f32 to vector<8x32xf32>
    %135 = arith.subf %134, %121 : vector<8x32xf32>
    %136 = math.exp %135 : vector<8x32xf32>
    %cst_75 = arith.constant 1.000000e+00 : f32
    %137 = vector.broadcast %cst_75 : f32 to vector<8x32xf32>
    %138 = arith.addf %137, %136 : vector<8x32xf32>
    %cst_76 = arith.constant 1.000000e+00 : f32
    %139 = vector.broadcast %cst_76 : f32 to vector<8x32xf32>
    %140 = arith.divf %139, %138 : vector<8x32xf32>
    %141 = arith.subf %118, %133 : vector<8x32xf32>
    %142 = math.exp %141 : vector<8x32xf32>
    %143 = arith.subf %132, %133 : vector<8x32xf32>
    %144 = math.exp %143 : vector<8x32xf32>
    %145 = arith.mulf %144, %102 : vector<8x32xf32>
    %146 = math.tanh %120 : vector<8x32xf32>
    %147 = arith.mulf %142, %146 : vector<8x32xf32>
    %148 = arith.addf %145, %147 : vector<8x32xf32>
    %149 = arith.mulf %144, %104 : vector<8x32xf32>
    %150 = arith.addf %149, %142 : vector<8x32xf32>
    %151 = arith.mulf %140, %148 : vector<8x32xf32>
    %152 = tpu.reciprocal %150 {approx = true} : vector<8x32xf32> -> vector<8x32xf32>
    %153 = arith.mulf %151, %152 : vector<8x32xf32>
    %154 = arith.index_cast %111 : i32 to index
    %c0_77 = arith.constant 0 : index
    %155 = vector.load %arg15[%154, %c0_77] : memref<64x32xf32, #tpu.memory_space<vmem>>, vector<8x32xf32>
    tpu.vector_store %arg15[%154, %c0_77], %153 {strides = array<i32>} : memref<64x32xf32, #tpu.memory_space<vmem>>, vector<8x32xf32>,
    %c2_i32 = arith.constant 2 : i32
    %c8_i32_78 = arith.constant 8 : i32
    %156 = arith.muli %c2_i32, %c8_i32_78 : i32
    %157 = tpu.assume_multiple %156, 8 : i32
    %158 = arith.index_cast %157 : i32 to index
    %c0_79 = arith.constant 0 : index
    %159 = vector.load %arg14[%158, %c0_79] : memref<64x128xf32, #tpu.memory_space<vmem>>, vector<8x128xf32>
    %160 = arith.truncf %153 : vector<8x32xf32> to vector<8x32xbf16>
    %c0_80 = arith.constant 0 : index
    %c0_81 = arith.constant 0 : index
    %161 = vector.load %arg7[%c0_80, %c0_81] : memref<32x128xbf16, #tpu.memory_space<vmem>>, vector<32x128xbf16>
    %cst_82 = arith.constant dense<0.000000e+00> : vector<8x128xf32>
    %162 = tpu.matmul %160, %161, %cst_82 {dimension_numbers = #tpu.dot_dimension_numbers<[1], [0], [0], [1], [0, 0, 1, 1], [], []>} : vector<8x32xbf16>, vector<32x128xbf16>, vector<8x128xf32> -> vector<8x128xf32>
    %163 = arith.addf %159, %162 : vector<8x128xf32>
    %164 = vector.extract_strided_slice %163 {offsets = [0, 0], sizes = [8, 32], strides = [1, 1]} : vector<8x128xf32> to vector<8x32xf32>
    %165 = vector.extract_strided_slice %163 {offsets = [0, 32], sizes = [8, 32], strides = [1, 1]} : vector<8x128xf32> to vector<8x32xf32>
    %166 = vector.extract_strided_slice %163 {offsets = [0, 64], sizes = [8, 32], strides = [1, 1]} : vector<8x128xf32> to vector<8x32xf32>
    %167 = vector.extract_strided_slice %163 {offsets = [0, 96], sizes = [8, 32], strides = [1, 1]} : vector<8x128xf32> to vector<8x32xf32>
    %cst_83 = arith.constant 0.000000e+00 : f32
    %168 = vector.broadcast %cst_83 : f32 to vector<8x32xf32>
    %169 = arith.minimumf %165, %168 : vector<8x32xf32>
    %170 = math.absf %165 : vector<8x32xf32>
    %cst_84 = arith.constant 0.000000e+00 : f32
    %171 = vector.broadcast %cst_84 : f32 to vector<8x32xf32>
    %172 = arith.subf %171, %170 : vector<8x32xf32>
    %173 = math.exp %172 : vector<8x32xf32>
    %cst_85 = arith.constant 1.000000e+00 : f32
    %174 = vector.broadcast %cst_85 : f32 to vector<8x32xf32>
    %175 = arith.addf %174, %173 : vector<8x32xf32>
    %176 = math.log %175 : vector<8x32xf32>
    %177 = arith.subf %169, %176 : vector<8x32xf32>
    %178 = arith.addf %133, %177 : vector<8x32xf32>
    %179 = arith.maximumf %164, %178 : vector<8x32xf32>
    %cst_86 = arith.constant 0.000000e+00 : f32
    %180 = vector.broadcast %cst_86 : f32 to vector<8x32xf32>
    %181 = arith.subf %180, %167 : vector<8x32xf32>
    %182 = math.exp %181 : vector<8x32xf32>
    %cst_87 = arith.constant 1.000000e+00 : f32
    %183 = vector.broadcast %cst_87 : f32 to vector<8x32xf32>
    %184 = arith.addf %183, %182 : vector<8x32xf32>
    %cst_88 = arith.constant 1.000000e+00 : f32
    %185 = vector.broadcast %cst_88 : f32 to vector<8x32xf32>
    %186 = arith.divf %185, %184 : vector<8x32xf32>
    %187 = arith.subf %164, %179 : vector<8x32xf32>
    %188 = math.exp %187 : vector<8x32xf32>
    %189 = arith.subf %178, %179 : vector<8x32xf32>
    %190 = math.exp %189 : vector<8x32xf32>
    %191 = arith.mulf %190, %148 : vector<8x32xf32>
    %192 = math.tanh %166 : vector<8x32xf32>
    %193 = arith.mulf %188, %192 : vector<8x32xf32>
    %194 = arith.addf %191, %193 : vector<8x32xf32>
    %195 = arith.mulf %190, %150 : vector<8x32xf32>
    %196 = arith.addf %195, %188 : vector<8x32xf32>
    %197 = arith.mulf %186, %194 : vector<8x32xf32>
    %198 = tpu.reciprocal %196 {approx = true} : vector<8x32xf32> -> vector<8x32xf32>
    %199 = arith.mulf %197, %198 : vector<8x32xf32>
    %200 = arith.index_cast %157 : i32 to index
    %c0_89 = arith.constant 0 : index
    %201 = vector.load %arg15[%200, %c0_89] : memref<64x32xf32, #tpu.memory_space<vmem>>, vector<8x32xf32>
    tpu.vector_store %arg15[%200, %c0_89], %199 {strides = array<i32>} : memref<64x32xf32, #tpu.memory_space<vmem>>, vector<8x32xf32>,
    %c3_i32 = arith.constant 3 : i32
    %c8_i32_90 = arith.constant 8 : i32
    %202 = arith.muli %c3_i32, %c8_i32_90 : i32
    %203 = tpu.assume_multiple %202, 8 : i32
    %204 = arith.index_cast %203 : i32 to index
    %c0_91 = arith.constant 0 : index
    %205 = vector.load %arg14[%204, %c0_91] : memref<64x128xf32, #tpu.memory_space<vmem>>, vector<8x128xf32>
    %206 = arith.truncf %199 : vector<8x32xf32> to vector<8x32xbf16>
    %c0_92 = arith.constant 0 : index
    %c0_93 = arith.constant 0 : index
    %207 = vector.load %arg7[%c0_92, %c0_93] : memref<32x128xbf16, #tpu.memory_space<vmem>>, vector<32x128xbf16>
    %cst_94 = arith.constant dense<0.000000e+00> : vector<8x128xf32>
    %208 = tpu.matmul %206, %207, %cst_94 {dimension_numbers = #tpu.dot_dimension_numbers<[1], [0], [0], [1], [0, 0, 1, 1], [], []>} : vector<8x32xbf16>, vector<32x128xbf16>, vector<8x128xf32> -> vector<8x128xf32>
    %209 = arith.addf %205, %208 : vector<8x128xf32>
    %210 = vector.extract_strided_slice %209 {offsets = [0, 0], sizes = [8, 32], strides = [1, 1]} : vector<8x128xf32> to vector<8x32xf32>
    %211 = vector.extract_strided_slice %209 {offsets = [0, 32], sizes = [8, 32], strides = [1, 1]} : vector<8x128xf32> to vector<8x32xf32>
    %212 = vector.extract_strided_slice %209 {offsets = [0, 64], sizes = [8, 32], strides = [1, 1]} : vector<8x128xf32> to vector<8x32xf32>
    %213 = vector.extract_strided_slice %209 {offsets = [0, 96], sizes = [8, 32], strides = [1, 1]} : vector<8x128xf32> to vector<8x32xf32>
    %cst_95 = arith.constant 0.000000e+00 : f32
    %214 = vector.broadcast %cst_95 : f32 to vector<8x32xf32>
    %215 = arith.minimumf %211, %214 : vector<8x32xf32>
    %216 = math.absf %211 : vector<8x32xf32>
    %cst_96 = arith.constant 0.000000e+00 : f32
    %217 = vector.broadcast %cst_96 : f32 to vector<8x32xf32>
    %218 = arith.subf %217, %216 : vector<8x32xf32>
    %219 = math.exp %218 : vector<8x32xf32>
    %cst_97 = arith.constant 1.000000e+00 : f32
    %220 = vector.broadcast %cst_97 : f32 to vector<8x32xf32>
    %221 = arith.addf %220, %219 : vector<8x32xf32>
    %222 = math.log %221 : vector<8x32xf32>
    %223 = arith.subf %215, %222 : vector<8x32xf32>
    %224 = arith.addf %179, %223 : vector<8x32xf32>
    %225 = arith.maximumf %210, %224 : vector<8x32xf32>
    %cst_98 = arith.constant 0.000000e+00 : f32
    %226 = vector.broadcast %cst_98 : f32 to vector<8x32xf32>
    %227 = arith.subf %226, %213 : vector<8x32xf32>
    %228 = math.exp %227 : vector<8x32xf32>
    %cst_99 = arith.constant 1.000000e+00 : f32
    %229 = vector.broadcast %cst_99 : f32 to vector<8x32xf32>
    %230 = arith.addf %229, %228 : vector<8x32xf32>
    %cst_100 = arith.constant 1.000000e+00 : f32
    %231 = vector.broadcast %cst_100 : f32 to vector<8x32xf32>
    %232 = arith.divf %231, %230 : vector<8x32xf32>
    %233 = arith.subf %210, %225 : vector<8x32xf32>
    %234 = math.exp %233 : vector<8x32xf32>
    %235 = arith.subf %224, %225 : vector<8x32xf32>
    %236 = math.exp %235 : vector<8x32xf32>
    %237 = arith.mulf %236, %194 : vector<8x32xf32>
    %238 = math.tanh %212 : vector<8x32xf32>
    %239 = arith.mulf %234, %238 : vector<8x32xf32>
    %240 = arith.addf %237, %239 : vector<8x32xf32>
    %241 = arith.mulf %236, %196 : vector<8x32xf32>
    %242 = arith.addf %241, %234 : vector<8x32xf32>
    %243 = arith.mulf %232, %240 : vector<8x32xf32>
    %244 = tpu.reciprocal %242 {approx = true} : vector<8x32xf32> -> vector<8x32xf32>
    %245 = arith.mulf %243, %244 : vector<8x32xf32>
    %246 = arith.index_cast %203 : i32 to index
    %c0_101 = arith.constant 0 : index
    %247 = vector.load %arg15[%246, %c0_101] : memref<64x32xf32, #tpu.memory_space<vmem>>, vector<8x32xf32>
    tpu.vector_store %arg15[%246, %c0_101], %245 {strides = array<i32>} : memref<64x32xf32, #tpu.memory_space<vmem>>, vector<8x32xf32>,
    %c4_i32 = arith.constant 4 : i32
    %c8_i32_102 = arith.constant 8 : i32
    %248 = arith.muli %c4_i32, %c8_i32_102 : i32
    %249 = tpu.assume_multiple %248, 8 : i32
    %250 = arith.index_cast %249 : i32 to index
    %c0_103 = arith.constant 0 : index
    %251 = vector.load %arg14[%250, %c0_103] : memref<64x128xf32, #tpu.memory_space<vmem>>, vector<8x128xf32>
    %252 = arith.truncf %245 : vector<8x32xf32> to vector<8x32xbf16>
    %c0_104 = arith.constant 0 : index
    %c0_105 = arith.constant 0 : index
    %253 = vector.load %arg7[%c0_104, %c0_105] : memref<32x128xbf16, #tpu.memory_space<vmem>>, vector<32x128xbf16>
    %cst_106 = arith.constant dense<0.000000e+00> : vector<8x128xf32>
    %254 = tpu.matmul %252, %253, %cst_106 {dimension_numbers = #tpu.dot_dimension_numbers<[1], [0], [0], [1], [0, 0, 1, 1], [], []>} : vector<8x32xbf16>, vector<32x128xbf16>, vector<8x128xf32> -> vector<8x128xf32>
    %255 = arith.addf %251, %254 : vector<8x128xf32>
    %256 = vector.extract_strided_slice %255 {offsets = [0, 0], sizes = [8, 32], strides = [1, 1]} : vector<8x128xf32> to vector<8x32xf32>
    %257 = vector.extract_strided_slice %255 {offsets = [0, 32], sizes = [8, 32], strides = [1, 1]} : vector<8x128xf32> to vector<8x32xf32>
    %258 = vector.extract_strided_slice %255 {offsets = [0, 64], sizes = [8, 32], strides = [1, 1]} : vector<8x128xf32> to vector<8x32xf32>
    %259 = vector.extract_strided_slice %255 {offsets = [0, 96], sizes = [8, 32], strides = [1, 1]} : vector<8x128xf32> to vector<8x32xf32>
    %cst_107 = arith.constant 0.000000e+00 : f32
    %260 = vector.broadcast %cst_107 : f32 to vector<8x32xf32>
    %261 = arith.minimumf %257, %260 : vector<8x32xf32>
    %262 = math.absf %257 : vector<8x32xf32>
    %cst_108 = arith.constant 0.000000e+00 : f32
    %263 = vector.broadcast %cst_108 : f32 to vector<8x32xf32>
    %264 = arith.subf %263, %262 : vector<8x32xf32>
    %265 = math.exp %264 : vector<8x32xf32>
    %cst_109 = arith.constant 1.000000e+00 : f32
    %266 = vector.broadcast %cst_109 : f32 to vector<8x32xf32>
    %267 = arith.addf %266, %265 : vector<8x32xf32>
    %268 = math.log %267 : vector<8x32xf32>
    %269 = arith.subf %261, %268 : vector<8x32xf32>
    %270 = arith.addf %225, %269 : vector<8x32xf32>
    %271 = arith.maximumf %256, %270 : vector<8x32xf32>
    %cst_110 = arith.constant 0.000000e+00 : f32
    %272 = vector.broadcast %cst_110 : f32 to vector<8x32xf32>
    %273 = arith.subf %272, %259 : vector<8x32xf32>
    %274 = math.exp %273 : vector<8x32xf32>
    %cst_111 = arith.constant 1.000000e+00 : f32
    %275 = vector.broadcast %cst_111 : f32 to vector<8x32xf32>
    %276 = arith.addf %275, %274 : vector<8x32xf32>
    %cst_112 = arith.constant 1.000000e+00 : f32
    %277 = vector.broadcast %cst_112 : f32 to vector<8x32xf32>
    %278 = arith.divf %277, %276 : vector<8x32xf32>
    %279 = arith.subf %256, %271 : vector<8x32xf32>
    %280 = math.exp %279 : vector<8x32xf32>
    %281 = arith.subf %270, %271 : vector<8x32xf32>
    %282 = math.exp %281 : vector<8x32xf32>
    %283 = arith.mulf %282, %240 : vector<8x32xf32>
    %284 = math.tanh %258 : vector<8x32xf32>
    %285 = arith.mulf %280, %284 : vector<8x32xf32>
    %286 = arith.addf %283, %285 : vector<8x32xf32>
    %287 = arith.mulf %282, %242 : vector<8x32xf32>
    %288 = arith.addf %287, %280 : vector<8x32xf32>
    %289 = arith.mulf %278, %286 : vector<8x32xf32>
    %290 = tpu.reciprocal %288 {approx = true} : vector<8x32xf32> -> vector<8x32xf32>
    %291 = arith.mulf %289, %290 : vector<8x32xf32>
    %292 = arith.index_cast %249 : i32 to index
    %c0_113 = arith.constant 0 : index
    %293 = vector.load %arg15[%292, %c0_113] : memref<64x32xf32, #tpu.memory_space<vmem>>, vector<8x32xf32>
    tpu.vector_store %arg15[%292, %c0_113], %291 {strides = array<i32>} : memref<64x32xf32, #tpu.memory_space<vmem>>, vector<8x32xf32>,
    %c5_i32 = arith.constant 5 : i32
    %c8_i32_114 = arith.constant 8 : i32
    %294 = arith.muli %c5_i32, %c8_i32_114 : i32
    %295 = tpu.assume_multiple %294, 8 : i32
    %296 = arith.index_cast %295 : i32 to index
    %c0_115 = arith.constant 0 : index
    %297 = vector.load %arg14[%296, %c0_115] : memref<64x128xf32, #tpu.memory_space<vmem>>, vector<8x128xf32>
    %298 = arith.truncf %291 : vector<8x32xf32> to vector<8x32xbf16>
    %c0_116 = arith.constant 0 : index
    %c0_117 = arith.constant 0 : index
    %299 = vector.load %arg7[%c0_116, %c0_117] : memref<32x128xbf16, #tpu.memory_space<vmem>>, vector<32x128xbf16>
    %cst_118 = arith.constant dense<0.000000e+00> : vector<8x128xf32>
    %300 = tpu.matmul %298, %299, %cst_118 {dimension_numbers = #tpu.dot_dimension_numbers<[1], [0], [0], [1], [0, 0, 1, 1], [], []>} : vector<8x32xbf16>, vector<32x128xbf16>, vector<8x128xf32> -> vector<8x128xf32>
    %301 = arith.addf %297, %300 : vector<8x128xf32>
    %302 = vector.extract_strided_slice %301 {offsets = [0, 0], sizes = [8, 32], strides = [1, 1]} : vector<8x128xf32> to vector<8x32xf32>
    %303 = vector.extract_strided_slice %301 {offsets = [0, 32], sizes = [8, 32], strides = [1, 1]} : vector<8x128xf32> to vector<8x32xf32>
    %304 = vector.extract_strided_slice %301 {offsets = [0, 64], sizes = [8, 32], strides = [1, 1]} : vector<8x128xf32> to vector<8x32xf32>
    %305 = vector.extract_strided_slice %301 {offsets = [0, 96], sizes = [8, 32], strides = [1, 1]} : vector<8x128xf32> to vector<8x32xf32>
    %cst_119 = arith.constant 0.000000e+00 : f32
    %306 = vector.broadcast %cst_119 : f32 to vector<8x32xf32>
    %307 = arith.minimumf %303, %306 : vector<8x32xf32>
    %308 = math.absf %303 : vector<8x32xf32>
    %cst_120 = arith.constant 0.000000e+00 : f32
    %309 = vector.broadcast %cst_120 : f32 to vector<8x32xf32>
    %310 = arith.subf %309, %308 : vector<8x32xf32>
    %311 = math.exp %310 : vector<8x32xf32>
    %cst_121 = arith.constant 1.000000e+00 : f32
    %312 = vector.broadcast %cst_121 : f32 to vector<8x32xf32>
    %313 = arith.addf %312, %311 : vector<8x32xf32>
    %314 = math.log %313 : vector<8x32xf32>
    %315 = arith.subf %307, %314 : vector<8x32xf32>
    %316 = arith.addf %271, %315 : vector<8x32xf32>
    %317 = arith.maximumf %302, %316 : vector<8x32xf32>
    %cst_122 = arith.constant 0.000000e+00 : f32
    %318 = vector.broadcast %cst_122 : f32 to vector<8x32xf32>
    %319 = arith.subf %318, %305 : vector<8x32xf32>
    %320 = math.exp %319 : vector<8x32xf32>
    %cst_123 = arith.constant 1.000000e+00 : f32
    %321 = vector.broadcast %cst_123 : f32 to vector<8x32xf32>
    %322 = arith.addf %321, %320 : vector<8x32xf32>
    %cst_124 = arith.constant 1.000000e+00 : f32
    %323 = vector.broadcast %cst_124 : f32 to vector<8x32xf32>
    %324 = arith.divf %323, %322 : vector<8x32xf32>
    %325 = arith.subf %302, %317 : vector<8x32xf32>
    %326 = math.exp %325 : vector<8x32xf32>
    %327 = arith.subf %316, %317 : vector<8x32xf32>
    %328 = math.exp %327 : vector<8x32xf32>
    %329 = arith.mulf %328, %286 : vector<8x32xf32>
    %330 = math.tanh %304 : vector<8x32xf32>
    %331 = arith.mulf %326, %330 : vector<8x32xf32>
    %332 = arith.addf %329, %331 : vector<8x32xf32>
    %333 = arith.mulf %328, %288 : vector<8x32xf32>
    %334 = arith.addf %333, %326 : vector<8x32xf32>
    %335 = arith.mulf %324, %332 : vector<8x32xf32>
    %336 = tpu.reciprocal %334 {approx = true} : vector<8x32xf32> -> vector<8x32xf32>
    %337 = arith.mulf %335, %336 : vector<8x32xf32>
    %338 = arith.index_cast %295 : i32 to index
    %c0_125 = arith.constant 0 : index
    %339 = vector.load %arg15[%338, %c0_125] : memref<64x32xf32, #tpu.memory_space<vmem>>, vector<8x32xf32>
    tpu.vector_store %arg15[%338, %c0_125], %337 {strides = array<i32>} : memref<64x32xf32, #tpu.memory_space<vmem>>, vector<8x32xf32>,
    %c6_i32 = arith.constant 6 : i32
    %c8_i32_126 = arith.constant 8 : i32
    %340 = arith.muli %c6_i32, %c8_i32_126 : i32
    %341 = tpu.assume_multiple %340, 8 : i32
    %342 = arith.index_cast %341 : i32 to index
    %c0_127 = arith.constant 0 : index
    %343 = vector.load %arg14[%342, %c0_127] : memref<64x128xf32, #tpu.memory_space<vmem>>, vector<8x128xf32>
    %344 = arith.truncf %337 : vector<8x32xf32> to vector<8x32xbf16>
    %c0_128 = arith.constant 0 : index
    %c0_129 = arith.constant 0 : index
    %345 = vector.load %arg7[%c0_128, %c0_129] : memref<32x128xbf16, #tpu.memory_space<vmem>>, vector<32x128xbf16>
    %cst_130 = arith.constant dense<0.000000e+00> : vector<8x128xf32>
    %346 = tpu.matmul %344, %345, %cst_130 {dimension_numbers = #tpu.dot_dimension_numbers<[1], [0], [0], [1], [0, 0, 1, 1], [], []>} : vector<8x32xbf16>, vector<32x128xbf16>, vector<8x128xf32> -> vector<8x128xf32>
    %347 = arith.addf %343, %346 : vector<8x128xf32>
    %348 = vector.extract_strided_slice %347 {offsets = [0, 0], sizes = [8, 32], strides = [1, 1]} : vector<8x128xf32> to vector<8x32xf32>
    %349 = vector.extract_strided_slice %347 {offsets = [0, 32], sizes = [8, 32], strides = [1, 1]} : vector<8x128xf32> to vector<8x32xf32>
    %350 = vector.extract_strided_slice %347 {offsets = [0, 64], sizes = [8, 32], strides = [1, 1]} : vector<8x128xf32> to vector<8x32xf32>
    %351 = vector.extract_strided_slice %347 {offsets = [0, 96], sizes = [8, 32], strides = [1, 1]} : vector<8x128xf32> to vector<8x32xf32>
    %cst_131 = arith.constant 0.000000e+00 : f32
    %352 = vector.broadcast %cst_131 : f32 to vector<8x32xf32>
    %353 = arith.minimumf %349, %352 : vector<8x32xf32>
    %354 = math.absf %349 : vector<8x32xf32>
    %cst_132 = arith.constant 0.000000e+00 : f32
    %355 = vector.broadcast %cst_132 : f32 to vector<8x32xf32>
    %356 = arith.subf %355, %354 : vector<8x32xf32>
    %357 = math.exp %356 : vector<8x32xf32>
    %cst_133 = arith.constant 1.000000e+00 : f32
    %358 = vector.broadcast %cst_133 : f32 to vector<8x32xf32>
    %359 = arith.addf %358, %357 : vector<8x32xf32>
    %360 = math.log %359 : vector<8x32xf32>
    %361 = arith.subf %353, %360 : vector<8x32xf32>
    %362 = arith.addf %317, %361 : vector<8x32xf32>
    %363 = arith.maximumf %348, %362 : vector<8x32xf32>
    %cst_134 = arith.constant 0.000000e+00 : f32
    %364 = vector.broadcast %cst_134 : f32 to vector<8x32xf32>
    %365 = arith.subf %364, %351 : vector<8x32xf32>
    %366 = math.exp %365 : vector<8x32xf32>
    %cst_135 = arith.constant 1.000000e+00 : f32
    %367 = vector.broadcast %cst_135 : f32 to vector<8x32xf32>
    %368 = arith.addf %367, %366 : vector<8x32xf32>
    %cst_136 = arith.constant 1.000000e+00 : f32
    %369 = vector.broadcast %cst_136 : f32 to vector<8x32xf32>
    %370 = arith.divf %369, %368 : vector<8x32xf32>
    %371 = arith.subf %348, %363 : vector<8x32xf32>
    %372 = math.exp %371 : vector<8x32xf32>
    %373 = arith.subf %362, %363 : vector<8x32xf32>
    %374 = math.exp %373 : vector<8x32xf32>
    %375 = arith.mulf %374, %332 : vector<8x32xf32>
    %376 = math.tanh %350 : vector<8x32xf32>
    %377 = arith.mulf %372, %376 : vector<8x32xf32>
    %378 = arith.addf %375, %377 : vector<8x32xf32>
    %379 = arith.mulf %374, %334 : vector<8x32xf32>
    %380 = arith.addf %379, %372 : vector<8x32xf32>
    %381 = arith.mulf %370, %378 : vector<8x32xf32>
    %382 = tpu.reciprocal %380 {approx = true} : vector<8x32xf32> -> vector<8x32xf32>
    %383 = arith.mulf %381, %382 : vector<8x32xf32>
    %384 = arith.index_cast %341 : i32 to index
    %c0_137 = arith.constant 0 : index
    %385 = vector.load %arg15[%384, %c0_137] : memref<64x32xf32, #tpu.memory_space<vmem>>, vector<8x32xf32>
    tpu.vector_store %arg15[%384, %c0_137], %383 {strides = array<i32>} : memref<64x32xf32, #tpu.memory_space<vmem>>, vector<8x32xf32>,
    %c7_i32 = arith.constant 7 : i32
    %c8_i32_138 = arith.constant 8 : i32
    %386 = arith.muli %c7_i32, %c8_i32_138 : i32
    %387 = tpu.assume_multiple %386, 8 : i32
    %388 = arith.index_cast %387 : i32 to index
    %c0_139 = arith.constant 0 : index
    %389 = vector.load %arg14[%388, %c0_139] : memref<64x128xf32, #tpu.memory_space<vmem>>, vector<8x128xf32>
    %390 = arith.truncf %383 : vector<8x32xf32> to vector<8x32xbf16>
    %c0_140 = arith.constant 0 : index
    %c0_141 = arith.constant 0 : index
    %391 = vector.load %arg7[%c0_140, %c0_141] : memref<32x128xbf16, #tpu.memory_space<vmem>>, vector<32x128xbf16>
    %cst_142 = arith.constant dense<0.000000e+00> : vector<8x128xf32>
    %392 = tpu.matmul %390, %391, %cst_142 {dimension_numbers = #tpu.dot_dimension_numbers<[1], [0], [0], [1], [0, 0, 1, 1], [], []>} : vector<8x32xbf16>, vector<32x128xbf16>, vector<8x128xf32> -> vector<8x128xf32>
    %393 = arith.addf %389, %392 : vector<8x128xf32>
    %394 = vector.extract_strided_slice %393 {offsets = [0, 0], sizes = [8, 32], strides = [1, 1]} : vector<8x128xf32> to vector<8x32xf32>
    %395 = vector.extract_strided_slice %393 {offsets = [0, 32], sizes = [8, 32], strides = [1, 1]} : vector<8x128xf32> to vector<8x32xf32>
    %396 = vector.extract_strided_slice %393 {offsets = [0, 64], sizes = [8, 32], strides = [1, 1]} : vector<8x128xf32> to vector<8x32xf32>
    %397 = vector.extract_strided_slice %393 {offsets = [0, 96], sizes = [8, 32], strides = [1, 1]} : vector<8x128xf32> to vector<8x32xf32>
    %cst_143 = arith.constant 0.000000e+00 : f32
    %398 = vector.broadcast %cst_143 : f32 to vector<8x32xf32>
    %399 = arith.minimumf %395, %398 : vector<8x32xf32>
    %400 = math.absf %395 : vector<8x32xf32>
    %cst_144 = arith.constant 0.000000e+00 : f32
    %401 = vector.broadcast %cst_144 : f32 to vector<8x32xf32>
    %402 = arith.subf %401, %400 : vector<8x32xf32>
    %403 = math.exp %402 : vector<8x32xf32>
    %cst_145 = arith.constant 1.000000e+00 : f32
    %404 = vector.broadcast %cst_145 : f32 to vector<8x32xf32>
    %405 = arith.addf %404, %403 : vector<8x32xf32>
    %406 = math.log %405 : vector<8x32xf32>
    %407 = arith.subf %399, %406 : vector<8x32xf32>
    %408 = arith.addf %363, %407 : vector<8x32xf32>
    %409 = arith.maximumf %394, %408 : vector<8x32xf32>
    %cst_146 = arith.constant 0.000000e+00 : f32
    %410 = vector.broadcast %cst_146 : f32 to vector<8x32xf32>
    %411 = arith.subf %410, %397 : vector<8x32xf32>
    %412 = math.exp %411 : vector<8x32xf32>
    %cst_147 = arith.constant 1.000000e+00 : f32
    %413 = vector.broadcast %cst_147 : f32 to vector<8x32xf32>
    %414 = arith.addf %413, %412 : vector<8x32xf32>
    %cst_148 = arith.constant 1.000000e+00 : f32
    %415 = vector.broadcast %cst_148 : f32 to vector<8x32xf32>
    %416 = arith.divf %415, %414 : vector<8x32xf32>
    %417 = arith.subf %394, %409 : vector<8x32xf32>
    %418 = math.exp %417 : vector<8x32xf32>
    %419 = arith.subf %408, %409 : vector<8x32xf32>
    %420 = math.exp %419 : vector<8x32xf32>
    %421 = arith.mulf %420, %378 : vector<8x32xf32>
    %422 = math.tanh %396 : vector<8x32xf32>
    %423 = arith.mulf %418, %422 : vector<8x32xf32>
    %424 = arith.addf %421, %423 : vector<8x32xf32>
    %425 = arith.mulf %420, %380 : vector<8x32xf32>
    %426 = arith.addf %425, %418 : vector<8x32xf32>
    %427 = arith.mulf %416, %424 : vector<8x32xf32>
    %428 = tpu.reciprocal %426 {approx = true} : vector<8x32xf32> -> vector<8x32xf32>
    %429 = arith.mulf %427, %428 : vector<8x32xf32>
    %430 = arith.index_cast %387 : i32 to index
    %c0_149 = arith.constant 0 : index
    %431 = vector.load %arg15[%430, %c0_149] : memref<64x32xf32, #tpu.memory_space<vmem>>, vector<8x32xf32>
    tpu.vector_store %arg15[%430, %c0_149], %429 {strides = array<i32>} : memref<64x32xf32, #tpu.memory_space<vmem>>, vector<8x32xf32>,
    %c8_i32_150 = arith.constant 8 : i32
    %c0_151 = arith.constant 0 : index
    %c0_152 = arith.constant 0 : index
    %432 = vector.load %arg16[%c0_151, %c0_152] : memref<8x32xf32, #tpu.memory_space<vmem>>, vector<8x32xf32>
    tpu.vector_store %arg16[%c0_151, %c0_152], %429 {strides = array<i32>} : memref<8x32xf32, #tpu.memory_space<vmem>>, vector<8x32xf32>,
    %c0_153 = arith.constant 0 : index
    %c0_154 = arith.constant 0 : index
    %433 = vector.load %arg17[%c0_153, %c0_154] : memref<8x32xf32, #tpu.memory_space<vmem>>, vector<8x32xf32>
    tpu.vector_store %arg17[%c0_153, %c0_154], %424 {strides = array<i32>} : memref<8x32xf32, #tpu.memory_space<vmem>>, vector<8x32xf32>,
    %c0_155 = arith.constant 0 : index
    %c0_156 = arith.constant 0 : index
    %434 = vector.load %arg18[%c0_155, %c0_156] : memref<8x32xf32, #tpu.memory_space<vmem>>, vector<8x32xf32>
    tpu.vector_store %arg18[%c0_155, %c0_156], %426 {strides = array<i32>} : memref<8x32xf32, #tpu.memory_space<vmem>>, vector<8x32xf32>,
    %c0_157 = arith.constant 0 : index
    %c0_158 = arith.constant 0 : index
    %435 = vector.load %arg19[%c0_157, %c0_158] : memref<8x32xf32, #tpu.memory_space<vmem>>, vector<8x32xf32>
    tpu.vector_store %arg19[%c0_157, %c0_158], %409 {strides = array<i32>} : memref<8x32xf32, #tpu.memory_space<vmem>>, vector<8x32xf32>,
    %c0_159 = arith.constant 0 : index
    %c0_160 = arith.constant 0 : index
    %436 = vector.load %arg15[%c0_159, %c0_160] : memref<64x32xf32, #tpu.memory_space<vmem>>, vector<64x32xf32>
    %c0_161 = arith.constant 0 : index
    %c0_162 = arith.constant 0 : index
    %437 = vector.load %arg10[%c0_161, %c0_162] : memref<32x4xf32, #tpu.memory_space<vmem>>, vector<32x4xf32>
    %cst_163 = arith.constant dense<0.000000e+00> : vector<64x4xf32>
    %438 = tpu.matmul %436, %437, %cst_163 {dimension_numbers = #tpu.dot_dimension_numbers<[1], [0], [0], [1], [0, 0, 1, 1], [], []>} : vector<64x32xf32>, vector<32x4xf32>, vector<64x4xf32> -> vector<64x4xf32>
    %c0_164 = arith.constant 0 : index
    %c0_165 = arith.constant 0 : index
    %439 = vector.load %arg11[%c0_164, %c0_165] : memref<4x32xf32, #tpu.memory_space<vmem>>, vector<4x32xf32>
    %cst_166 = arith.constant dense<0.000000e+00> : vector<64x32xf32>
    %440 = tpu.matmul %438, %439, %cst_166 {dimension_numbers = #tpu.dot_dimension_numbers<[1], [0], [0], [1], [0, 0, 1, 1], [], []>} : vector<64x4xf32>, vector<4x32xf32>, vector<64x32xf32> -> vector<64x32xf32>
    %441 = arith.subf %436, %440 : vector<64x32xf32>
    %c0_167 = arith.constant 0 : index
    %c0_168 = arith.constant 0 : index
    %442 = vector.load %arg10[%c0_167, %c0_168] : memref<32x4xf32, #tpu.memory_space<vmem>>, vector<32x4xf32>
    %cst_169 = arith.constant dense<0.000000e+00> : vector<64x4xf32>
    %443 = tpu.matmul %441, %442, %cst_169 {dimension_numbers = #tpu.dot_dimension_numbers<[1], [0], [0], [1], [0, 0, 1, 1], [], []>} : vector<64x32xf32>, vector<32x4xf32>, vector<64x4xf32> -> vector<64x4xf32>
    %c0_170 = arith.constant 0 : index
    %c0_171 = arith.constant 0 : index
    %444 = vector.load %arg11[%c0_170, %c0_171] : memref<4x32xf32, #tpu.memory_space<vmem>>, vector<4x32xf32>
    %cst_172 = arith.constant dense<0.000000e+00> : vector<64x32xf32>
    %445 = tpu.matmul %443, %444, %cst_172 {dimension_numbers = #tpu.dot_dimension_numbers<[1], [0], [0], [1], [0, 0, 1, 1], [], []>} : vector<64x4xf32>, vector<4x32xf32>, vector<64x32xf32> -> vector<64x32xf32>
    %446 = arith.subf %441, %445 : vector<64x32xf32>
    %447 = arith.mulf %446, %446 : vector<64x32xf32>
    %c0_173 = arith.constant 0 : index
    %c0_174 = arith.constant 0 : index
    %448 = vector.load %arg10[%c0_173, %c0_174] : memref<32x4xf32, #tpu.memory_space<vmem>>, vector<32x4xf32>
    %cst_175 = arith.constant dense<0.000000e+00> : vector<64x4xf32>
    %449 = tpu.matmul %447, %448, %cst_175 {dimension_numbers = #tpu.dot_dimension_numbers<[1], [0], [0], [1], [0, 0, 1, 1], [], []>} : vector<64x32xf32>, vector<32x4xf32>, vector<64x4xf32> -> vector<64x4xf32>
    %c0_176 = arith.constant 0 : index
    %c0_177 = arith.constant 0 : index
    %450 = vector.load %arg11[%c0_176, %c0_177] : memref<4x32xf32, #tpu.memory_space<vmem>>, vector<4x32xf32>
    %cst_178 = arith.constant dense<0.000000e+00> : vector<64x32xf32>
    %451 = tpu.matmul %449, %450, %cst_178 {dimension_numbers = #tpu.dot_dimension_numbers<[1], [0], [0], [1], [0, 0, 1, 1], [], []>} : vector<64x4xf32>, vector<4x32xf32>, vector<64x32xf32> -> vector<64x32xf32>
    %c0_179 = arith.constant 0 : index
    %c0_180 = arith.constant 0 : index
    %452 = vector.load %arg9[%c0_179, %c0_180] : memref<1x32xf32, #tpu.memory_space<vmem>>, vector<1x32xf32>
    %453 = vector.broadcast %452 : vector<1x32xf32> to vector<64x32xf32>
    %454 = arith.mulf %453, %446 : vector<64x32xf32>
    %cst_181 = arith.constant 9.99999974E-6 : f32
    %455 = vector.broadcast %cst_181 : f32 to vector<64x32xf32>
    %456 = arith.addf %451, %455 : vector<64x32xf32>
    %457 = math.rsqrt %456 : vector<64x32xf32>
    %458 = arith.mulf %454, %457 : vector<64x32xf32>
    %459 = vector.shape_cast %458 : vector<64x32xf32> to vector<8x8x32xf32>
    %c0_182 = arith.constant 0 : index
    %c0_183 = arith.constant 0 : index
    %c0_184 = arith.constant 0 : index
    %460 = vector.load %arg12[%c0_182, %c0_183, %c0_184] : memref<8x8x32xf32, #tpu.memory_space<vmem>>, vector<8x8x32xf32>
    tpu.vector_store %arg12[%c0_182, %c0_183, %c0_184], %459 {strides = array<i32>} : memref<8x8x32xf32, #tpu.memory_space<vmem>>, vector<8x8x32xf32>,
    return
  }
  func.func @transform_0(%arg0: i32, %arg1: i32) -> (i32, i32, i32) {
    %c0_i32 = arith.constant 0 : i32
    %c0_i32_0 = arith.constant 0 : i32
    return %arg1, %arg0, %c0_i32 : i32, i32, i32
  }
  func.func @transform_1(%arg0: i32, %arg1: i32) -> (i32, i32) {
    %c0_i32 = arith.constant 0 : i32
    %c0_i32_0 = arith.constant 0 : i32
    %c0_i32_1 = arith.constant 0 : i32
    return %c0_i32, %c0_i32_0 : i32, i32
  }
  func.func @transform_2(%arg0: i32, %arg1: i32) -> (i32, i32) {
    %c0_i32 = arith.constant 0 : i32
    %c0_i32_0 = arith.constant 0 : i32
    %c0_i32_1 = arith.constant 0 : i32
    return %c0_i32, %c0_i32_0 : i32, i32
  }
  func.func @transform_3(%arg0: i32, %arg1: i32) -> (i32, i32) {
    %c0_i32 = arith.constant 0 : i32
    %c0_i32_0 = arith.constant 0 : i32
    %c0_i32_1 = arith.constant 0 : i32
    return %c0_i32, %c0_i32_0 : i32, i32
  }
  func.func @transform_4(%arg0: i32, %arg1: i32) -> (i32, i32) {
    %c0_i32 = arith.constant 0 : i32
    %c0_i32_0 = arith.constant 0 : i32
    %c0_i32_1 = arith.constant 0 : i32
    return %c0_i32, %c0_i32_0 : i32, i32
  }
  func.func @transform_5(%arg0: i32, %arg1: i32) -> (i32, i32) {
    %c0_i32 = arith.constant 0 : i32
    %c0_i32_0 = arith.constant 0 : i32
    %c0_i32_1 = arith.constant 0 : i32
    return %c0_i32, %c0_i32_0 : i32, i32
  }
  func.func @transform_6(%arg0: i32, %arg1: i32) -> (i32, i32) {
    %c0_i32 = arith.constant 0 : i32
    %c0_i32_0 = arith.constant 0 : i32
    %c0_i32_1 = arith.constant 0 : i32
    return %c0_i32, %c0_i32_0 : i32, i32
  }
  func.func @transform_7(%arg0: i32, %arg1: i32) -> (i32, i32) {
    %c0_i32 = arith.constant 0 : i32
    %c0_i32_0 = arith.constant 0 : i32
    %c0_i32_1 = arith.constant 0 : i32
    return %c0_i32, %c0_i32_0 : i32, i32
  }
  func.func @transform_8(%arg0: i32, %arg1: i32) -> (i32, i32) {
    %c0_i32 = arith.constant 0 : i32
    %c0_i32_0 = arith.constant 0 : i32
    %c0_i32_1 = arith.constant 0 : i32
    return %c0_i32, %c0_i32_0 : i32, i32
  }
  func.func @transform_9(%arg0: i32, %arg1: i32) -> (i32, i32) {
    %c0_i32 = arith.constant 0 : i32
    %c0_i32_0 = arith.constant 0 : i32
    %c0_i32_1 = arith.constant 0 : i32
    return %c0_i32, %c0_i32_0 : i32, i32
  }
  func.func @transform_10(%arg0: i32, %arg1: i32) -> (i32, i32, i32) {
    %c0_i32 = arith.constant 0 : i32
    %c0_i32_0 = arith.constant 0 : i32
    return %arg1, %arg0, %c0_i32 : i32, i32, i32
  }
}

</mosaic_0001>

<bundles_post_ra>
// kernel: tpu_custom_call.1
= control target key start
LH: loop header
LB: loop body
LE: loop exit
PB: predicated region body
PF: predicated region fallthrough
CT: control target
= control target key end

     0   :  { %15 = vsyncpa [#allocation10], 0  ;;  %s3742_s0 = inlined_call_operand.hbm [shape: f32[8,8,32], index: 0, kind: input, shape index: {}]   ;;  %s3743_s1 = inlined_call_operand.vmem [shape: f32[4,32], index: 1, kind: input, shape index: {}]   ;;  %s3744_s2 = inlined_call_operand.vmem [shape: f32[1,32], index: 2, kind: input, shape index: {}]   ;;  %s3745_s3 = inlined_call_operand.vmem [shape: bf16[32,64], index: 3, kind: input, shape index: {}]   ;;  %s3746_s4 = inlined_call_operand.vmem [shape: bf16[32,64], index: 4, kind: input, shape index: {}]   ;;  %s3747_s5 = inlined_call_operand.hbm [shape: bf16[32,128], index: 5, kind: input, shape index: {}]   ;;  %s3748_s6 = inlined_call_operand.vmem [shape: f32[1,128], index: 6, kind: input, shape index: {}]   ;;  %s3749_s7 = inlined_call_operand.vmem [shape: f32[1,32], index: 7, kind: input, shape index: {}]   ;;  %s3750_s8 = inlined_call_operand.vmem [shape: f32[32,4], index: 8, kind: input, shape index: {}]   ;;  %s3751_s9 = inlined_call_operand.vmem [shape: f32[4,32], index: 9, kind: input, shape index: {}]   ;;  %s3752_s10 = inlined_call_operand.hbm [shape: f32[8,8,32], index: 10, kind: output, shape index: {}]  }
   0x1   :  { %16 = vsyncpa [#allocation13], 0 }
   0x2   :  { %17 = vsyncpa [#allocation11], 0  ;;  %s3038_s13 = smov [#allocation9]  }
   0x3   :  { %s23_s14 = sshll.u32 %s3038_s13, 4  ;;  %s24_s14 = int_to_ptr.vmem [resolvable:$true] %s23_s14 }
   0x4   :  { %s2980_s15 = scalar_lea.vmem %s24_s14, 1024  ;;  %p2985_p1 = scmp.lt.s32.totalorder %s24_s14, %s24_s14 }
   0x5   :  { %p2981_p0 = scmp.ne.s32.totalorder %s24_s14, %s2980_s15  ;;  %p2986_p2 = scmp.lt.s32.totalorder %s2980_s15, %s2980_s15 }
   0x7   :  { %p2987_p3 = por %p2986_p2, %p2985_p1 }
   0x9   :  { %p2988_p4 = pnand %p2987_p3, %p2981_p0 }
   0xb   :  { %2991 = shalt.err (!%p2988_p4)
}
   0xc   :  { %s3039_s16 = smov 128   ;;  %s3040_s17 = smov 8  }
   0xd   :  { %29 = dma.hbm_to_vmem [thread:$0]  %s3742_s0, 1024, %s24_s14, [#allocation10], %s3039_s16, %s3039_s16, %s3040_s17  }
   0xe   :  { %s3041_s20 = smov [#allocation12]  }
   0xf   :  { %s43_s21 = sshll.u32 %s3041_s20, 4  ;;  %s44_s21 = int_to_ptr.vmem [resolvable:$true] %s43_s21 }
  0x10   :  { %s3000_s22 = scalar_lea.vmem %s44_s21, 256  ;;  %p3005_p6 = scmp.lt.s32.totalorder %s44_s21, %s44_s21 }
  0x11   :  { %p3001_p5 = scmp.ne.s32.totalorder %s44_s21, %s3000_s22  ;;  %p3006_p7 = scmp.lt.s32.totalorder %s3000_s22, %s3000_s22 }
  0x13   :  { %p3007_p8 = por %p3006_p7, %p3005_p6 }
  0x15   :  { %p3008_p9 = pnand %p3007_p8, %p3001_p5 }
  0x17   :  { %3011 = shalt.err (!%p3008_p9)
}
  0x18   :  { %s3042_s23 = smov 64   ;;  %s3043_s24 = smov 4  }
  0x19   :  { %49 = dma.hbm_to_vmem [thread:$0]  %s3747_s5, 256, %s44_s21, [#allocation13], %s3042_s23, %s3042_s23, %s3043_s24  }
  0x1a   :  { %3032 = dma.done.wait [#allocation10], 1024  }
  0x1b   :  { %3033 = vsyncadd [#allocation10], 4294966272 }
  0x1c   :  { %3034 = dma.done.wait [#allocation13], 256  }
  0x1d   :  { %3035 = vsyncadd [#allocation13], 4294967040  ;;  %vm69_vm0 = vcmask 261120   ;;  %v3044_v0 = vmov 0.0   ;;  %v2776_v1 = vld [vmem:[%s3746_s4 + $0x8] sm:$0xff]   ;;  %v2777_v2 = vld [vmem:[%s3746_s4] sm:$0xff]  }
  0x1e   :  { %70 = vst.msk [vmem:[#allocation2] sm:$0xff] %vm69_vm0, %v3044_v0  ;;  %71 = vst.msk [vmem:[#allocation2 + $0x8] sm:$0xff] %vm69_vm0, %v3044_v0  ;;  %2586 = vmatprep.subr.bf16.mxu1 %v2776_v1  ;;  %v276_v3 = vld [vmem:[#allocation9] sm:$0xff]  ;;  %v277_v4 = vld [vmem:[#allocation9 + $0x8] sm:$0xff]  ;;  %vm3045_vm1 = vmmov 0   ;;  %vm399_vm2 = vcmask 523264  }
  0x1f   :  { %72 = vst.msk [vmem:[#allocation2 + $0x10] sm:$0xff] %vm69_vm0, %v3044_v0  ;;  %73 = vst.msk [vmem:[#allocation5] sm:$0xff] %vm69_vm0, %v3044_v0  ;;  %v278_v5 = vld [vmem:[#allocation9 + $0x10] sm:$0xff]  ;;  %2587 = vmatpush3.bf16.msra.mxu1 %v2776_v1  ;;  %v296_v6 = vpack.c.bf16 %v277_v4, %v276_v3  ;;  %v279_v7 = vld [vmem:[#allocation9 + $0x18] sm:$0xff]  ;;  %vm536_vm3 = vcmask 1048064   ;;  %s3048_s24 = smov 32  }
  0x20   :  { %74 = vst.msk [vmem:[#allocation6] sm:$0xff] %vm69_vm0, %v3044_v0  ;;  %75 = vst.msk [vmem:[#allocation7] sm:$0xff] %vm69_vm0, %v3044_v0  ;;  %v280_v8 = vld [vmem:[#allocation9 + $0x20] sm:$0xff]  ;;  %v281_v9 = vld [vmem:[#allocation9 + $0x28] sm:$0xff]  ;;  %2588 = vmatprep.subr.bf16.mxu1 %v2777_v2  ;;  %v297_v14 = vpack.c.bf16 %v279_v7, %v278_v5  ;;  %vm1675_vm4 = vcmask 1043456   ;;  %vm1650_vm5 = vcmask 31744  }
  0x21   :  { %87 = vst.msk [vmem:[#allocation2 + $0x18] sm:$0xff] %vm69_vm0, %v276_v3  ;;  %88 = vst.msk [vmem:[#allocation2 + $0x20] sm:$0xff] %vm69_vm0, %v277_v4  ;;  %v3137_v10 = vld [vmem:[#allocation9 + $0x30] sm:$0xff]  ;;  %v3139_v11 = vld [vmem:[#allocation9 + $0x38] sm:$0xff]  ;;  %2590 = vmatprep.mubr.msk.bf16.mxu1 %vm69_vm0, %v296_v6  ;;  %v298_v16 = vpack.c.bf16 %v281_v9, %v280_v8 }
  0x22   :  { %89 = vst.msk [vmem:[#allocation2 + $0x28] sm:$0xff] %vm69_vm0, %v278_v5  ;;  %v3144_v12 = vld [vmem:[%s3748_s6] ss:$0 sm:$0xff]  ;;  %92 = vst.msk [vmem:[#allocation2 + $0x40] sm:$0xff] %vm69_vm0, %v281_v9  ;;  %v2778_v13 = vld [vmem:[%s3745_s3 + $0x8] sm:$0xff]   ;;  %v299_v29 = vpack.c.bf16 %v3139_v11, %v3137_v10 }
  0x23   :  { %90 = vst.msk [vmem:[#allocation2 + $0x30] sm:$0xff] %vm69_vm0, %v279_v7  ;;  %91 = vst.msk [vmem:[#allocation2 + $0x38] sm:$0xff] %vm69_vm0, %v280_v8  ;;  %424 = vrot.lane.b32.xlu0 %v3144_v12, %s3042_s23  ;;  %v2779_v15 = vld [vmem:[%s3745_s3] sm:$0xff]   ;;  %2589 = vmatpush3.bf16.msra.mxu1 %v2777_v2 }
  0x24   :  { %93 = vst.msk [vmem:[#allocation2 + $0x48] sm:$0xff] %vm69_vm0, %v3137_v10  ;;  %94 = vst.msk [vmem:[#allocation2 + $0x50] sm:$0xff] %vm69_vm0, %v3139_v11  ;;  %2574 = vmatprep.subr.bf16.mxu0 %v2778_v13  ;;  %v3165_v17 = vld [vmem:[%s3744_s2] ss:$0 sm:$0xff]  ;;  %v3175_v22 = vld [vmem:[%s3743_s1 + $0x1] ss:$0 sm:$0xff]  ;;  %2606 = vmatprep.subr.bf16.mxu1 %v3044_v0 }
  0x25   :  { %v96_v18 = vld [vmem:[#allocation2] sm:$0xff]  ;;  %v97_v19 = vld [vmem:[#allocation2 + $0x8] sm:$0xff]  ;;  %2575 = vmatpush3.bf16.msra.mxu0 %v2778_v13 }
  0x26   :  { %v3170_v20 = vld [vmem:[%s3743_s1] ss:$0 sm:$0xff]  ;;  %v133_v21 = vld [vmem:[#allocation2 + $0x10] sm:$0xff]  ;;  %2576 = vmatprep.subr.bf16.mxu0 %v2779_v15  ;;  %v145_v25 = vmul.f32 %v3175_v22, %v97_v19  ;;  %v3185_v27 = vld [vmem:[%s3743_s1 + $0x2] ss:$0 sm:$0xff]  ;;  %2591 = vmatmul.mubr.msk.bf16.vlgmr.msra.gmra.mxu1 %vm69_vm0, %v297_v14 }
  0x27   :  { %v109_v23 = vmul.f32 %v3170_v20, %v96_v18  ;;  %v110_v24 = vmul.f32 %v3170_v20, %v97_v19  ;;  %v146_v26 = vmul.f32 %v3175_v22, %v133_v21  ;;  %v3190_v28 = vld [vmem:[%s3743_s1 + $0x3] ss:$0 sm:$0xff]  ;;  %v175_v31 = vmul.f32 %v3185_v27, %v133_v21  ;;  %2594 = vmatprep.mubr.msk.bf16.mxu1 %vm69_vm0, %v298_v16  ;;  %s3047_s1 = smov 96  }
  0x28   :  { %v163_v30 = vld [vmem:[#allocation2 + $0x18] sm:$0xff]  ;;  %v192_v32 = vld [vmem:[#allocation2 + $0x20] sm:$0xff]  ;;  %v111_v33 = vmul.f32 %v3170_v20, %v133_v21 }
  0x29   :  { %v123_v34 = vadd.f32 %v3165_v17, %v109_v23  ;;  %v124_v35 = vadd.f32 %v3165_v17, %v110_v24  ;;  %v176_v36 = vmul.f32 %v3185_v27, %v163_v30  ;;  %v204_v37 = vmul.f32 %v3190_v28, %v163_v30  ;;  %v3202_v38 = vld [vmem:[#allocation2 + $0x40] sm:$0xff]  ;;  %v165_v39 = vld [vmem:[#allocation2 + $0x28] sm:$0xff]  ;;  %2577 = vmatpush3.bf16.msra.mxu0 %v2779_v15 }
  0x2a   :  { %v205_v40 = vmul.f32 %v3190_v28, %v192_v32  ;;  %288 = vst.msk [vmem:[#allocation2] sm:$0xff] %vm69_vm0, %v3202_v38  ;;  %v112_v42 = vmul.f32 %v3170_v20, %v163_v30  ;;  %v125_v43 = vadd.f32 %v3165_v17, %v111_v33  ;;  %v147_v44 = vmul.f32 %v3175_v22, %v163_v30  ;;  %v194_v45 = vld [vmem:[#allocation2 + $0x30] sm:$0xff]  ;;  %v167_v63 = vld [vmem:[#allocation2 + $0x38] sm:$0xff] }
  0x2b   :  { %v3205_v41 = vld [vmem:[#allocation2 + $0x48] sm:$0xff]  ;;  %v3212_v46 = vld [vmem:[#allocation2 + $0x50] sm:$0xff]  ;;  %v153_v47 = vadd.f32 %v145_v25, %v123_v34  ;;  %v154_v48 = vadd.f32 %v146_v26, %v124_v35  ;;  %v148_v49 = vmul.f32 %v3175_v22, %v192_v32  ;;  %v177_v50 = vmul.f32 %v3185_v27, %v192_v32  ;;  %2598 = vmatprep.subr.bf16.mxu0 %v3044_v0 }
  0x2c   :  { %289 = vst.msk [vmem:[#allocation2 + $0x8] sm:$0xff] %vm69_vm0, %v3205_v41  ;;  %290 = vst.msk [vmem:[#allocation2 + $0x10] sm:$0xff] %vm69_vm0, %v3212_v46  ;;  %v126_v51 = vadd.f32 %v3165_v17, %v112_v42  ;;  %v155_v52 = vadd.f32 %v147_v44, %v125_v43  ;;  %v178_v53 = vmul.f32 %v3185_v27, %v165_v39 }
  0x2d   :  { %v206_v54 = vmul.f32 %v3190_v28, %v165_v39  ;;  %v183_v55 = vadd.f32 %v175_v31, %v153_v47  ;;  %v184_v56 = vadd.f32 %v176_v36, %v154_v48  ;;  %v207_v57 = vmul.f32 %v3190_v28, %v194_v45 }
  0x2e   :  { %v113_v58 = vmul.f32 %v3170_v20, %v192_v32  ;;  %v156_v59 = vadd.f32 %v148_v49, %v126_v51  ;;  %v185_v60 = vadd.f32 %v177_v50, %v155_v52  ;;  %v114_v61 = vmul.f32 %v3170_v20, %v165_v39  ;;  %2595 = vmatmul.mubr.msk.bf16.gmra.mxu1 %vm69_vm0, %v299_v29 }
  0x2f   :  { %v149_v62 = vmul.f32 %v3175_v22, %v165_v39  ;;  %v3228_v1 = vadd.f32 %v204_v37, %v183_v55  ;;  %v3230_v2 = vadd.f32 %v205_v40, %v184_v56  ;;  %v150_v4 = vmul.f32 %v3175_v22, %v194_v45  ;;  %2610 = vmatprep.mubr.msk.bf16.mxu1 %vm3045_vm1, %v3044_v0 }
  0x30   :  { %v127_v3 = vadd.f32 %v3165_v17, %v113_v58  ;;  %v186_v5 = vadd.f32 %v178_v53, %v156_v59  ;;  %v3235_v6 = vadd.f32 %v206_v54, %v185_v60  ;;  %v128_v7 = vadd.f32 %v3165_v17, %v114_v61 }
  0x31   :  { %v179_v8 = vmul.f32 %v3185_v27, %v194_v45  ;;  %v220_v9 = vsub.f32 0.0, %v3228_v1  ;;  %v221_v10 = vsub.f32 0.0, %v3230_v2  ;;  %v180_v13 = vmul.f32 %v3185_v27, %v167_v63 }
  0x32   :  { %v157_v11 = vadd.f32 %v149_v62, %v127_v3  ;;  %v3244_v14 = vadd.f32 %v207_v57, %v186_v5  ;;  %v222_v15 = vsub.f32 0.0, %v3235_v6  ;;  %v158_v16 = vadd.f32 %v150_v4, %v128_v7 }
  0x33   :  { %v208_v18 = vmul.f32 %v3190_v28, %v167_v63  ;;  %v228_v19 = vmul.f32 1.442695, %v220_v9  ;;  %v230_v21 = vmul.f32 1.442695, %v221_v10  ;;  %v209_v24 = vmul.f32 %v3190_v28, %v3202_v38 }
  0x34   :  { %v187_v23 = vadd.f32 %v179_v8, %v157_v11  ;;  %v223_v25 = vsub.f32 0.0, %v3244_v14  ;;  %v232_v26 = vmul.f32 1.442695, %v222_v15  ;;  %v188_v29 = vadd.f32 %v180_v13, %v158_v16 }
  0x35   :  { %v115_v30 = vmul.f32 %v3170_v20, %v194_v45  ;;  %2796 = vpow2.f32 %v228_v19  ;;  %v116_v32 = vmul.f32 %v3170_v20, %v167_v63  ;;  %v151_v33 = vmul.f32 %v3175_v22, %v167_v63 }
  0x36   :  { %v3252_v31 = vadd.f32 %v208_v18, %v187_v23  ;;  %2798 = vpow2.f32 %v230_v21  ;;  %v234_v34 = vmul.f32 1.442695, %v223_v25  ;;  %v3256_v35 = vadd.f32 %v209_v24, %v188_v29  ;;  %v2780_v21 = vld [vmem:[#allocation12 + $0x8] sm:$0xff]  }
  0x37   :  { %v129_v36 = vadd.f32 %v3165_v17, %v115_v30  ;;  %2800 = vpow2.f32 %v232_v26  ;;  %v130_v39 = vadd.f32 %v3165_v17, %v116_v32  ;;  %v152_v40 = vmul.f32 %v3175_v22, %v3202_v38 }
  0x38   :  { %v224_v37 = vsub.f32 0.0, %v3252_v31  ;;  %2802 = vpow2.f32 %v234_v34  ;;  %v225_v42 = vsub.f32 0.0, %v3256_v35  ;;  %v181_v43 = vmul.f32 %v3185_v27, %v3202_v38 }
  0x39   :  { %v159_v20 = vadd.f32 %v151_v33, %v129_v36  ;;  %v160_v45 = vadd.f32 %v152_v40, %v130_v39  ;;  %v182_v47 = vmul.f32 %v3185_v27, %v3205_v41  ;;  %v210_v48 = vmul.f32 %v3190_v28, %v3205_v41 }
  0x3a   :  { %v236_v44 = vmul.f32 1.442695, %v224_v37  ;;  %v238_v49 = vmul.f32 1.442695, %v225_v42  ;;  %v211_v22 = vmul.f32 %v3190_v28, %v3212_v46  ;;  %v3046_v40 = vmov -1e+30  }
  0x3b   :  { %v189_v17 = vadd.f32 %v181_v43, %v159_v20  ;;  %v190_v50 = vadd.f32 %v182_v47, %v160_v45  ;;  %76 = vst.msk [vmem:[#allocation8] sm:$0xff] %vm69_vm0, %v3046_v40 }
  0x3c   :  { %2804 = vpow2.f32 %v236_v44 }
  0x3d   :  { %2806 = vpow2.f32 %v238_v49  ;;  %v218_v51 = vadd.f32 %v210_v48, %v189_v17  ;;  %v219_v52 = vadd.f32 %v211_v22, %v190_v50 }
  0x3f   :  { %v226_v53 = vsub.f32 0.0, %v218_v51  ;;  %v227_v38 = vsub.f32 0.0, %v219_v52 }
  0x41   :  { %v240_v54 = vmul.f32 1.442695, %v226_v53  ;;  %v242_v55 = vmul.f32 1.442695, %v227_v38 }
  0x42   :  { %v2797_v56 = vpop.eup %2796 }
  0x43   :  { %2808 = vpow2.f32 %v240_v54  ;;  %v2799_v27 = vpop.eup %2798  ;;  %v244_v57 = vadd.f32 1.0, %v2797_v56 }
  0x44   :  { %2810 = vpow2.f32 %v242_v55  ;;  %v2801_v41 = vpop.eup %2800  ;;  %v245_v58 = vadd.f32 1.0, %v2799_v27 }
  0x45   :  { %v2803_v59 = vpop.eup %2802  ;;  %2812 = vrcp.f32 %v244_v57  ;;  %v246_v60 = vadd.f32 1.0, %v2801_v41 }
  0x46   :  { %2814 = vrcp.f32 %v245_v58  ;;  %v247_v28 = vadd.f32 1.0, %v2803_v59 }
  0x47   :  { %2816 = vrcp.f32 %v246_v60 }
  0x48   :  { %2818 = vrcp.f32 %v247_v28 }
  0x49   :  { %v2805_v46 = vpop.eup %2804 }
  0x4a   :  { %v2807_v61 = vpop.eup %2806  ;;  %v248_v62 = vadd.f32 1.0, %v2805_v46 }
  0x4b   :  { %v249_v63 = vadd.f32 1.0, %v2807_v61 }
  0x4c   :  { %2820 = vrcp.f32 %v248_v62 }
  0x4d   :  { %2822 = vrcp.f32 %v249_v63 }
  0x50   :  { %v2809_v3 = vpop.eup %2808 }
  0x51   :  { %v2811_v4 = vpop.eup %2810  ;;  %v250_v5 = vadd.f32 1.0, %v2809_v3 }
  0x52   :  { %v251_v7 = vadd.f32 1.0, %v2811_v4  ;;  %v2813_v8 = vpop.eup %2812 }
  0x53   :  { %2824 = vrcp.f32 %v250_v5  ;;  %v2815_v9 = vpop.eup %2814  ;;  %v268_v10 = vmul.f32 %v2813_v8, %v3228_v1 }
  0x54   :  { %2826 = vrcp.f32 %v251_v7  ;;  %v2817_v11 = vpop.eup %2816  ;;  %v269_v13 = vmul.f32 %v2815_v9, %v3230_v2  ;;  %v2781_v2 = vld [vmem:[#allocation12] sm:$0xff]   ;;  %v548_v7 = vld [vmem:[#allocation8] sm:$0xff] }
  0x55   :  { %v2819_v15 = vpop.eup %2818  ;;  %v270_v16 = vmul.f32 %v2817_v11, %v3235_v6 }
  0x56   :  { %v292_v18 = vpack.c.bf16 %v269_v13, %v268_v10  ;;  %v271_v19 = vmul.f32 %v2819_v15, %v3244_v14 }
  0x58   :  { %2578 = vmatprep.mubr.msk.bf16.mxu0 %vm69_vm0, %v292_v18  ;;  %v293_v24 = vpack.c.bf16 %v271_v19, %v270_v16  ;;  %v547_v18 = vld [vmem:[#allocation7] sm:$0xff]  ;;  %v546_v19 = vld [vmem:[#allocation6] sm:$0xff] }
  0x59   :  { %v2821_v23 = vpop.eup %2820 }
  0x5a   :  { %v2823_v25 = vpop.eup %2822  ;;  %v272_v26 = vmul.f32 %v2821_v23, %v3252_v31  ;;  %2579 = vmatmul.mubr.msk.bf16.vlgmr.msra.gmra.mxu0 %vm69_vm0, %v293_v24  ;;  %v545_v31 = vld [vmem:[#allocation5] sm:$0xff] }
  0x5b   :  { %v273_v1 = vmul.f32 %v2823_v25, %v3256_v35  ;;  %2599 = vmatpush3.bf16.msra.mxu0 %v2780_v21  ;;  %v550_v34 = vpack.c.bf16 %v545_v31, %v545_v31 }
  0x5c   :  { %2600 = vmatprep.subr.bf16.mxu0 %v3044_v0 }
  0x5d   :  { %v294_v29 = vpack.c.bf16 %v273_v1, %v272_v26 }
  0x5f   :  { %2582 = vmatprep.mubr.msk.bf16.mxu0 %vm69_vm0, %v294_v29  ;;  %2601 = vmatpush3.bf16.msra.mxu0 %v2781_v2 }
  0x60   :  { %v2825_v6 = vpop.eup %2824  ;;  %2614 = vmatprep.subr.bf16.mxu0 %v3044_v0 }
  0x61   :  { %v2827_v14 = vpop.eup %2826  ;;  %v274_v30 = vmul.f32 %v2825_v6, %v218_v51  ;;  %v2782_v6 = vld [vmem:[#allocation12 + $0x8] sm:$0xff]  }
  0x62   :  { %v275_v32 = vmul.f32 %v2827_v14, %v219_v52  ;;  %2607 = vmatpush3.bf16.msra.mxu1 %v2782_v6  ;;  %v2783_v14 = vld [vmem:[#allocation12] sm:$0xff]  }
  0x63   :  { %2608 = vmatprep.subr.bf16.mxu1 %v3044_v0 }
  0x64   :  { %v295_v33 = vpack.c.bf16 %v275_v32, %v274_v30 }
  0x66   :  { %2583 = vmatmul.mubr.msk.bf16.gmra.mxu0 %vm69_vm0, %v295_v33  ;;  %2609 = vmatpush3.bf16.msra.mxu1 %v2783_v14 }
  0x67   :  { %2602 = vmatprep.mubr.msk.bf16.mxu0 %vm3045_vm1, %v3044_v0  ;;  %2622 = vmatprep.subr.bf16.mxu1 %v3044_v0 }
  0x6e   :  { %2603 = vmatmul.mubr.msk.bf16.vlgmr.msra.gmra.mxu0 %vm69_vm0, %v550_v34 }
  0x6f   :  { %2618 = vmatprep.mubr.msk.bf16.mxu0 %vm3045_vm1, %v3044_v0 }
  0x95   :  { %v3291_v36 = vpop.permute.xlu0 %424 }
  0xe6   :  { %v3289_v35 = vpop.f32.mrf.mxu1 }
  0xe8   :  { %v473_v37 = vpop.f32.mrf.mxu1 }
  0xe9   :  { %v474_v39 = vadd.f32 %v473_v37, %v3291_v36 }
  0xea   :  { %v3327_v30 = vpop.f32.mrf.mxu1 }
  0xeb   :  { %512 = vrot.lane.b32.xlu0 %v474_v39, %s3042_s23 }
  0xec   :  { %v476_v33 = vpop.f32.mrf.mxu1 }
  0xed   :  { %v477_v31 = vadd.f32 %v476_v33, %v3291_v36 }
 0x11a   :  { %v2580_v42 = vpop.f32.mrf.mxu0 }
 0x11b   :  { %v377_v20 = vadd.f32 %v2580_v42, %v3144_v12 }
 0x11c   :  { %v368_v43 = vpop.f32.mrf.mxu0 }
 0x11d   :  { %402 = vst.msk [vmem:[#allocation3 + $0x10] sm:$0xff] %vm399_vm2, %v377_v20  ;;  %v369_v44 = vadd.f32 %v3144_v12, %v368_v43 }
 0x11e   :  { %v2581_v45 = vpop.f32.mrf.mxu0 }
 0x11f   :  { %400 = vst.msk [vmem:[#allocation3] sm:$0xff] %vm399_vm2, %v369_v44  ;;  %v380_v47 = vadd.f32 %v2581_v45, %v3144_v12 }
 0x120   :  { %v371_v48 = vpop.f32.mrf.mxu0 }
 0x121   :  { %403 = vst.msk [vmem:[#allocation3 + $0x18] sm:$0xff] %vm399_vm2, %v380_v47  ;;  %v372_v49 = vadd.f32 %v3144_v12, %v371_v48 }
 0x123   :  { %401 = vst.msk [vmem:[#allocation3 + $0x8] sm:$0xff] %vm399_vm2, %v372_v49 }
 0x126   :  { %v2584_v17 = vpop.f32.mrf.mxu0 }
 0x127   :  { %v393_v22 = vadd.f32 %v2584_v17, %v3144_v12  ;;  %v3342_v17 = vpop.f32.mrf.mxu1 }
 0x128   :  { %v384_v50 = vpop.f32.mrf.mxu0 }
 0x129   :  { %406 = vst.msk [vmem:[#allocation3 + $0x30] sm:$0xff] %vm399_vm2, %v393_v22  ;;  %v385_v51 = vadd.f32 %v3144_v12, %v384_v50  ;;  %v3344_v22 = vpop.f32.mrf.mxu1 }
 0x12a   :  { %v2585_v52 = vpop.f32.mrf.mxu0 }
 0x12b   :  { %404 = vst.msk [vmem:[#allocation3 + $0x20] sm:$0xff] %vm399_vm2, %v385_v51  ;;  %v396_v53 = vadd.f32 %v2585_v52, %v3144_v12  ;;  %v3346_v50 = vpop.f32.mrf.mxu1 }
 0x12c   :  { %v387_v38 = vpop.f32.mrf.mxu0 }
 0x12d   :  { %407 = vst.msk [vmem:[#allocation3 + $0x38] sm:$0xff] %vm399_vm2, %v396_v53  ;;  %v388_v54 = vadd.f32 %v3144_v12, %v387_v38  ;;  %v3348_v51 = vpop.f32.mrf.mxu1 }
 0x12e   :  { %v604_v55 = vpop.f32.mrf.mxu0 }
 0x12f   :  { %405 = vst.msk [vmem:[#allocation3 + $0x28] sm:$0xff] %vm399_vm2, %v388_v54 }
 0x130   :  { %v2604_v56 = vpop.f32.mrf.mxu0 }
 0x132   :  { %v607_v27 = vpop.f32.mrf.mxu0 }
 0x134   :  { %v2605_v57 = vpop.f32.mrf.mxu0 }
 0x15d   :  { %v513_v41 = vpop.permute.xlu0 %512 }
 0x15e   :  { %537 = vst.msk [vmem:[#allocation3] sm:$0xff] %vm536_vm3, %v513_v41 }
 0x165   :  { %v549_v58 = vld [vmem:[#allocation3] sm:$0xff] }
 0x166   :  { %v610_v59 = vadd.f32 %v604_v55, %v549_v58 }
 0x168   :  { %v612_v60 = vand.u32 2147483647, %v610_v59  ;;  %v611_v63 = vmin.f32 %v610_v59, 0.0  ;;  %v626_v34 = vsub.f32 0.0, %v610_v59 }
 0x16a   :  { %v613_v28 = vsub.f32 0.0, %v612_v60  ;;  %v627_v37 = vmul.f32 1.442695, %v626_v34 }
 0x16c   :  { %v614_v46 = vmul.f32 1.442695, %v613_v28 }
 0x16e   :  { %2828 = vpow2.f32 %v614_v46 }
 0x17b   :  { %v2829_v61 = vpop.eup %2828 }
 0x17c   :  { %v616_v62 = vadd.f32 1.0, %v2829_v61 }
 0x17e   :  { %2830 = vlog2.f32 %v616_v62 }
 0x17f   :  { %2832 = vtanh.f32 %v610_v59 }
 0x18b   :  { %v2831_v12 = vpop.eup %2830 }
 0x18c   :  { %v618_v3 = vmul.f32 0.6931472, %v2831_v12  ;;  %v2833_v5 = vpop.eup %2832 }
 0x18e   :  { %v619_v4 = vsub.f32 %v611_v63, %v618_v3 }
 0x190   :  { %621 = vrot.lane.b32.xlu1 %v619_v4, %s3047_s1 }
 0x194   :  { %641 = vrot.lane.b32.xlu1 %v2833_v5, %s3042_s23 }
 0x202   :  { %v622_v8 = vpop.permute.xlu1 %621 }
 0x203   :  { %v624_v9 = vadd.f32 %v622_v8, %v548_v7 }
 0x205   :  { %v3315_v10 = vmax.f32 %v610_v59, %v624_v9 }
 0x206   :  { %v642_v23 = vpop.permute.xlu1 %641 }
 0x207   :  { %v632_v11 = vsub.f32 %v610_v59, %v3315_v10  ;;  %v635_v13 = vsub.f32 %v624_v9, %v3315_v10 }
 0x209   :  { %v633_v15 = vmul.f32 1.442695, %v632_v11  ;;  %v636_v16 = vmul.f32 1.442695, %v635_v13 }
 0x20b   :  { %2834 = vpow2.f32 %v633_v15 }
 0x20c   :  { %2836 = vpow2.f32 %v636_v16 }
 0x218   :  { %v2835_v21 = vpop.eup %2834 }
 0x219   :  { %v2837_v24 = vpop.eup %2836  ;;  %v644_v25 = vmul.f32 %v2835_v21, %v642_v23  ;;  %v2785_v23 = vld [vmem:[#allocation12] sm:$0xff]  }
 0x21a   :  { %v646_v26 = vmul.f32 %v2837_v24, %v547_v18  ;;  %v638_v1 = vmul.f32 %v2837_v24, %v546_v19 }
 0x21c   :  { %v3319_v2 = vadd.f32 %v2835_v21, %v646_v26  ;;  %v3321_v29 = vadd.f32 %v644_v25, %v638_v1  ;;  %v2784_v21 = vld [vmem:[#allocation12 + $0x8] sm:$0xff]   ;;  %v482_v25 = vadd.f32 %v3289_v35, %v3291_v36 }
 0x21d   :  { %2615 = vmatpush3.bf16.msra.mxu0 %v2784_v21 }
 0x21e   :  { %2838 = vrcp.f32 %v3319_v2  ;;  %649 = vrot.lane.b32.xlu0 %v3321_v29, %s3047_s1  ;;  %2616 = vmatprep.subr.bf16.mxu0 %v3044_v0 }
 0x21f   :  { %2840 = vpow2.f32 %v627_v37 }
 0x221   :  { %2617 = vmatpush3.bf16.msra.mxu0 %v2785_v23 }
 0x222   :  { %2630 = vmatprep.subr.bf16.mxu0 %v3044_v0 }
 0x22b   :  { %v2839_v32 = vpop.eup %2838 }
 0x22c   :  { %655 = vrot.lane.b32.xlu1 %v2839_v32, %s3047_s1  ;;  %v2841_v39 = vpop.eup %2840 }
 0x22d   :  { %v629_v40 = vadd.f32 1.0, %v2841_v39 }
 0x22f   :  { %2842 = vrcp.f32 %v629_v40 }
 0x230   :  { %514 = vrot.lane.b32.xlu1 %v477_v31, %s3042_s23 }
 0x23c   :  { %v2843_v20 = vpop.eup %2842 }
 0x290   :  { %v650_v42 = vpop.permute.xlu0 %649 }
 0x291   :  { %v652_v43 = vmul.f32 %v2843_v20, %v650_v42 }
 0x29e   :  { %v656_v44 = vpop.permute.xlu1 %655 }
 0x29f   :  { %v3333_v45 = vmul.f32 %v656_v44, %v652_v43 }
 0x2a1   :  { %v666_v47 = vpack.c.bf16 %v3333_v45, %v3333_v45 }
 0x2a2   :  { %v515_v48 = vpop.permute.xlu1 %514 }
 0x2a3   :  { %538 = vst.msk [vmem:[#allocation3 + $0x8] sm:$0xff] %vm536_vm3, %v515_v48  ;;  %672 = vrot.lane.b32.xlu0 %v666_v47, %s3048_s24 }
 0x2aa   :  { %v665_v52 = vld [vmem:[#allocation3 + $0x8] sm:$0xff] }
 0x315   :  { %v673_v49 = vpop.permute.xlu0 %672 }
 0x316   :  { %2611 = vmatmul.mubr.msk.bf16.vlgmr.msra.gmra.mxu1 %vm69_vm0, %v673_v49 }
 0x317   :  { %2626 = vmatprep.mubr.msk.bf16.mxu1 %vm3045_vm1, %v3044_v0 }
 0x3d6   :  { %v723_v53 = vpop.f32.mrf.mxu1 }
 0x3d7   :  { %v729_v38 = vadd.f32 %v723_v53, %v665_v52 }
 0x3d8   :  { %v2612_v54 = vpop.f32.mrf.mxu1 }
 0x3d9   :  { %2844 = vtanh.f32 %v729_v38  ;;  %v731_v55 = vand.u32 2147483647, %v729_v38  ;;  %v730_v46 = vmin.f32 %v729_v38, 0.0  ;;  %v745_v26 = vsub.f32 0.0, %v729_v38 }
 0x3da   :  { %v726_v56 = vpop.f32.mrf.mxu1 }
 0x3db   :  { %v732_v27 = vsub.f32 0.0, %v731_v55  ;;  %v746_v1 = vmul.f32 1.442695, %v745_v26 }
 0x3dc   :  { %v2613_v57 = vpop.f32.mrf.mxu1 }
 0x3dd   :  { %v733_v41 = vmul.f32 1.442695, %v732_v27 }
 0x3df   :  { %2846 = vpow2.f32 %v733_v41 }
 0x3e6   :  { %v2845_v58 = vpop.eup %2844 }
 0x3e7   :  { %760 = vrot.lane.b32.xlu1 %v2845_v58, %s3042_s23 }
 0x3ec   :  { %v2847_v59 = vpop.eup %2846 }
 0x3ed   :  { %v735_v60 = vadd.f32 1.0, %v2847_v59 }
 0x3ef   :  { %2848 = vlog2.f32 %v735_v60 }
 0x3fc   :  { %v2849_v28 = vpop.eup %2848 }
 0x3fd   :  { %v737_v61 = vmul.f32 0.6931472, %v2849_v28 }
 0x3ff   :  { %v738_v62 = vsub.f32 %v730_v46, %v737_v61 }
 0x401   :  { %740 = vrot.lane.b32.xlu0 %v738_v62, %s3047_s1 }
 0x459   :  { %v761_v11 = vpop.permute.xlu1 %760 }
 0x473   :  { %v741_v12 = vpop.permute.xlu0 %740 }
 0x474   :  { %v743_v63 = vadd.f32 %v741_v12, %v3315_v10 }
 0x476   :  { %v3353_v3 = vmax.f32 %v729_v38, %v743_v63 }
 0x478   :  { %v751_v4 = vsub.f32 %v729_v38, %v3353_v3  ;;  %v754_v5 = vsub.f32 %v743_v63, %v3353_v3 }
 0x47a   :  { %v752_v7 = vmul.f32 1.442695, %v751_v4  ;;  %v755_v8 = vmul.f32 1.442695, %v754_v5 }
 0x47c   :  { %2850 = vpow2.f32 %v752_v7 }
 0x47d   :  { %2852 = vpow2.f32 %v755_v8  ;;  %v2786_v8 = vld [vmem:[#allocation12 + $0x8] sm:$0xff]  }
 0x47e   :  { %2623 = vmatpush3.bf16.msra.mxu1 %v2786_v8 }
 0x47f   :  { %2624 = vmatprep.subr.bf16.mxu1 %v3044_v0 }
 0x489   :  { %v2851_v9 = vpop.eup %2850 }
 0x48a   :  { %v2853_v13 = vpop.eup %2852  ;;  %v763_v15 = vmul.f32 %v2851_v9, %v761_v11 }
 0x48b   :  { %v765_v16 = vmul.f32 %v2853_v13, %v3319_v2  ;;  %v757_v18 = vmul.f32 %v2853_v13, %v3321_v29  ;;  %v485_v13 = vadd.f32 %v3327_v30, %v3291_v36 }
 0x48d   :  { %v3359_v19 = vadd.f32 %v2851_v9, %v765_v16  ;;  %v3361_v10 = vadd.f32 %v763_v15, %v757_v18  ;;  %v2787_v9 = vld [vmem:[#allocation12] sm:$0xff]  }
 0x48e   :  { %2625 = vmatpush3.bf16.msra.mxu1 %v2787_v9 }
 0x48f   :  { %2854 = vrcp.f32 %v3359_v19  ;;  %768 = vrot.lane.b32.xlu0 %v3361_v10, %s3047_s1  ;;  %2638 = vmatprep.subr.bf16.mxu1 %v3044_v0 }
 0x490   :  { %2856 = vpow2.f32 %v746_v1 }
 0x49c   :  { %v2855_v24 = vpop.eup %2854 }
 0x49d   :  { %774 = vrot.lane.b32.xlu1 %v2855_v24, %s3047_s1  ;;  %v2857_v2 = vpop.eup %2856 }
 0x49e   :  { %v748_v29 = vadd.f32 1.0, %v2857_v2 }
 0x4a0   :  { %2858 = vrcp.f32 %v748_v29 }
 0x4a1   :  { %516 = vrot.lane.b32.xlu1 %v482_v25, %s3042_s23 }
 0x4ad   :  { %v2859_v14 = vpop.eup %2858 }
 0x501   :  { %v769_v6 = vpop.permute.xlu0 %768 }
 0x502   :  { %v771_v32 = vmul.f32 %v2859_v14, %v769_v6 }
 0x50f   :  { %v775_v33 = vpop.permute.xlu1 %774 }
 0x510   :  { %v3372_v31 = vmul.f32 %v775_v33, %v771_v32 }
 0x512   :  { %v786_v34 = vpack.c.bf16 %v3372_v31, %v3372_v31 }
 0x513   :  { %v517_v37 = vpop.permute.xlu1 %516 }
 0x514   :  { %539 = vst.msk [vmem:[#allocation3 + $0x10] sm:$0xff] %vm536_vm3, %v517_v37  ;;  %792 = vrot.lane.b32.xlu0 %v786_v34, %s3048_s24 }
 0x51b   :  { %v785_v39 = vld [vmem:[#allocation3 + $0x10] sm:$0xff] }
 0x586   :  { %v793_v35 = vpop.permute.xlu0 %792 }
 0x587   :  { %2619 = vmatmul.mubr.msk.bf16.vlgmr.msra.gmra.mxu0 %vm69_vm0, %v793_v35 }
 0x588   :  { %2634 = vmatprep.mubr.msk.bf16.mxu0 %vm3045_vm1, %v3044_v0 }
 0x647   :  { %v843_v40 = vpop.f32.mrf.mxu0 }
 0x648   :  { %v849_v42 = vadd.f32 %v843_v40, %v785_v39 }
 0x649   :  { %v2620_v20 = vpop.f32.mrf.mxu0 }
 0x64a   :  { %2860 = vtanh.f32 %v849_v42  ;;  %v851_v43 = vand.u32 2147483647, %v849_v42  ;;  %v850_v55 = vmin.f32 %v849_v42, 0.0  ;;  %v865_v15 = vsub.f32 0.0, %v849_v42 }
 0x64b   :  { %v846_v44 = vpop.f32.mrf.mxu0 }
 0x64c   :  { %v852_v47 = vsub.f32 0.0, %v851_v43  ;;  %v866_v16 = vmul.f32 1.442695, %v865_v15 }
 0x64d   :  { %v2621_v48 = vpop.f32.mrf.mxu0 }
 0x64e   :  { %v853_v49 = vmul.f32 1.442695, %v852_v47 }
 0x650   :  { %2862 = vpow2.f32 %v853_v49 }
 0x657   :  { %v2861_v52 = vpop.eup %2860 }
 0x658   :  { %880 = vrot.lane.b32.xlu1 %v2861_v52, %s3042_s23 }
 0x65d   :  { %v2863_v53 = vpop.eup %2862 }
 0x65e   :  { %v855_v38 = vadd.f32 1.0, %v2863_v53 }
 0x660   :  { %2864 = vlog2.f32 %v855_v38 }
 0x66d   :  { %v2865_v54 = vpop.eup %2864 }
 0x66e   :  { %v857_v56 = vmul.f32 0.6931472, %v2865_v54 }
 0x670   :  { %v858_v27 = vsub.f32 %v850_v55, %v857_v56 }
 0x672   :  { %860 = vrot.lane.b32.xlu0 %v858_v27, %s3047_s1 }
 0x6ca   :  { %v881_v62 = vpop.permute.xlu1 %880 }
 0x6e4   :  { %v861_v57 = vpop.permute.xlu0 %860 }
 0x6e5   :  { %v863_v41 = vadd.f32 %v861_v57, %v3353_v3 }
 0x6e7   :  { %v3384_v58 = vmax.f32 %v849_v42, %v863_v41 }
 0x6e9   :  { %v871_v59 = vsub.f32 %v849_v42, %v3384_v58  ;;  %v874_v60 = vsub.f32 %v863_v41, %v3384_v58 }
 0x6eb   :  { %v872_v28 = vmul.f32 1.442695, %v871_v59  ;;  %v875_v46 = vmul.f32 1.442695, %v874_v60 }
 0x6ed   :  { %2866 = vpow2.f32 %v872_v28 }
 0x6ee   :  { %2868 = vpow2.f32 %v875_v46  ;;  %v2788_v46 = vld [vmem:[#allocation12 + $0x8] sm:$0xff]  }
 0x6ef   :  { %2631 = vmatpush3.bf16.msra.mxu0 %v2788_v46 }
 0x6f0   :  { %2632 = vmatprep.subr.bf16.mxu0 %v3044_v0 }
 0x6fa   :  { %v2867_v61 = vpop.eup %2866 }
 0x6fb   :  { %v2869_v12 = vpop.eup %2868  ;;  %v883_v63 = vmul.f32 %v2867_v61, %v881_v62 }
 0x6fc   :  { %v885_v4 = vmul.f32 %v2869_v12, %v3359_v19  ;;  %v877_v5 = vmul.f32 %v2869_v12, %v3361_v10  ;;  %v490_v12 = vadd.f32 %v3344_v22, %v3291_v36 }
 0x6fe   :  { %v3390_v7 = vadd.f32 %v2867_v61, %v885_v4  ;;  %v3392_v3 = vadd.f32 %v883_v63, %v877_v5  ;;  %v2789_v61 = vld [vmem:[#allocation12] sm:$0xff]  }
 0x6ff   :  { %2633 = vmatpush3.bf16.msra.mxu0 %v2789_v61 }
 0x700   :  { %2870 = vrcp.f32 %v3390_v7  ;;  %888 = vrot.lane.b32.xlu0 %v3392_v3, %s3047_s1  ;;  %2646 = vmatprep.subr.bf16.mxu0 %v3044_v0 }
 0x701   :  { %2872 = vpow2.f32 %v866_v16 }
 0x70d   :  { %v2871_v11 = vpop.eup %2870 }
 0x70e   :  { %894 = vrot.lane.b32.xlu1 %v2871_v11, %s3047_s1  ;;  %v2873_v18 = vpop.eup %2872 }
 0x70f   :  { %v868_v19 = vadd.f32 1.0, %v2873_v18 }
 0x711   :  { %2874 = vrcp.f32 %v868_v19 }
 0x712   :  { %518 = vrot.lane.b32.xlu1 %v485_v13, %s3042_s23 }
 0x71e   :  { %v2875_v21 = vpop.eup %2874 }
 0x772   :  { %v889_v10 = vpop.permute.xlu0 %888 }
 0x773   :  { %v891_v23 = vmul.f32 %v2875_v21, %v889_v10 }
 0x780   :  { %v895_v24 = vpop.permute.xlu1 %894 }
 0x781   :  { %v3403_v25 = vmul.f32 %v895_v24, %v891_v23 }
 0x783   :  { %v906_v26 = vpack.c.bf16 %v3403_v25, %v3403_v25 }
 0x784   :  { %v519_v1 = vpop.permute.xlu1 %518 }
 0x785   :  { %540 = vst.msk [vmem:[#allocation3 + $0x18] sm:$0xff] %vm536_vm3, %v519_v1  ;;  %912 = vrot.lane.b32.xlu0 %v906_v26, %s3048_s24 }
 0x78c   :  { %v905_v2 = vld [vmem:[#allocation3 + $0x18] sm:$0xff] }
 0x7f7   :  { %v913_v30 = vpop.permute.xlu0 %912 }
 0x7f8   :  { %2627 = vmatmul.mubr.msk.bf16.vlgmr.msra.gmra.mxu1 %vm69_vm0, %v913_v30 }
 0x7f9   :  { %2642 = vmatprep.mubr.msk.bf16.mxu1 %vm3045_vm1, %v3044_v0 }
 0x8b8   :  { %v963_v29 = vpop.f32.mrf.mxu1 }
 0x8b9   :  { %v969_v6 = vadd.f32 %v963_v29, %v905_v2 }
 0x8ba   :  { %v2628_v14 = vpop.f32.mrf.mxu1 }
 0x8bb   :  { %2876 = vtanh.f32 %v969_v6  ;;  %v971_v32 = vand.u32 2147483647, %v969_v6  ;;  %v970_v43 = vmin.f32 %v969_v6, 0.0  ;;  %v985_v63 = vsub.f32 0.0, %v969_v6 }
 0x8bc   :  { %v966_v33 = vpop.f32.mrf.mxu1 }
 0x8bd   :  { %v972_v34 = vsub.f32 0.0, %v971_v32  ;;  %v986_v4 = vmul.f32 1.442695, %v985_v63 }
 0x8be   :  { %v2629_v37 = vpop.f32.mrf.mxu1 }
 0x8bf   :  { %v973_v35 = vmul.f32 1.442695, %v972_v34 }
 0x8c1   :  { %2878 = vpow2.f32 %v973_v35 }
 0x8c8   :  { %v2877_v39 = vpop.eup %2876 }
 0x8c9   :  { %1000 = vrot.lane.b32.xlu1 %v2877_v39, %s3042_s23 }
 0x8ce   :  { %v2879_v40 = vpop.eup %2878 }
 0x8cf   :  { %v975_v42 = vadd.f32 1.0, %v2879_v40 }
 0x8d1   :  { %2880 = vlog2.f32 %v975_v42 }
 0x8de   :  { %v2881_v20 = vpop.eup %2880 }
 0x8df   :  { %v977_v44 = vmul.f32 0.6931472, %v2881_v20 }
 0x8e1   :  { %v978_v47 = vsub.f32 %v970_v43, %v977_v44 }
 0x8e3   :  { %980 = vrot.lane.b32.xlu0 %v978_v47, %s3047_s1 }
 0x93b   :  { %v1001_v27 = vpop.permute.xlu1 %1000 }
 0x955   :  { %v981_v48 = vpop.permute.xlu0 %980 }
 0x956   :  { %v983_v49 = vadd.f32 %v981_v48, %v3384_v58 }
 0x958   :  { %v3415_v52 = vmax.f32 %v969_v6, %v983_v49 }
 0x95a   :  { %v991_v53 = vsub.f32 %v969_v6, %v3415_v52  ;;  %v994_v38 = vsub.f32 %v983_v49, %v3415_v52 }
 0x95c   :  { %v992_v54 = vmul.f32 1.442695, %v991_v53  ;;  %v995_v55 = vmul.f32 1.442695, %v994_v38 }
 0x95e   :  { %2882 = vpow2.f32 %v992_v54 }
 0x95f   :  { %2884 = vpow2.f32 %v995_v55  ;;  %v2790_v55 = vld [vmem:[#allocation12 + $0x8] sm:$0xff]  }
 0x960   :  { %2639 = vmatpush3.bf16.msra.mxu1 %v2790_v55 }
 0x961   :  { %2640 = vmatprep.subr.bf16.mxu1 %v3044_v0 }
 0x96b   :  { %v2883_v56 = vpop.eup %2882 }
 0x96c   :  { %v2885_v57 = vpop.eup %2884  ;;  %v1003_v41 = vmul.f32 %v2883_v56, %v1001_v27 }
 0x96d   :  { %v1005_v59 = vmul.f32 %v2885_v57, %v3390_v7  ;;  %v997_v60 = vmul.f32 %v2885_v57, %v3392_v3  ;;  %v493_v57 = vadd.f32 %v3348_v51, %v3291_v36 }
 0x96f   :  { %v3421_v28 = vadd.f32 %v2883_v56, %v1005_v59  ;;  %v3423_v58 = vadd.f32 %v1003_v41, %v997_v60  ;;  %v2791_v56 = vld [vmem:[#allocation12] sm:$0xff]  }
 0x970   :  { %2641 = vmatpush3.bf16.msra.mxu1 %v2791_v56 }
 0x971   :  { %2886 = vrcp.f32 %v3421_v28  ;;  %1008 = vrot.lane.b32.xlu0 %v3423_v58, %s3047_s1  ;;  %2654 = vmatprep.subr.bf16.mxu1 %v3044_v0 }
 0x972   :  { %2888 = vpow2.f32 %v986_v4 }
 0x97e   :  { %v2887_v62 = vpop.eup %2886 }
 0x97f   :  { %1014 = vrot.lane.b32.xlu1 %v2887_v62, %s3047_s1  ;;  %v2889_v5 = vpop.eup %2888 }
 0x980   :  { %v988_v7 = vadd.f32 1.0, %v2889_v5 }
 0x982   :  { %2890 = vrcp.f32 %v988_v7 }
 0x983   :  { %520 = vrot.lane.b32.xlu1 %v490_v12, %s3042_s23 }
 0x98f   :  { %v2891_v8 = vpop.eup %2890 }
 0x9e3   :  { %v1009_v3 = vpop.permute.xlu0 %1008 }
 0x9e4   :  { %v1011_v9 = vmul.f32 %v2891_v8, %v1009_v3 }
 0x9f1   :  { %v1015_v11 = vpop.permute.xlu1 %1014 }
 0x9f2   :  { %v3434_v13 = vmul.f32 %v1015_v11, %v1011_v9 }
 0x9f4   :  { %v1026_v15 = vpack.c.bf16 %v3434_v13, %v3434_v13 }
 0x9f5   :  { %v521_v16 = vpop.permute.xlu1 %520 }
 0x9f6   :  { %541 = vst.msk [vmem:[#allocation3 + $0x20] sm:$0xff] %vm536_vm3, %v521_v16  ;;  %1032 = vrot.lane.b32.xlu0 %v1026_v15, %s3048_s24 }
 0x9fd   :  { %v1025_v18 = vld [vmem:[#allocation3 + $0x20] sm:$0xff] }
 0xa68   :  { %v1033_v22 = vpop.permute.xlu0 %1032 }
 0xa69   :  { %2635 = vmatmul.mubr.msk.bf16.vlgmr.msra.gmra.mxu0 %vm69_vm0, %v1033_v22 }
 0xa6a   :  { %2650 = vmatprep.mubr.msk.bf16.mxu0 %vm3045_vm1, %v3044_v0 }
 0xb29   :  { %v1083_v19 = vpop.f32.mrf.mxu0 }
 0xb2a   :  { %v1089_v10 = vadd.f32 %v1083_v19, %v1025_v18 }
 0xb2b   :  { %v2636_v21 = vpop.f32.mrf.mxu0 }
 0xb2c   :  { %2892 = vtanh.f32 %v1089_v10  ;;  %v1091_v23 = vand.u32 2147483647, %v1089_v10  ;;  %v1090_v32 = vmin.f32 %v1089_v10, 0.0  ;;  %v1105_v41 = vsub.f32 0.0, %v1089_v10 }
 0xb2d   :  { %v1086_v24 = vpop.f32.mrf.mxu0 }
 0xb2e   :  { %v1092_v26 = vsub.f32 0.0, %v1091_v23  ;;  %v1106_v59 = vmul.f32 1.442695, %v1105_v41 }
 0xb2f   :  { %v2637_v1 = vpop.f32.mrf.mxu0 }
 0xb30   :  { %v1093_v30 = vmul.f32 1.442695, %v1092_v26 }
 0xb32   :  { %2894 = vpow2.f32 %v1093_v30 }
 0xb39   :  { %v2893_v2 = vpop.eup %2892 }
 0xb3a   :  { %1120 = vrot.lane.b32.xlu1 %v2893_v2, %s3042_s23 }
 0xb3f   :  { %v2895_v29 = vpop.eup %2894 }
 0xb40   :  { %v1095_v6 = vadd.f32 1.0, %v2895_v29 }
 0xb42   :  { %2896 = vlog2.f32 %v1095_v6 }
 0xb4f   :  { %v2897_v14 = vpop.eup %2896 }
 0xb50   :  { %v1097_v33 = vmul.f32 0.6931472, %v2897_v14 }
 0xb52   :  { %v1098_v34 = vsub.f32 %v1090_v32, %v1097_v33 }
 0xb54   :  { %1100 = vrot.lane.b32.xlu0 %v1098_v34, %s3047_s1 }
 0xbac   :  { %v1121_v47 = vpop.permute.xlu1 %1120 }
 0xbc6   :  { %v1101_v37 = vpop.permute.xlu0 %1100 }
 0xbc7   :  { %v1103_v35 = vadd.f32 %v1101_v37, %v3415_v52 }
 0xbc9   :  { %v3446_v39 = vmax.f32 %v1089_v10, %v1103_v35 }
 0xbcb   :  { %v1111_v40 = vsub.f32 %v1089_v10, %v3446_v39  ;;  %v1114_v42 = vsub.f32 %v1103_v35, %v3446_v39 }
 0xbcd   :  { %v1112_v20 = vmul.f32 1.442695, %v1111_v40  ;;  %v1115_v43 = vmul.f32 1.442695, %v1114_v42 }
 0xbcf   :  { %2898 = vpow2.f32 %v1112_v20 }
 0xbd0   :  { %2900 = vpow2.f32 %v1115_v43  ;;  %v2792_v43 = vld [vmem:[#allocation12 + $0x8] sm:$0xff]  }
 0xbd1   :  { %2647 = vmatpush3.bf16.msra.mxu0 %v2792_v43 }
 0xbd2   :  { %2648 = vmatprep.subr.bf16.mxu0 %v3044_v0 }
 0xbdc   :  { %v2899_v44 = vpop.eup %2898 }
 0xbdd   :  { %v2901_v48 = vpop.eup %2900  ;;  %v1123_v49 = vmul.f32 %v2899_v44, %v1121_v47 }
 0xbde   :  { %v1125_v53 = vmul.f32 %v2901_v48, %v3421_v28  ;;  %v1117_v38 = vmul.f32 %v2901_v48, %v3423_v58  ;;  %v498_v48 = vadd.f32 %v3342_v17, %v3291_v36 }
 0xbe0   :  { %v3452_v54 = vadd.f32 %v2899_v44, %v1125_v53  ;;  %v3454_v52 = vadd.f32 %v1123_v49, %v1117_v38  ;;  %v2793_v44 = vld [vmem:[#allocation12] sm:$0xff]  }
 0xbe1   :  { %2649 = vmatpush3.bf16.msra.mxu0 %v2793_v44 }
 0xbe2   :  { %2902 = vrcp.f32 %v3452_v54  ;;  %1128 = vrot.lane.b32.xlu0 %v3454_v52, %s3047_s1 }
 0xbe3   :  { %2904 = vpow2.f32 %v1106_v59 }
 0xbef   :  { %v2903_v27 = vpop.eup %2902 }
 0xbf0   :  { %1134 = vrot.lane.b32.xlu1 %v2903_v27, %s3047_s1  ;;  %v2905_v60 = vpop.eup %2904 }
 0xbf1   :  { %v1108_v28 = vadd.f32 1.0, %v2905_v60 }
 0xbf3   :  { %2906 = vrcp.f32 %v1108_v28 }
 0xbf4   :  { %522 = vrot.lane.b32.xlu1 %v493_v57, %s3042_s23 }
 0xc00   :  { %v2907_v46 = vpop.eup %2906 }
 0xc54   :  { %v1129_v58 = vpop.permute.xlu0 %1128 }
 0xc55   :  { %v1131_v61 = vmul.f32 %v2907_v46, %v1129_v58 }
 0xc62   :  { %v1135_v62 = vpop.permute.xlu1 %1134 }
 0xc63   :  { %v3465_v12 = vmul.f32 %v1135_v62, %v1131_v61 }
 0xc65   :  { %v1146_v63 = vpack.c.bf16 %v3465_v12, %v3465_v12 }
 0xc66   :  { %v523_v4 = vpop.permute.xlu1 %522 }
 0xc67   :  { %542 = vst.msk [vmem:[#allocation3 + $0x28] sm:$0xff] %vm536_vm3, %v523_v4  ;;  %1152 = vrot.lane.b32.xlu0 %v1146_v63, %s3048_s24 }
 0xc6e   :  { %v1145_v5 = vld [vmem:[#allocation3 + $0x28] sm:$0xff] }
 0xcd9   :  { %v1153_v51 = vpop.permute.xlu0 %1152 }
 0xcda   :  { %2643 = vmatmul.mubr.msk.bf16.vlgmr.msra.gmra.mxu1 %vm69_vm0, %v1153_v51 }
 0xcdb   :  { %2658 = vmatprep.mubr.msk.bf16.mxu1 %vm3045_vm1, %v3044_v0 }
 0xd9a   :  { %v1203_v7 = vpop.f32.mrf.mxu1 }
 0xd9b   :  { %v1209_v3 = vadd.f32 %v1203_v7, %v1145_v5 }
 0xd9c   :  { %v2644_v8 = vpop.f32.mrf.mxu1 }
 0xd9d   :  { %2908 = vtanh.f32 %v1209_v3  ;;  %v1211_v9 = vand.u32 2147483647, %v1209_v3  ;;  %v1210_v23 = vmin.f32 %v1209_v3, 0.0  ;;  %v1225_v49 = vsub.f32 0.0, %v1209_v3 }
 0xd9e   :  { %v1206_v11 = vpop.f32.mrf.mxu1 }
 0xd9f   :  { %v1212_v15 = vsub.f32 0.0, %v1211_v9  ;;  %v1226_v53 = vmul.f32 1.442695, %v1225_v49 }
 0xda0   :  { %v2645_v16 = vpop.f32.mrf.mxu1 }
 0xda1   :  { %v1213_v22 = vmul.f32 1.442695, %v1212_v15 }
 0xda3   :  { %2910 = vpow2.f32 %v1213_v22 }
 0xdaa   :  { %v2909_v18 = vpop.eup %2908 }
 0xdab   :  { %1240 = vrot.lane.b32.xlu1 %v2909_v18, %s3042_s23 }
 0xdb0   :  { %v2911_v19 = vpop.eup %2910 }
 0xdb1   :  { %v1215_v10 = vadd.f32 1.0, %v2911_v19 }
 0xdb3   :  { %2912 = vlog2.f32 %v1215_v10 }
 0xdc0   :  { %v2913_v21 = vpop.eup %2912 }
 0xdc1   :  { %v1217_v24 = vmul.f32 0.6931472, %v2913_v21 }
 0xdc3   :  { %v1218_v26 = vsub.f32 %v1210_v23, %v1217_v24 }
 0xdc5   :  { %1220 = vrot.lane.b32.xlu0 %v1218_v26, %s3047_s1 }
 0xe1d   :  { %v1241_v34 = vpop.permute.xlu1 %1240 }
 0xe37   :  { %v1221_v1 = vpop.permute.xlu0 %1220 }
 0xe38   :  { %v1223_v30 = vadd.f32 %v1221_v1, %v3446_v39 }
 0xe3a   :  { %v3477_v2 = vmax.f32 %v1209_v3, %v1223_v30 }
 0xe3c   :  { %v1231_v29 = vsub.f32 %v1209_v3, %v3477_v2  ;;  %v1234_v6 = vsub.f32 %v1223_v30, %v3477_v2 }
 0xe3e   :  { %v1232_v14 = vmul.f32 1.442695, %v1231_v29  ;;  %v1235_v32 = vmul.f32 1.442695, %v1234_v6 }
 0xe40   :  { %2914 = vpow2.f32 %v1232_v14 }
 0xe41   :  { %2916 = vpow2.f32 %v1235_v32  ;;  %v2794_v32 = vld [vmem:[#allocation12 + $0x8] sm:$0xff]  }
 0xe42   :  { %2655 = vmatpush3.bf16.msra.mxu1 %v2794_v32 }
 0xe43   :  { %2656 = vmatprep.subr.bf16.mxu1 %v3044_v0 }
 0xe4d   :  { %v2915_v33 = vpop.eup %2914 }
 0xe4e   :  { %v2917_v37 = vpop.eup %2916  ;;  %v1243_v35 = vmul.f32 %v2915_v33, %v1241_v34 }
 0xe4f   :  { %v1245_v40 = vmul.f32 %v2917_v37, %v3452_v54  ;;  %v1237_v42 = vmul.f32 %v2917_v37, %v3454_v52  ;;  %v501_v37 = vadd.f32 %v3346_v50, %v3291_v36 }
 0xe51   :  { %v3483_v20 = vadd.f32 %v2915_v33, %v1245_v40  ;;  %v3485_v39 = vadd.f32 %v1243_v35, %v1237_v42  ;;  %v2795_v33 = vld [vmem:[#allocation12] sm:$0xff]  }
 0xe52   :  { %2657 = vmatpush3.bf16.msra.mxu1 %v2795_v33 }
 0xe53   :  { %2918 = vrcp.f32 %v3483_v20  ;;  %1248 = vrot.lane.b32.xlu0 %v3485_v39, %s3047_s1 }
 0xe54   :  { %2920 = vpow2.f32 %v1226_v53 }
 0xe60   :  { %v2919_v47 = vpop.eup %2918 }
 0xe61   :  { %1254 = vrot.lane.b32.xlu1 %v2919_v47, %s3047_s1  ;;  %v2921_v38 = vpop.eup %2920 }
 0xe62   :  { %v1228_v54 = vadd.f32 1.0, %v2921_v38 }
 0xe64   :  { %2922 = vrcp.f32 %v1228_v54 }
 0xe65   :  { %524 = vrot.lane.b32.xlu1 %v498_v48, %s3042_s23 }
 0xe71   :  { %v2923_v55 = vpop.eup %2922 }
 0xec5   :  { %v1249_v52 = vpop.permute.xlu0 %1248 }
 0xec6   :  { %v1251_v56 = vmul.f32 %v2923_v55, %v1249_v52 }
 0xed3   :  { %v1255_v27 = vpop.permute.xlu1 %1254 }
 0xed4   :  { %v3495_v57 = vmul.f32 %v1255_v27, %v1251_v56 }
 0xed6   :  { %v1266_v41 = vpack.c.bf16 %v3495_v57, %v3495_v57 }
 0xed7   :  { %v525_v59 = vpop.permute.xlu1 %524 }
 0xed8   :  { %543 = vst.msk [vmem:[#allocation3 + $0x30] sm:$0xff] %vm536_vm3, %v525_v59  ;;  %1272 = vrot.lane.b32.xlu0 %v1266_v41, %s3048_s24 }
 0xedf   :  { %v1265_v60 = vld [vmem:[#allocation3 + $0x30] sm:$0xff] }
 0xf4a   :  { %v1273_v17 = vpop.permute.xlu0 %1272 }
 0xf4b   :  { %2651 = vmatmul.mubr.msk.bf16.vlgmr.msra.gmra.mxu0 %vm69_vm0, %v1273_v17 }
0x100b   :  { %v1323_v28 = vpop.f32.mrf.mxu0 }
0x100c   :  { %v1329_v58 = vadd.f32 %v1323_v28, %v1265_v60 }
0x100d   :  { %v2652_v46 = vpop.f32.mrf.mxu0 }
0x100e   :  { %2924 = vtanh.f32 %v1329_v58  ;;  %v1331_v61 = vand.u32 2147483647, %v1329_v58  ;;  %v1330_v9 = vmin.f32 %v1329_v58, 0.0  ;;  %v1345_v35 = vsub.f32 0.0, %v1329_v58 }
0x100f   :  { %v1326_v62 = vpop.f32.mrf.mxu0 }
0x1010   :  { %v1332_v63 = vsub.f32 0.0, %v1331_v61  ;;  %v1346_v40 = vmul.f32 1.442695, %v1345_v35 }
0x1011   :  { %v2653_v4 = vpop.f32.mrf.mxu0 }
0x1012   :  { %v1333_v51 = vmul.f32 1.442695, %v1332_v63 }
0x1014   :  { %2926 = vpow2.f32 %v1333_v51 }
0x101b   :  { %v2925_v5 = vpop.eup %2924 }
0x101c   :  { %1360 = vrot.lane.b32.xlu1 %v2925_v5, %s3042_s23 }
0x1021   :  { %v2927_v7 = vpop.eup %2926 }
0x1022   :  { %v1335_v3 = vadd.f32 1.0, %v2927_v7 }
0x1024   :  { %2928 = vlog2.f32 %v1335_v3 }
0x1031   :  { %v2929_v8 = vpop.eup %2928 }
0x1032   :  { %v1337_v11 = vmul.f32 0.6931472, %v2929_v8 }
0x1034   :  { %v1338_v15 = vsub.f32 %v1330_v9, %v1337_v11 }
0x1036   :  { %1340 = vrot.lane.b32.xlu0 %v1338_v15, %s3047_s1 }
0x108e   :  { %v1361_v26 = vpop.permute.xlu1 %1360 }
0x10a8   :  { %v1341_v16 = vpop.permute.xlu0 %1340 }
0x10a9   :  { %v1343_v22 = vadd.f32 %v1341_v16, %v3477_v2 }
0x10ab   :  { %v3505_v18 = vmax.f32 %v1329_v58, %v1343_v22 }
0x10ad   :  { %v1351_v19 = vsub.f32 %v1329_v58, %v3505_v18  ;;  %v1354_v10 = vsub.f32 %v1343_v22, %v3505_v18 }
0x10af   :  { %v1352_v21 = vmul.f32 1.442695, %v1351_v19  ;;  %v1355_v23 = vmul.f32 1.442695, %v1354_v10  ;;  %v3551_v10 = vld [vmem:[%s3750_s8 + $0x18] sm:$0xff] }
0x10b0   :  { %2662 = vmatprep.subr.mxu0 %v3551_v10 }
0x10b1   :  { %2930 = vpow2.f32 %v1352_v21  ;;  %v3557_v21 = vld [vmem:[%s3750_s8 + $0x10] sm:$0xff]  ;;  %2663 = vmatpush3.msra.mxu0 %v3551_v10 }
0x10b2   :  { %2932 = vpow2.f32 %v1355_v23  ;;  %2664 = vmatprep.subr.mxu0 %v3557_v21  ;;  %v3573_v23 = vld [vmem:[%s3750_s8] sm:$0xff] }
0x10b3   :  { %2665 = vmatpush3.msra.mxu0 %v3557_v21 }
0x10be   :  { %v2931_v24 = vpop.eup %2930 }
0x10bf   :  { %v2933_v1 = vpop.eup %2932  ;;  %v1363_v30 = vmul.f32 %v2931_v24, %v1361_v26 }
0x10c0   :  { %v1365_v29 = vmul.f32 %v2933_v1, %v3483_v20  ;;  %v1357_v6 = vmul.f32 %v2933_v1, %v3485_v39 }
0x10c2   :  { %v3511_v14 = vadd.f32 %v2931_v24, %v1365_v29  ;;  %v3513_v2 = vadd.f32 %v1363_v30, %v1357_v6 }
0x10c4   :  { %2934 = vrcp.f32 %v3511_v14  ;;  %1368 = vrot.lane.b32.xlu0 %v3513_v2, %s3047_s1 }
0x10c5   :  { %2936 = vpow2.f32 %v1346_v40 }
0x10d1   :  { %v2935_v34 = vpop.eup %2934 }
0x10d2   :  { %1374 = vrot.lane.b32.xlu1 %v2935_v34, %s3047_s1  ;;  %v2937_v42 = vpop.eup %2936 }
0x10d3   :  { %v1348_v20 = vadd.f32 1.0, %v2937_v42 }
0x10d5   :  { %2938 = vrcp.f32 %v1348_v20 }
0x10d6   :  { %526 = vrot.lane.b32.xlu1 %v501_v37, %s3042_s23 }
0x10e2   :  { %v2939_v43 = vpop.eup %2938 }
0x1136   :  { %v1369_v39 = vpop.permute.xlu0 %1368 }
0x1137   :  { %v1371_v44 = vmul.f32 %v2939_v43, %v1369_v39 }
0x1144   :  { %v1375_v47 = vpop.permute.xlu1 %1374 }
0x1145   :  { %v3523_v0 = vmul.f32 %v1375_v47, %v1371_v44  ;;  %v3620_v47 = vld [vmem:[%s3751_s9] sm:$0xf] }
0x1146   :  { %2682 = vmatprep.subr.msk.mxu1 %vm1675_vm4, %v3620_v47 }
0x1147   :  { %v1386_v48 = vpack.c.bf16 %v3523_v0, %v3523_v0 }
0x1148   :  { %v527_v49 = vpop.permute.xlu1 %526 }
0x1149   :  { %544 = vst.msk [vmem:[#allocation3 + $0x38] sm:$0xff] %vm536_vm3, %v527_v49  ;;  %1392 = vrot.lane.b32.xlu0 %v1386_v48, %s3048_s24 }
0x1150   :  { %v1385_v50 = vld [vmem:[#allocation3 + $0x38] sm:$0xff] }
0x11bb   :  { %v1393_v36 = vpop.permute.xlu0 %1392 }
0x11bc   :  { %2659 = vmatmul.mubr.msk.bf16.vlgmr.msra.gmra.mxu1 %vm69_vm0, %v1393_v36 }
0x11bd   :  { %2683 = vmatpush3.msk.msra.mxu1 %vm1675_vm4, %v3620_v47 }
0x11be   :  { %2716 = vmatprep.subr.msk.mxu1 %vm1675_vm4, %v3620_v47 }
0x127c   :  { %v1443_v53 = vpop.f32.mrf.mxu1 }
0x127d   :  { %v3530_v38 = vadd.f32 %v1443_v53, %v1385_v50 }
0x127e   :  { %v2660_v54 = vpop.f32.mrf.mxu1 }
0x127f   :  { %2940 = vtanh.f32 %v3530_v38  ;;  %v1451_v52 = vand.u32 2147483647, %v3530_v38  ;;  %v1450_v58 = vmin.f32 %v3530_v38, 0.0 }
0x1280   :  { %v1446_v55 = vpop.f32.mrf.mxu1 }
0x1281   :  { %v1452_v56 = vsub.f32 0.0, %v1451_v52 }
0x1282   :  { %v2661_v27 = vpop.f32.mrf.mxu1 }
0x1283   :  { %v1453_v41 = vmul.f32 1.442695, %v1452_v56 }
0x1285   :  { %2942 = vpow2.f32 %v1453_v41 }
0x128c   :  { %v2941_v59 = vpop.eup %2940 }
0x128d   :  { %1480 = vrot.lane.b32.xlu1 %v2941_v59, %s3042_s23 }
0x1292   :  { %v2943_v17 = vpop.eup %2942 }
0x1293   :  { %v1455_v60 = vadd.f32 1.0, %v2943_v17 }
0x1295   :  { %2944 = vlog2.f32 %v1455_v60 }
0x12a2   :  { %v2945_v28 = vpop.eup %2944 }
0x12a3   :  { %v1457_v46 = vmul.f32 0.6931472, %v2945_v28 }
0x12a5   :  { %v1458_v61 = vsub.f32 %v1450_v58, %v1457_v46 }
0x12a7   :  { %1460 = vrot.lane.b32.xlu0 %v1458_v61, %s3047_s1 }
0x12ff   :  { %v1481_v9 = vpop.permute.xlu1 %1480 }
0x1319   :  { %v1461_v62 = vpop.permute.xlu0 %1460 }
0x131a   :  { %v1463_v63 = vadd.f32 %v1461_v62, %v3505_v18 }
0x131c   :  { %v1464_v4 = vmax.f32 %v3530_v38, %v1463_v63 }
0x131e   :  { %v1471_v51 = vsub.f32 %v3530_v38, %v1464_v4  ;;  %v1474_v5 = vsub.f32 %v1463_v63, %v1464_v4  ;;  %1507 = vst.msk [vmem:[#allocation8] sm:$0xff] %vm69_vm0, %v1464_v4 }
0x1320   :  { %v1472_v7 = vmul.f32 1.442695, %v1471_v51  ;;  %v1475_v3 = vmul.f32 1.442695, %v1474_v5 }
0x1322   :  { %2946 = vpow2.f32 %v1472_v7 }
0x1323   :  { %2948 = vpow2.f32 %v1475_v3 }
0x132f   :  { %v2947_v8 = vpop.eup %2946 }
0x1330   :  { %v2949_v11 = vpop.eup %2948  ;;  %v1483_v15 = vmul.f32 %v2947_v8, %v1481_v9 }
0x1331   :  { %v1485_v16 = vmul.f32 %v2949_v11, %v3511_v14  ;;  %v1477_v22 = vmul.f32 %v2949_v11, %v3513_v2 }
0x1333   :  { %v1486_v18 = vadd.f32 %v2947_v8, %v1485_v16  ;;  %v1484_v19 = vadd.f32 %v1483_v15, %v1477_v22 }
0x1335   :  { %2950 = vrcp.f32 %v1486_v18  ;;  %1506 = vst.msk [vmem:[#allocation7] sm:$0xff] %vm69_vm0, %v1486_v18  ;;  %1488 = vrot.lane.b32.xlu0 %v1484_v19, %s3047_s1  ;;  %1505 = vst.msk [vmem:[#allocation6] sm:$0xff] %vm69_vm0, %v1484_v19 }
0x1339   :  { %660 = vrot.lane.b32.xlu0 %v3333_v45, %s3048_s24  ;;  %v3567_v45 = vld [vmem:[%s3750_s8 + $0x8] sm:$0xff] }
0x133a   :  { %2666 = vmatprep.subr.mxu0 %v3567_v45 }
0x133b   :  { %2667 = vmatpush3.msra.mxu0 %v3567_v45 }
0x133c   :  { %2668 = vmatprep.subr.mxu0 %v3573_v23 }
0x133d   :  { %899 = vrot.lane.b32.xlu0 %v3403_v25, %s3048_s24  ;;  %2669 = vmatpush3.msra.mxu0 %v3573_v23 }
0x133e   :  { %2696 = vmatprep.subr.mxu0 %v3551_v10 }
0x1341   :  { %1139 = vrot.lane.b32.xlu0 %v3465_v12, %s3048_s24  ;;  %v1465_v12 = vsub.f32 0.0, %v3530_v38 }
0x1342   :  { %v2951_v25 = vpop.eup %2950 }
0x1343   :  { %1494 = vrot.lane.b32.xlu1 %v2951_v25, %s3047_s1  ;;  %v1466_v24 = vmul.f32 1.442695, %v1465_v12 }
0x1345   :  { %1379 = vrot.lane.b32.xlu0 %v3523_v0, %s3048_s24  ;;  %2952 = vpow2.f32 %v1466_v24 }
0x1347   :  { %779 = vrot.lane.b32.xlu1 %v3372_v31, %s3048_s24 }
0x134b   :  { %1019 = vrot.lane.b32.xlu1 %v3434_v13, %s3048_s24 }
0x134f   :  { %1259 = vrot.lane.b32.xlu1 %v3495_v57, %s3048_s24 }
0x1352   :  { %v2953_v26 = vpop.eup %2952 }
0x1353   :  { %v1468_v1 = vadd.f32 1.0, %v2953_v26 }
0x1355   :  { %2954 = vrcp.f32 %v1468_v1 }
0x1362   :  { %v2955_v31 = vpop.eup %2954 }
0x13a7   :  { %v1489_v30 = vpop.permute.xlu0 %1488 }
0x13a8   :  { %v1491_v2 = vmul.f32 %v2955_v31, %v1489_v30 }
0x13ab   :  { %v661_v29 = vpop.permute.xlu0 %660 }
0x13ac   :  { %663 = vst.msk [vmem:[#allocation4] sm:$0xff] %vm69_vm0, %v661_v29 }
0x13af   :  { %v900_v6 = vpop.permute.xlu0 %899 }
0x13b0   :  { %903 = vst.msk [vmem:[#allocation4 + $0x10] sm:$0xff] %vm69_vm0, %v900_v6 }
0x13b3   :  { %v1140_v14 = vpop.permute.xlu0 %1139  ;;  %v3593_v13 = vld [vmem:[#allocation4] sm:$0xff] }
0x13b4   :  { %1143 = vst.msk [vmem:[#allocation4 + $0x20] sm:$0xff] %vm69_vm0, %v1140_v14  ;;  %2670 = vmatprep.mubr.msk.f32.mxu0 %vm69_vm0, %v3593_v13 }
0x13b5   :  { %v1495_v57 = vpop.permute.xlu1 %1494 }
0x13b6   :  { %v1497_v32 = vmul.f32 %v1495_v57, %v1491_v2 }
0x13b7   :  { %v1380_v33 = vpop.permute.xlu0 %1379  ;;  %v1510_v42 = vld [vmem:[#allocation4 + $0x10] sm:$0xff] }
0x13b8   :  { %1383 = vst.msk [vmem:[#allocation4 + $0x30] sm:$0xff] %vm69_vm0, %v1380_v33  ;;  %1499 = vrot.lane.b32.xlu1 %v1497_v32, %s3048_s24 }
0x13b9   :  { %v780_v34 = vpop.permute.xlu1 %779 }
0x13ba   :  { %783 = vst.msk [vmem:[#allocation4 + $0x8] sm:$0xff] %vm69_vm0, %v780_v34 }
0x13bb   :  { %v1512_v39 = vld [vmem:[#allocation4 + $0x20] sm:$0xff] }
0x13bd   :  { %v1020_v37 = vpop.permute.xlu1 %1019 }
0x13be   :  { %1023 = vst.msk [vmem:[#allocation4 + $0x18] sm:$0xff] %vm69_vm0, %v1020_v37 }
0x13bf   :  { %v1514_v44 = vld [vmem:[#allocation4 + $0x30] sm:$0xff] }
0x13c1   :  { %v1260_v35 = vpop.permute.xlu1 %1259  ;;  %v1509_v40 = vld [vmem:[#allocation4 + $0x8] sm:$0xff] }
0x13c2   :  { %1263 = vst.msk [vmem:[#allocation4 + $0x28] sm:$0xff] %vm69_vm0, %v1260_v35  ;;  %2671 = vmatmul.mubr.msk.f32.vlgmr.msra.gmra.mxu0 %vm69_vm0, %v1509_v40 }
0x13c3   :  { %2673 = vmatprep.mubr.msk.f32.mxu0 %vm69_vm0, %v1510_v42  ;;  %2697 = vmatpush3.msra.mxu0 %v3551_v10 }
0x13c4   :  { %2698 = vmatprep.subr.mxu0 %v3557_v21 }
0x13c5   :  { %v1511_v20 = vld [vmem:[#allocation4 + $0x18] sm:$0xff]  ;;  %2699 = vmatpush3.msra.mxu0 %v3557_v21 }
0x13c6   :  { %2674 = vmatmul.mubr.msk.f32.gmra.mxu0 %vm69_vm0, %v1511_v20  ;;  %2700 = vmatprep.subr.mxu0 %v3567_v45 }
0x13c7   :  { %2676 = vmatprep.mubr.msk.f32.mxu0 %vm69_vm0, %v1512_v39  ;;  %2701 = vmatpush3.msra.mxu0 %v3567_v45 }
0x13c8   :  { %2702 = vmatprep.subr.mxu0 %v3573_v23 }
0x13c9   :  { %v1513_v43 = vld [vmem:[#allocation4 + $0x28] sm:$0xff]  ;;  %2703 = vmatpush3.msra.mxu0 %v3573_v23 }
0x13ca   :  { %2677 = vmatmul.mubr.msk.f32.gmra.mxu0 %vm69_vm0, %v1513_v43  ;;  %2730 = vmatprep.subr.mxu0 %v3551_v10 }
0x13cb   :  { %2679 = vmatprep.mubr.msk.f32.mxu0 %vm69_vm0, %v1514_v44 }
0x142a   :  { %v1500_v0 = vpop.permute.xlu1 %1499 }
0x142b   :  { %1503 = vst.msk [vmem:[#allocation4 + $0x38] sm:$0xff] %vm69_vm0, %v1500_v0  ;;  %1504 = vst.msk [vmem:[#allocation5] sm:$0xff] %vm69_vm0, %v1500_v0 }
0x1432   :  { %v1515_v48 = vld [vmem:[#allocation4 + $0x38] sm:$0xff] }
0x1433   :  { %2680 = vmatmul.mubr.msk.f32.gmra.mxu0 %vm69_vm0, %v1515_v48 }
0x1482   :  { %v2672_v49 = vpop.f32.mrf.mxu0 }
0x1484   :  { %v1610_v36 = vpop.f32.mrf.mxu0 }
0x1485   :  { %2684 = vmatprep.mubr.msk.f32.mxu1 %vm1650_vm5, %v1610_v36 }
0x1486   :  { %v2675_v50 = vpop.f32.mrf.mxu0  ;;  %2685 = vmatmul.mubr.msk.f32.vlgmr.msra.gmra.mxu1 %vm1650_vm5, %v2672_v49 }
0x1487   :  { %2717 = vmatpush3.msk.msra.mxu1 %vm1675_vm4, %v3620_v47 }
0x1488   :  { %v1620_v53 = vpop.f32.mrf.mxu0  ;;  %2750 = vmatprep.subr.msk.mxu1 %vm1675_vm4, %v3620_v47 }
0x1489   :  { %2687 = vmatprep.mubr.msk.f32.mxu1 %vm1650_vm5, %v1620_v53 }
0x148a   :  { %v2678_v38 = vpop.f32.mrf.mxu0  ;;  %2688 = vmatmul.mubr.msk.f32.gmra.mxu1 %vm1650_vm5, %v2675_v50 }
0x148c   :  { %v1630_v54 = vpop.f32.mrf.mxu0 }
0x148d   :  { %2690 = vmatprep.mubr.msk.f32.mxu1 %vm1650_vm5, %v1630_v54 }
0x148e   :  { %2691 = vmatmul.mubr.msk.f32.gmra.mxu1 %vm1650_vm5, %v2678_v38 }
0x14f3   :  { %v2681_v52 = vpop.f32.mrf.mxu0 }
0x14f5   :  { %v1640_v55 = vpop.f32.mrf.mxu0 }
0x14f6   :  { %2693 = vmatprep.mubr.msk.f32.mxu1 %vm1650_vm5, %v1640_v55 }
0x14f7   :  { %2694 = vmatmul.mubr.msk.f32.gmra.mxu1 %vm1650_vm5, %v2681_v52 }
0x1546   :  { %v2686_v56 = vpop.f32.mrf.mxu1 }
0x1547   :  { %v1785_v59 = vsub.f32 %v1509_v40, %v2686_v56 }
0x1548   :  { %v1745_v27 = vpop.f32.mrf.mxu1 }
0x1549   :  { %v1784_v41 = vsub.f32 %v3593_v13, %v1745_v27 }
0x154a   :  { %v2689_v17 = vpop.f32.mrf.mxu1 }
0x154b   :  { %2704 = vmatprep.mubr.msk.f32.mxu0 %vm69_vm0, %v1784_v41  ;;  %v1787_v58 = vsub.f32 %v1511_v20, %v2689_v17  ;;  %v2465_v17 = vld [vmem:[%s3749_s7] ss:$0 sm:$0xff]  ;;  %s3049_s7 = smov [#allocation14]  }
0x154c   :  { %v1755_v60 = vpop.f32.mrf.mxu1  ;;  %2705 = vmatmul.mubr.msk.f32.vlgmr.msra.gmra.mxu0 %vm69_vm0, %v1785_v59  ;;  %s2368_s11 = sshll.u32 %s3049_s7, 4  ;;  %s2369_s11 = int_to_ptr.vmem [resolvable:$true] %s2368_s11 }
0x154d   :  { %v1786_v28 = vsub.f32 %v1510_v42, %v1755_v60  ;;  %2731 = vmatpush3.msra.mxu0 %v3551_v10  ;;  %s3012_s6 = scalar_lea.vmem %s2369_s11, 1024  ;;  %p3017_p11 = scmp.lt.s32.totalorder %s2369_s11, %s2369_s11 }
0x154e   :  { %v2692_v46 = vpop.f32.mrf.mxu1  ;;  %2732 = vmatprep.subr.mxu0 %v3557_v21  ;;  %p3013_p10 = scmp.ne.s32.totalorder %s2369_s11, %s3012_s6  ;;  %p3018_p12 = scmp.lt.s32.totalorder %s3012_s6, %s3012_s6 }
0x154f   :  { %2707 = vmatprep.mubr.msk.f32.mxu0 %vm69_vm0, %v1786_v28  ;;  %2733 = vmatpush3.msra.mxu0 %v3557_v21  ;;  %v1789_v63 = vsub.f32 %v1513_v43, %v2692_v46 }
0x1550   :  { %v1765_v61 = vpop.f32.mrf.mxu1  ;;  %2708 = vmatmul.mubr.msk.f32.gmra.mxu0 %vm69_vm0, %v1787_v58  ;;  %2734 = vmatprep.subr.mxu0 %v3567_v45  ;;  %p3019_p13 = por %p3018_p12, %p3017_p11 }
0x1551   :  { %v1788_v62 = vsub.f32 %v1512_v39, %v1765_v61  ;;  %2735 = vmatpush3.msra.mxu0 %v3567_v45 }
0x1552   :  { %2736 = vmatprep.subr.mxu0 %v3573_v23  ;;  %p3020_p0 = pnand %p3019_p13, %p3013_p10 }
0x1553   :  { %2710 = vmatprep.mubr.msk.f32.mxu0 %vm69_vm0, %v1788_v62  ;;  %2737 = vmatpush3.msra.mxu0 %v3573_v23 }
0x1554   :  { %2711 = vmatmul.mubr.msk.f32.gmra.mxu0 %vm69_vm0, %v1789_v63 }
0x15b7   :  { %v2695_v4 = vpop.f32.mrf.mxu1 }
0x15b8   :  { %v1791_v7 = vsub.f32 %v1515_v48, %v2695_v4 }
0x15b9   :  { %v1775_v51 = vpop.f32.mrf.mxu1 }
0x15ba   :  { %v1790_v5 = vsub.f32 %v1514_v44, %v1775_v51 }
0x15bc   :  { %2713 = vmatprep.mubr.msk.f32.mxu0 %vm69_vm0, %v1790_v5 }
0x15bd   :  { %2714 = vmatmul.mubr.msk.f32.gmra.mxu0 %vm69_vm0, %v1791_v7 }
0x160c   :  { %v2706_v3 = vpop.f32.mrf.mxu0 }
0x160e   :  { %v1882_v8 = vpop.f32.mrf.mxu0 }
0x160f   :  { %2718 = vmatprep.mubr.msk.f32.mxu1 %vm1650_vm5, %v1882_v8 }
0x1610   :  { %v2709_v9 = vpop.f32.mrf.mxu0  ;;  %2719 = vmatmul.mubr.msk.f32.vlgmr.msra.gmra.mxu1 %vm1650_vm5, %v2706_v3 }
0x1611   :  { %2751 = vmatpush3.msk.msra.mxu1 %vm1675_vm4, %v3620_v47 }
0x1612   :  { %v1892_v11 = vpop.f32.mrf.mxu0 }
0x1613   :  { %2721 = vmatprep.mubr.msk.f32.mxu1 %vm1650_vm5, %v1892_v11 }
0x1614   :  { %v2712_v15 = vpop.f32.mrf.mxu0  ;;  %2722 = vmatmul.mubr.msk.f32.gmra.mxu1 %vm1650_vm5, %v2709_v9 }
0x1616   :  { %v1902_v16 = vpop.f32.mrf.mxu0 }
0x1617   :  { %2724 = vmatprep.mubr.msk.f32.mxu1 %vm1650_vm5, %v1902_v16 }
0x1618   :  { %2725 = vmatmul.mubr.msk.f32.gmra.mxu1 %vm1650_vm5, %v2712_v15 }
0x167d   :  { %v2715_v22 = vpop.f32.mrf.mxu0 }
0x167f   :  { %v1912_v18 = vpop.f32.mrf.mxu0 }
0x1680   :  { %2727 = vmatprep.mubr.msk.f32.mxu1 %vm1650_vm5, %v1912_v18 }
0x1681   :  { %2728 = vmatmul.mubr.msk.f32.gmra.mxu1 %vm1650_vm5, %v2715_v22 }
0x16d0   :  { %v2720_v19 = vpop.f32.mrf.mxu1 }
0x16d1   :  { %v3669_v10 = vsub.f32 %v1785_v59, %v2720_v19 }
0x16d2   :  { %v2011_v21 = vpop.f32.mrf.mxu1 }
0x16d3   :  { %v3671_v45 = vsub.f32 %v1784_v41, %v2011_v21  ;;  %v2059_v12 = vmul.f32 %v3669_v10, %v3669_v10  ;;  %v2203_v60 = vmul.f32 %v2465_v17, %v3669_v10 }
0x16d4   :  { %v2723_v23 = vpop.f32.mrf.mxu1 }
0x16d5   :  { %v2058_v25 = vmul.f32 %v3671_v45, %v3671_v45  ;;  %v3677_v24 = vsub.f32 %v1787_v58, %v2723_v23  ;;  %v2202_v58 = vmul.f32 %v2465_v17, %v3671_v45 }
0x16d6   :  { %v2021_v26 = vpop.f32.mrf.mxu1 }
0x16d7   :  { %v3679_v1 = vsub.f32 %v1786_v28, %v2021_v26  ;;  %2738 = vmatprep.mubr.msk.f32.mxu0 %vm69_vm0, %v2058_v25  ;;  %v2061_v6 = vmul.f32 %v3677_v24, %v3677_v24 }
0x16d8   :  { %v2726_v30 = vpop.f32.mrf.mxu1  ;;  %2739 = vmatmul.mubr.msk.f32.vlgmr.msra.gmra.mxu0 %vm69_vm0, %v2059_v12 }
0x16d9   :  { %v2060_v29 = vmul.f32 %v3679_v1, %v3679_v1  ;;  %v3687_v31 = vsub.f32 %v1789_v63, %v2726_v30  ;;  %v2204_v51 = vmul.f32 %v2465_v17, %v3679_v1 }
0x16da   :  { %v2031_v14 = vpop.f32.mrf.mxu1 }
0x16db   :  { %v3689_v13 = vsub.f32 %v1788_v62, %v2031_v14  ;;  %2741 = vmatprep.mubr.msk.f32.mxu0 %vm69_vm0, %v2060_v29  ;;  %v2063_v57 = vmul.f32 %v3687_v31, %v3687_v31  ;;  %v2205_v62 = vmul.f32 %v2465_v17, %v3677_v24  ;;  %v2207_v3 = vmul.f32 %v2465_v17, %v3687_v31 }
0x16dc   :  { %2742 = vmatmul.mubr.msk.f32.gmra.mxu0 %vm69_vm0, %v2061_v6 }
0x16dd   :  { %v2062_v2 = vmul.f32 %v3689_v13, %v3689_v13  ;;  %v2206_v11 = vmul.f32 %v2465_v17, %v3689_v13 }
0x16df   :  { %2744 = vmatprep.mubr.msk.f32.mxu0 %vm69_vm0, %v2062_v2 }
0x16e0   :  { %2745 = vmatmul.mubr.msk.f32.gmra.mxu0 %vm69_vm0, %v2063_v57 }
0x1741   :  { %v2729_v32 = vpop.f32.mrf.mxu1 }
0x1742   :  { %v3699_v33 = vsub.f32 %v1791_v7, %v2729_v32 }
0x1743   :  { %v2041_v34 = vpop.f32.mrf.mxu1 }
0x1744   :  { %v3701_v37 = vsub.f32 %v1790_v5, %v2041_v34  ;;  %v2065_v40 = vmul.f32 %v3699_v33, %v3699_v33  ;;  %v2209_v45 = vmul.f32 %v2465_v17, %v3699_v33 }
0x1746   :  { %v2064_v35 = vmul.f32 %v3701_v37, %v3701_v37  ;;  %v2208_v25 = vmul.f32 %v2465_v17, %v3701_v37 }
0x1748   :  { %2747 = vmatprep.mubr.msk.f32.mxu0 %vm69_vm0, %v2064_v35 }
0x1749   :  { %2748 = vmatmul.mubr.msk.f32.gmra.mxu0 %vm69_vm0, %v2065_v40 }
0x1798   :  { %v2740_v42 = vpop.f32.mrf.mxu0 }
0x179a   :  { %v2156_v20 = vpop.f32.mrf.mxu0 }
0x179b   :  { %2752 = vmatprep.mubr.msk.f32.mxu1 %vm1650_vm5, %v2156_v20 }
0x179c   :  { %v2743_v39 = vpop.f32.mrf.mxu0  ;;  %2753 = vmatmul.mubr.msk.f32.vlgmr.msra.gmra.mxu1 %vm1650_vm5, %v2740_v42 }
0x179e   :  { %v2166_v43 = vpop.f32.mrf.mxu0 }
0x179f   :  { %2755 = vmatprep.mubr.msk.f32.mxu1 %vm1650_vm5, %v2166_v43 }
0x17a0   :  { %v2746_v44 = vpop.f32.mrf.mxu0  ;;  %2756 = vmatmul.mubr.msk.f32.gmra.mxu1 %vm1650_vm5, %v2743_v39 }
0x17a2   :  { %v2176_v47 = vpop.f32.mrf.mxu0 }
0x17a3   :  { %2758 = vmatprep.mubr.msk.f32.mxu1 %vm1650_vm5, %v2176_v47 }
0x17a4   :  { %2759 = vmatmul.mubr.msk.f32.gmra.mxu1 %vm1650_vm5, %v2746_v44 }
0x1809   :  { %v2749_v0 = vpop.f32.mrf.mxu0 }
0x180b   :  { %v2186_v48 = vpop.f32.mrf.mxu0 }
0x180c   :  { %2761 = vmatprep.mubr.msk.f32.mxu1 %vm1650_vm5, %v2186_v48 }
0x180d   :  { %2762 = vmatmul.mubr.msk.f32.gmra.mxu1 %vm1650_vm5, %v2749_v0 }
0x185c   :  { %v2754_v49 = vpop.f32.mrf.mxu1 }
0x185d   :  { %v2306_v36 = vadd.f32 1e-05, %v2754_v49 }
0x185e   :  { %v2300_v50 = vpop.f32.mrf.mxu1 }
0x185f   :  { %2956 = vrsqrt.f32 %v2306_v36  ;;  %v2301_v53 = vadd.f32 1e-05, %v2300_v50 }
0x1860   :  { %v2757_v38 = vpop.f32.mrf.mxu1 }
0x1861   :  { %2958 = vrsqrt.f32 %v2301_v53  ;;  %v2316_v54 = vadd.f32 1e-05, %v2757_v38 }
0x1862   :  { %v2310_v52 = vpop.f32.mrf.mxu1 }
0x1863   :  { %2960 = vrsqrt.f32 %v2316_v54  ;;  %v2311_v55 = vadd.f32 1e-05, %v2310_v52 }
0x1864   :  { %v2760_v56 = vpop.f32.mrf.mxu1 }
0x1865   :  { %2962 = vrsqrt.f32 %v2311_v55  ;;  %v2326_v27 = vadd.f32 1e-05, %v2760_v56 }
0x1866   :  { %v2320_v41 = vpop.f32.mrf.mxu1 }
0x1867   :  { %2964 = vrsqrt.f32 %v2326_v27  ;;  %v2321_v59 = vadd.f32 1e-05, %v2320_v41 }
0x1869   :  { %2966 = vrsqrt.f32 %v2321_v59 }
0x186c   :  { %v2957_v28 = vpop.eup %2956 }
0x186d   :  { %v2348_v46 = vmul.f32 %v2957_v28, %v2203_v60 }
0x186e   :  { %v2959_v61 = vpop.eup %2958 }
0x186f   :  { %2356 = vst.msk [vmem:[#allocation14 + $0x8] sm:$0xff] %vm69_vm0, %v2348_v46  ;;  %v2347_v63 = vmul.f32 %v2959_v61, %v2202_v58 }
0x1870   :  { %v2961_v4 = vpop.eup %2960 }
0x1871   :  { %2355 = vst.msk [vmem:[#allocation14] sm:$0xff] %vm69_vm0, %v2347_v63  ;;  %v2350_v5 = vmul.f32 %v2961_v4, %v2205_v62 }
0x1872   :  { %v2963_v7 = vpop.eup %2962 }
0x1873   :  { %2358 = vst.msk [vmem:[#allocation14 + $0x18] sm:$0xff] %vm69_vm0, %v2350_v5  ;;  %v2349_v8 = vmul.f32 %v2963_v7, %v2204_v51 }
0x1874   :  { %v2965_v9 = vpop.eup %2964 }
0x1875   :  { %2357 = vst.msk [vmem:[#allocation14 + $0x10] sm:$0xff] %vm69_vm0, %v2349_v8  ;;  %v2352_v15 = vmul.f32 %v2965_v9, %v2207_v3 }
0x1876   :  { %v2967_v16 = vpop.eup %2966 }
0x1877   :  { %2360 = vst.msk [vmem:[#allocation14 + $0x28] sm:$0xff] %vm69_vm0, %v2352_v15  ;;  %v2351_v22 = vmul.f32 %v2967_v16, %v2206_v11 }
0x1879   :  { %2359 = vst.msk [vmem:[#allocation14 + $0x20] sm:$0xff] %vm69_vm0, %v2351_v22 }
0x18cd   :  { %v2763_v18 = vpop.f32.mrf.mxu1 }
0x18ce   :  { %v2336_v19 = vadd.f32 1e-05, %v2763_v18 }
0x18cf   :  { %v2330_v10 = vpop.f32.mrf.mxu1 }
0x18d0   :  { %2968 = vrsqrt.f32 %v2336_v19  ;;  %v2331_v21 = vadd.f32 1e-05, %v2330_v10 }
0x18d2   :  { %2970 = vrsqrt.f32 %v2331_v21 }
0x18dd   :  { %v2969_v23 = vpop.eup %2968 }
0x18de   :  { %v2354_v12 = vmul.f32 %v2969_v23, %v2209_v45 }
0x18df   :  { %v2971_v24 = vpop.eup %2970 }
0x18e0   :  { %2362 = vst.msk [vmem:[#allocation14 + $0x38] sm:$0xff] %vm69_vm0, %v2354_v12  ;;  %v2353_v26 = vmul.f32 %v2971_v24, %v2208_v25 }
0x18e2   :  { %2361 = vst.msk [vmem:[#allocation14 + $0x30] sm:$0xff] %vm69_vm0, %v2353_v26 }
0x18e3   :  { %3023 = shalt.err (!%p3020_p0)
}
0x18e4   :  { %2374 = dma.vmem_to_hbm [thread:$0]  %s2369_s11, 1024, %s3752_s10, [#allocation11], %s3039_s16, %s3039_s16, %s3040_s17  }
0x18e5   :  { %3036 = dma.done.wait [#allocation11], 1024  }
0x18e6   :  { %3037 = vsyncadd [#allocation11], 4294966272 }
0x18e7   :  { %2378 = vsyncpa [#allocation10], 1 }
0x18e8   :  { %2379 = vsyncpa [#allocation13], 1 }
0x18e9   :  { %2380 = vsyncpa [#allocation11], 1 }

// kernel: tpu_custom_call.1
= control target key start
LH: loop header
LB: loop body
LE: loop exit
PB: predicated region body
PF: predicated region fallthrough
CT: control target
= control target key end

     0   :  { %15 = vsyncpa [#allocation10], 0  ;;  %s3742_s0 = inlined_call_operand.hbm [shape: f32[8,8,32], index: 0, kind: input, shape index: {}]   ;;  %s3743_s1 = inlined_call_operand.vmem [shape: f32[4,32], index: 1, kind: input, shape index: {}]   ;;  %s3744_s2 = inlined_call_operand.vmem [shape: f32[1,32], index: 2, kind: input, shape index: {}]   ;;  %s3745_s3 = inlined_call_operand.vmem [shape: bf16[32,64], index: 3, kind: input, shape index: {}]   ;;  %s3746_s4 = inlined_call_operand.vmem [shape: bf16[32,64], index: 4, kind: input, shape index: {}]   ;;  %s3747_s5 = inlined_call_operand.hbm [shape: bf16[32,128], index: 5, kind: input, shape index: {}]   ;;  %s3748_s6 = inlined_call_operand.vmem [shape: f32[1,128], index: 6, kind: input, shape index: {}]   ;;  %s3749_s7 = inlined_call_operand.vmem [shape: f32[1,32], index: 7, kind: input, shape index: {}]   ;;  %s3750_s8 = inlined_call_operand.vmem [shape: f32[32,4], index: 8, kind: input, shape index: {}]   ;;  %s3751_s9 = inlined_call_operand.vmem [shape: f32[4,32], index: 9, kind: input, shape index: {}]   ;;  %s3752_s10 = inlined_call_operand.hbm [shape: f32[8,8,32], index: 10, kind: output, shape index: {}]  }
   0x1   :  { %16 = vsyncpa [#allocation13], 0 }
   0x2   :  { %17 = vsyncpa [#allocation11], 0  ;;  %s3038_s13 = smov [#allocation9]  }
   0x3   :  { %s23_s14 = sshll.u32 %s3038_s13, 4  ;;  %s24_s14 = int_to_ptr.vmem [resolvable:$true] %s23_s14 }
   0x4   :  { %s2980_s15 = scalar_lea.vmem %s24_s14, 1024  ;;  %p2985_p1 = scmp.lt.s32.totalorder %s24_s14, %s24_s14 }
   0x5   :  { %p2981_p0 = scmp.ne.s32.totalorder %s24_s14, %s2980_s15  ;;  %p2986_p2 = scmp.lt.s32.totalorder %s2980_s15, %s2980_s15 }
   0x7   :  { %p2987_p3 = por %p2986_p2, %p2985_p1 }
   0x9   :  { %p2988_p4 = pnand %p2987_p3, %p2981_p0 }
   0xb   :  { %2991 = shalt.err (!%p2988_p4)
}
   0xc   :  { %s3039_s16 = smov 128   ;;  %s3040_s17 = smov 8  }
   0xd   :  { %29 = dma.hbm_to_vmem [thread:$0]  %s3742_s0, 1024, %s24_s14, [#allocation10], %s3039_s16, %s3039_s16, %s3040_s17  }
   0xe   :  { %s3041_s20 = smov [#allocation12]  }
   0xf   :  { %s43_s21 = sshll.u32 %s3041_s20, 4  ;;  %s44_s21 = int_to_ptr.vmem [resolvable:$true] %s43_s21 }
  0x10   :  { %s3000_s22 = scalar_lea.vmem %s44_s21, 256  ;;  %p3005_p6 = scmp.lt.s32.totalorder %s44_s21, %s44_s21 }
  0x11   :  { %p3001_p5 = scmp.ne.s32.totalorder %s44_s21, %s3000_s22  ;;  %p3006_p7 = scmp.lt.s32.totalorder %s3000_s22, %s3000_s22 }
  0x13   :  { %p3007_p8 = por %p3006_p7, %p3005_p6 }
  0x15   :  { %p3008_p9 = pnand %p3007_p8, %p3001_p5 }
  0x17   :  { %3011 = shalt.err (!%p3008_p9)
}
  0x18   :  { %s3042_s23 = smov 64   ;;  %s3043_s24 = smov 4  }
  0x19   :  { %49 = dma.hbm_to_vmem [thread:$0]  %s3747_s5, 256, %s44_s21, [#allocation13], %s3042_s23, %s3042_s23, %s3043_s24  }
  0x1a   :  { %3032 = dma.done.wait [#allocation10], 1024  }
  0x1b   :  { %3033 = vsyncadd [#allocation10], 4294966272 }
  0x1c   :  { %3034 = dma.done.wait [#allocation13], 256  }
  0x1d   :  { %3035 = vsyncadd [#allocation13], 4294967040  ;;  %vm69_vm0 = vcmask 261120   ;;  %v3044_v0 = vmov 0.0   ;;  %v2776_v1 = vld [vmem:[%s3746_s4 + $0x8] sm:$0xff]   ;;  %v2777_v2 = vld [vmem:[%s3746_s4] sm:$0xff]  }
  0x1e   :  { %70 = vst.msk [vmem:[#allocation2] sm:$0xff] %vm69_vm0, %v3044_v0  ;;  %71 = vst.msk [vmem:[#allocation2 + $0x8] sm:$0xff] %vm69_vm0, %v3044_v0  ;;  %2586 = vmatprep.subr.bf16.mxu1 %v2776_v1  ;;  %v276_v3 = vld [vmem:[#allocation9] sm:$0xff]  ;;  %v277_v4 = vld [vmem:[#allocation9 + $0x8] sm:$0xff]  ;;  %vm3045_vm1 = vmmov 0   ;;  %vm399_vm2 = vcmask 523264  }
  0x1f   :  { %72 = vst.msk [vmem:[#allocation2 + $0x10] sm:$0xff] %vm69_vm0, %v3044_v0  ;;  %73 = vst.msk [vmem:[#allocation5] sm:$0xff] %vm69_vm0, %v3044_v0  ;;  %v278_v5 = vld [vmem:[#allocation9 + $0x10] sm:$0xff]  ;;  %2587 = vmatpush3.bf16.msra.mxu1 %v2776_v1  ;;  %v296_v6 = vpack.c.bf16 %v277_v4, %v276_v3  ;;  %v279_v7 = vld [vmem:[#allocation9 + $0x18] sm:$0xff]  ;;  %vm536_vm3 = vcmask 1048064   ;;  %s3048_s24 = smov 32  }
  0x20   :  { %74 = vst.msk [vmem:[#allocation6] sm:$0xff] %vm69_vm0, %v3044_v0  ;;  %75 = vst.msk [vmem:[#allocation7] sm:$0xff] %vm69_vm0, %v3044_v0  ;;  %v280_v8 = vld [vmem:[#allocation9 + $0x20] sm:$0xff]  ;;  %v281_v9 = vld [vmem:[#allocation9 + $0x28] sm:$0xff]  ;;  %2588 = vmatprep.subr.bf16.mxu1 %v2777_v2  ;;  %v297_v14 = vpack.c.bf16 %v279_v7, %v278_v5  ;;  %vm1675_vm4 = vcmask 1043456   ;;  %vm1650_vm5 = vcmask 31744  }
  0x21   :  { %87 = vst.msk [vmem:[#allocation2 + $0x18] sm:$0xff] %vm69_vm0, %v276_v3  ;;  %88 = vst.msk [vmem:[#allocation2 + $0x20] sm:$0xff] %vm69_vm0, %v277_v4  ;;  %v3137_v10 = vld [vmem:[#allocation9 + $0x30] sm:$0xff]  ;;  %v3139_v11 = vld [vmem:[#allocation9 + $0x38] sm:$0xff]  ;;  %2590 = vmatprep.mubr.msk.bf16.mxu1 %vm69_vm0, %v296_v6  ;;  %v298_v16 = vpack.c.bf16 %v281_v9, %v280_v8 }
  0x22   :  { %89 = vst.msk [vmem:[#allocation2 + $0x28] sm:$0xff] %vm69_vm0, %v278_v5  ;;  %v3144_v12 = vld [vmem:[%s3748_s6] ss:$0 sm:$0xff]  ;;  %92 = vst.msk [vmem:[#allocation2 + $0x40] sm:$0xff] %vm69_vm0, %v281_v9  ;;  %v2778_v13 = vld [vmem:[%s3745_s3 + $0x8] sm:$0xff]   ;;  %v299_v29 = vpack.c.bf16 %v3139_v11, %v3137_v10 }
  0x23   :  { %90 = vst.msk [vmem:[#allocation2 + $0x30] sm:$0xff] %vm69_vm0, %v279_v7  ;;  %91 = vst.msk [vmem:[#allocation2 + $0x38] sm:$0xff] %vm69_vm0, %v280_v8  ;;  %424 = vrot.lane.b32.xlu0 %v3144_v12, %s3042_s23  ;;  %v2779_v15 = vld [vmem:[%s3745_s3] sm:$0xff]   ;;  %2589 = vmatpush3.bf16.msra.mxu1 %v2777_v2 }
  0x24   :  { %93 = vst.msk [vmem:[#allocation2 + $0x48] sm:$0xff] %vm69_vm0, %v3137_v10  ;;  %94 = vst.msk [vmem:[#allocation2 + $0x50] sm:$0xff] %vm69_vm0, %v3139_v11  ;;  %2574 = vmatprep.subr.bf16.mxu0 %v2778_v13  ;;  %v3165_v17 = vld [vmem:[%s3744_s2] ss:$0 sm:$0xff]  ;;  %v3175_v22 = vld [vmem:[%s3743_s1 + $0x1] ss:$0 sm:$0xff]  ;;  %2606 = vmatprep.subr.bf16.mxu1 %v3044_v0 }
  0x25   :  { %v96_v18 = vld [vmem:[#allocation2] sm:$0xff]  ;;  %v97_v19 = vld [vmem:[#allocation2 + $0x8] sm:$0xff]  ;;  %2575 = vmatpush3.bf16.msra.mxu0 %v2778_v13 }
  0x26   :  { %v3170_v20 = vld [vmem:[%s3743_s1] ss:$0 sm:$0xff]  ;;  %v133_v21 = vld [vmem:[#allocation2 + $0x10] sm:$0xff]  ;;  %2576 = vmatprep.subr.bf16.mxu0 %v2779_v15  ;;  %v145_v25 = vmul.f32 %v3175_v22, %v97_v19  ;;  %v3185_v27 = vld [vmem:[%s3743_s1 + $0x2] ss:$0 sm:$0xff]  ;;  %2591 = vmatmul.mubr.msk.bf16.vlgmr.msra.gmra.mxu1 %vm69_vm0, %v297_v14 }
  0x27   :  { %v109_v23 = vmul.f32 %v3170_v20, %v96_v18  ;;  %v110_v24 = vmul.f32 %v3170_v20, %v97_v19  ;;  %v146_v26 = vmul.f32 %v3175_v22, %v133_v21  ;;  %v3190_v28 = vld [vmem:[%s3743_s1 + $0x3] ss:$0 sm:$0xff]  ;;  %v175_v31 = vmul.f32 %v3185_v27, %v133_v21  ;;  %2594 = vmatprep.mubr.msk.bf16.mxu1 %vm69_vm0, %v298_v16  ;;  %s3047_s1 = smov 96  }
  0x28   :  { %v163_v30 = vld [vmem:[#allocation2 + $0x18] sm:$0xff]  ;;  %v192_v32 = vld [vmem:[#allocation2 + $0x20] sm:$0xff]  ;;  %v111_v33 = vmul.f32 %v3170_v20, %v133_v21 }
  0x29   :  { %v123_v34 = vadd.f32 %v3165_v17, %v109_v23  ;;  %v124_v35 = vadd.f32 %v3165_v17, %v110_v24  ;;  %v176_v36 = vmul.f32 %v3185_v27, %v163_v30  ;;  %v204_v37 = vmul.f32 %v3190_v28, %v163_v30  ;;  %v3202_v38 = vld [vmem:[#allocation2 + $0x40] sm:$0xff]  ;;  %v165_v39 = vld [vmem:[#allocation2 + $0x28] sm:$0xff]  ;;  %2577 = vmatpush3.bf16.msra.mxu0 %v2779_v15 }
  0x2a   :  { %v205_v40 = vmul.f32 %v3190_v28, %v192_v32  ;;  %288 = vst.msk [vmem:[#allocation2] sm:$0xff] %vm69_vm0, %v3202_v38  ;;  %v112_v42 = vmul.f32 %v3170_v20, %v163_v30  ;;  %v125_v43 = vadd.f32 %v3165_v17, %v111_v33  ;;  %v147_v44 = vmul.f32 %v3175_v22, %v163_v30  ;;  %v194_v45 = vld [vmem:[#allocation2 + $0x30] sm:$0xff]  ;;  %v167_v63 = vld [vmem:[#allocation2 + $0x38] sm:$0xff] }
  0x2b   :  { %v3205_v41 = vld [vmem:[#allocation2 + $0x48] sm:$0xff]  ;;  %v3212_v46 = vld [vmem:[#allocation2 + $0x50] sm:$0xff]  ;;  %v153_v47 = vadd.f32 %v145_v25, %v123_v34  ;;  %v154_v48 = vadd.f32 %v146_v26, %v124_v35  ;;  %v148_v49 = vmul.f32 %v3175_v22, %v192_v32  ;;  %v177_v50 = vmul.f32 %v3185_v27, %v192_v32  ;;  %2598 = vmatprep.subr.bf16.mxu0 %v3044_v0 }
  0x2c   :  { %289 = vst.msk [vmem:[#allocation2 + $0x8] sm:$0xff] %vm69_vm0, %v3205_v41  ;;  %290 = vst.msk [vmem:[#allocation2 + $0x10] sm:$0xff] %vm69_vm0, %v3212_v46  ;;  %v126_v51 = vadd.f32 %v3165_v17, %v112_v42  ;;  %v155_v52 = vadd.f32 %v147_v44, %v125_v43  ;;  %v178_v53 = vmul.f32 %v3185_v27, %v165_v39 }
  0x2d   :  { %v206_v54 = vmul.f32 %v3190_v28, %v165_v39  ;;  %v183_v55 = vadd.f32 %v175_v31, %v153_v47  ;;  %v184_v56 = vadd.f32 %v176_v36, %v154_v48  ;;  %v207_v57 = vmul.f32 %v3190_v28, %v194_v45 }
  0x2e   :  { %v113_v58 = vmul.f32 %v3170_v20, %v192_v32  ;;  %v156_v59 = vadd.f32 %v148_v49, %v126_v51  ;;  %v185_v60 = vadd.f32 %v177_v50, %v155_v52  ;;  %v114_v61 = vmul.f32 %v3170_v20, %v165_v39  ;;  %2595 = vmatmul.mubr.msk.bf16.gmra.mxu1 %vm69_vm0, %v299_v29 }
  0x2f   :  { %v149_v62 = vmul.f32 %v3175_v22, %v165_v39  ;;  %v3228_v1 = vadd.f32 %v204_v37, %v183_v55  ;;  %v3230_v2 = vadd.f32 %v205_v40, %v184_v56  ;;  %v150_v4 = vmul.f32 %v3175_v22, %v194_v45  ;;  %2610 = vmatprep.mubr.msk.bf16.mxu1 %vm3045_vm1, %v3044_v0 }
  0x30   :  { %v127_v3 = vadd.f32 %v3165_v17, %v113_v58  ;;  %v186_v5 = vadd.f32 %v178_v53, %v156_v59  ;;  %v3235_v6 = vadd.f32 %v206_v54, %v185_v60  ;;  %v128_v7 = vadd.f32 %v3165_v17, %v114_v61 }
  0x31   :  { %v179_v8 = vmul.f32 %v3185_v27, %v194_v45  ;;  %v220_v9 = vsub.f32 0.0, %v3228_v1  ;;  %v221_v10 = vsub.f32 0.0, %v3230_v2  ;;  %v180_v13 = vmul.f32 %v3185_v27, %v167_v63 }
  0x32   :  { %v157_v11 = vadd.f32 %v149_v62, %v127_v3  ;;  %v3244_v14 = vadd.f32 %v207_v57, %v186_v5  ;;  %v222_v15 = vsub.f32 0.0, %v3235_v6  ;;  %v158_v16 = vadd.f32 %v150_v4, %v128_v7 }
  0x33   :  { %v208_v18 = vmul.f32 %v3190_v28, %v167_v63  ;;  %v228_v19 = vmul.f32 1.442695, %v220_v9  ;;  %v230_v21 = vmul.f32 1.442695, %v221_v10  ;;  %v209_v24 = vmul.f32 %v3190_v28, %v3202_v38 }
  0x34   :  { %v187_v23 = vadd.f32 %v179_v8, %v157_v11  ;;  %v223_v25 = vsub.f32 0.0, %v3244_v14  ;;  %v232_v26 = vmul.f32 1.442695, %v222_v15  ;;  %v188_v29 = vadd.f32 %v180_v13, %v158_v16 }
  0x35   :  { %v115_v30 = vmul.f32 %v3170_v20, %v194_v45  ;;  %2796 = vpow2.f32 %v228_v19  ;;  %v116_v32 = vmul.f32 %v3170_v20, %v167_v63  ;;  %v151_v33 = vmul.f32 %v3175_v22, %v167_v63 }
  0x36   :  { %v3252_v31 = vadd.f32 %v208_v18, %v187_v23  ;;  %2798 = vpow2.f32 %v230_v21  ;;  %v234_v34 = vmul.f32 1.442695, %v223_v25  ;;  %v3256_v35 = vadd.f32 %v209_v24, %v188_v29  ;;  %v2780_v21 = vld [vmem:[#allocation12 + $0x8] sm:$0xff]  }
  0x37   :  { %v129_v36 = vadd.f32 %v3165_v17, %v115_v30  ;;  %2800 = vpow2.f32 %v232_v26  ;;  %v130_v39 = vadd.f32 %v3165_v17, %v116_v32  ;;  %v152_v40 = vmul.f32 %v3175_v22, %v3202_v38 }
  0x38   :  { %v224_v37 = vsub.f32 0.0, %v3252_v31  ;;  %2802 = vpow2.f32 %v234_v34  ;;  %v225_v42 = vsub.f32 0.0, %v3256_v35  ;;  %v181_v43 = vmul.f32 %v3185_v27, %v3202_v38 }
  0x39   :  { %v159_v20 = vadd.f32 %v151_v33, %v129_v36  ;;  %v160_v45 = vadd.f32 %v152_v40, %v130_v39  ;;  %v182_v47 = vmul.f32 %v3185_v27, %v3205_v41  ;;  %v210_v48 = vmul.f32 %v3190_v28, %v3205_v41 }
  0x3a   :  { %v236_v44 = vmul.f32 1.442695, %v224_v37  ;;  %v238_v49 = vmul.f32 1.442695, %v225_v42  ;;  %v211_v22 = vmul.f32 %v3190_v28, %v3212_v46  ;;  %v3046_v40 = vmov -1e+30  }
  0x3b   :  { %v189_v17 = vadd.f32 %v181_v43, %v159_v20  ;;  %v190_v50 = vadd.f32 %v182_v47, %v160_v45  ;;  %76 = vst.msk [vmem:[#allocation8] sm:$0xff] %vm69_vm0, %v3046_v40 }
  0x3c   :  { %2804 = vpow2.f32 %v236_v44 }
  0x3d   :  { %2806 = vpow2.f32 %v238_v49  ;;  %v218_v51 = vadd.f32 %v210_v48, %v189_v17  ;;  %v219_v52 = vadd.f32 %v211_v22, %v190_v50 }
  0x3f   :  { %v226_v53 = vsub.f32 0.0, %v218_v51  ;;  %v227_v38 = vsub.f32 0.0, %v219_v52 }
  0x41   :  { %v240_v54 = vmul.f32 1.442695, %v226_v53  ;;  %v242_v55 = vmul.f32 1.442695, %v227_v38 }
  0x42   :  { %v2797_v56 = vpop.eup %2796 }
  0x43   :  { %2808 = vpow2.f32 %v240_v54  ;;  %v2799_v27 = vpop.eup %2798  ;;  %v244_v57 = vadd.f32 1.0, %v2797_v56 }
  0x44   :  { %2810 = vpow2.f32 %v242_v55  ;;  %v2801_v41 = vpop.eup %2800  ;;  %v245_v58 = vadd.f32 1.0, %v2799_v27 }
  0x45   :  { %v2803_v59 = vpop.eup %2802  ;;  %2812 = vrcp.f32 %v244_v57  ;;  %v246_v60 = vadd.f32 1.0, %v2801_v41 }
  0x46   :  { %2814 = vrcp.f32 %v245_v58  ;;  %v247_v28 = vadd.f32 1.0, %v2803_v59 }
  0x47   :  { %2816 = vrcp.f32 %v246_v60 }
  0x48   :  { %2818 = vrcp.f32 %v247_v28 }
  0x49   :  { %v2805_v46 = vpop.eup %2804 }
  0x4a   :  { %v2807_v61 = vpop.eup %2806  ;;  %v248_v62 = vadd.f32 1.0, %v2805_v46 }
  0x4b   :  { %v249_v63 = vadd.f32 1.0, %v2807_v61 }
  0x4c   :  { %2820 = vrcp.f32 %v248_v62 }
  0x4d   :  { %2822 = vrcp.f32 %v249_v63 }
  0x50   :  { %v2809_v3 = vpop.eup %2808 }
  0x51   :  { %v2811_v4 = vpop.eup %2810  ;;  %v250_v5 = vadd.f32 1.0, %v2809_v3 }
  0x52   :  { %v251_v7 = vadd.f32 1.0, %v2811_v4  ;;  %v2813_v8 = vpop.eup %2812 }
  0x53   :  { %2824 = vrcp.f32 %v250_v5  ;;  %v2815_v9 = vpop.eup %2814  ;;  %v268_v10 = vmul.f32 %v2813_v8, %v3228_v1 }
  0x54   :  { %2826 = vrcp.f32 %v251_v7  ;;  %v2817_v11 = vpop.eup %2816  ;;  %v269_v13 = vmul.f32 %v2815_v9, %v3230_v2  ;;  %v2781_v2 = vld [vmem:[#allocation12] sm:$0xff]   ;;  %v548_v7 = vld [vmem:[#allocation8] sm:$0xff] }
  0x55   :  { %v2819_v15 = vpop.eup %2818  ;;  %v270_v16 = vmul.f32 %v2817_v11, %v3235_v6 }
  0x56   :  { %v292_v18 = vpack.c.bf16 %v269_v13, %v268_v10  ;;  %v271_v19 = vmul.f32 %v2819_v15, %v3244_v14 }
  0x58   :  { %2578 = vmatprep.mubr.msk.bf16.mxu0 %vm69_vm0, %v292_v18  ;;  %v293_v24 = vpack.c.bf16 %v271_v19, %v270_v16  ;;  %v547_v18 = vld [vmem:[#allocation7] sm:$0xff]  ;;  %v546_v19 = vld [vmem:[#allocation6] sm:$0xff] }
  0x59   :  { %v2821_v23 = vpop.eup %2820 }
  0x5a   :  { %v2823_v25 = vpop.eup %2822  ;;  %v272_v26 = vmul.f32 %v2821_v23, %v3252_v31  ;;  %2579 = vmatmul.mubr.msk.bf16.vlgmr.msra.gmra.mxu0 %vm69_vm0, %v293_v24  ;;  %v545_v31 = vld [vmem:[#allocation5] sm:$0xff] }
  0x5b   :  { %v273_v1 = vmul.f32 %v2823_v25, %v3256_v35  ;;  %2599 = vmatpush3.bf16.msra.mxu0 %v2780_v21  ;;  %v550_v34 = vpack.c.bf16 %v545_v31, %v545_v31 }
  0x5c   :  { %2600 = vmatprep.subr.bf16.mxu0 %v3044_v0 }
  0x5d   :  { %v294_v29 = vpack.c.bf16 %v273_v1, %v272_v26 }
  0x5f   :  { %2582 = vmatprep.mubr.msk.bf16.mxu0 %vm69_vm0, %v294_v29  ;;  %2601 = vmatpush3.bf16.msra.mxu0 %v2781_v2 }
  0x60   :  { %v2825_v6 = vpop.eup %2824  ;;  %2614 = vmatprep.subr.bf16.mxu0 %v3044_v0 }
  0x61   :  { %v2827_v14 = vpop.eup %2826  ;;  %v274_v30 = vmul.f32 %v2825_v6, %v218_v51  ;;  %v2782_v6 = vld [vmem:[#allocation12 + $0x8] sm:$0xff]  }
  0x62   :  { %v275_v32 = vmul.f32 %v2827_v14, %v219_v52  ;;  %2607 = vmatpush3.bf16.msra.mxu1 %v2782_v6  ;;  %v2783_v14 = vld [vmem:[#allocation12] sm:$0xff]  }
  0x63   :  { %2608 = vmatprep.subr.bf16.mxu1 %v3044_v0 }
  0x64   :  { %v295_v33 = vpack.c.bf16 %v275_v32, %v274_v30 }
  0x66   :  { %2583 = vmatmul.mubr.msk.bf16.gmra.mxu0 %vm69_vm0, %v295_v33  ;;  %2609 = vmatpush3.bf16.msra.mxu1 %v2783_v14 }
  0x67   :  { %2602 = vmatprep.mubr.msk.bf16.mxu0 %vm3045_vm1, %v3044_v0  ;;  %2622 = vmatprep.subr.bf16.mxu1 %v3044_v0 }
  0x6e   :  { %2603 = vmatmul.mubr.msk.bf16.vlgmr.msra.gmra.mxu0 %vm69_vm0, %v550_v34 }
  0x6f   :  { %2618 = vmatprep.mubr.msk.bf16.mxu0 %vm3045_vm1, %v3044_v0 }
  0x95   :  { %v3291_v36 = vpop.permute.xlu0 %424 }
  0xe6   :  { %v3289_v35 = vpop.f32.mrf.mxu1 }
  0xe8   :  { %v473_v37 = vpop.f32.mrf.mxu1 }
  0xe9   :  { %v474_v39 = vadd.f32 %v473_v37, %v3291_v36 }
  0xea   :  { %v3327_v30 = vpop.f32.mrf.mxu1 }
  0xeb   :  { %512 = vrot.lane.b32.xlu0 %v474_v39, %s3042_s23 }
  0xec   :  { %v476_v33 = vpop.f32.mrf.mxu1 }
  0xed   :  { %v477_v31 = vadd.f32 %v476_v33, %v3291_v36 }
 0x11a   :  { %v2580_v42 = vpop.f32.mrf.mxu0 }
 0x11b   :  { %v377_v20 = vadd.f32 %v2580_v42, %v3144_v12 }
 0x11c   :  { %v368_v43 = vpop.f32.mrf.mxu0 }
 0x11d   :  { %402 = vst.msk [vmem:[#allocation3 + $0x10] sm:$0xff] %vm399_vm2, %v377_v20  ;;  %v369_v44 = vadd.f32 %v3144_v12, %v368_v43 }
 0x11e   :  { %v2581_v45 = vpop.f32.mrf.mxu0 }
 0x11f   :  { %400 = vst.msk [vmem:[#allocation3] sm:$0xff] %vm399_vm2, %v369_v44  ;;  %v380_v47 = vadd.f32 %v2581_v45, %v3144_v12 }
 0x120   :  { %v371_v48 = vpop.f32.mrf.mxu0 }
 0x121   :  { %403 = vst.msk [vmem:[#allocation3 + $0x18] sm:$0xff] %vm399_vm2, %v380_v47  ;;  %v372_v49 = vadd.f32 %v3144_v12, %v371_v48 }
 0x123   :  { %401 = vst.msk [vmem:[#allocation3 + $0x8] sm:$0xff] %vm399_vm2, %v372_v49 }
 0x126   :  { %v2584_v17 = vpop.f32.mrf.mxu0 }
 0x127   :  { %v393_v22 = vadd.f32 %v2584_v17, %v3144_v12  ;;  %v3342_v17 = vpop.f32.mrf.mxu1 }
 0x128   :  { %v384_v50 = vpop.f32.mrf.mxu0 }
 0x129   :  { %406 = vst.msk [vmem:[#allocation3 + $0x30] sm:$0xff] %vm399_vm2, %v393_v22  ;;  %v385_v51 = vadd.f32 %v3144_v12, %v384_v50  ;;  %v3344_v22 = vpop.f32.mrf.mxu1 }
 0x12a   :  { %v2585_v52 = vpop.f32.mrf.mxu0 }
 0x12b   :  { %404 = vst.msk [vmem:[#allocation3 + $0x20] sm:$0xff] %vm399_vm2, %v385_v51  ;;  %v396_v53 = vadd.f32 %v2585_v52, %v3144_v12  ;;  %v3346_v50 = vpop.f32.mrf.mxu1 }
 0x12c   :  { %v387_v38 = vpop.f32.mrf.mxu0 }
 0x12d   :  { %407 = vst.msk [vmem:[#allocation3 + $0x38] sm:$0xff] %vm399_vm2, %v396_v53  ;;  %v388_v54 = vadd.f32 %v3144_v12, %v387_v38  ;;  %v3348_v51 = vpop.f32.mrf.mxu1 }
 0x12e   :  { %v604_v55 = vpop.f32.mrf.mxu0 }
 0x12f   :  { %405 = vst.msk [vmem:[#allocation3 + $0x28] sm:$0xff] %vm399_vm2, %v388_v54 }
 0x130   :  { %v2604_v56 = vpop.f32.mrf.mxu0 }
 0x132   :  { %v607_v27 = vpop.f32.mrf.mxu0 }
 0x134   :  { %v2605_v57 = vpop.f32.mrf.mxu0 }
 0x15d   :  { %v513_v41 = vpop.permute.xlu0 %512 }
 0x15e   :  { %537 = vst.msk [vmem:[#allocation3] sm:$0xff] %vm536_vm3, %v513_v41 }
 0x165   :  { %v549_v58 = vld [vmem:[#allocation3] sm:$0xff] }
 0x166   :  { %v610_v59 = vadd.f32 %v604_v55, %v549_v58 }
 0x168   :  { %v612_v60 = vand.u32 2147483647, %v610_v59  ;;  %v611_v63 = vmin.f32 %v610_v59, 0.0  ;;  %v626_v34 = vsub.f32 0.0, %v610_v59 }
 0x16a   :  { %v613_v28 = vsub.f32 0.0, %v612_v60  ;;  %v627_v37 = vmul.f32 1.442695, %v626_v34 }
 0x16c   :  { %v614_v46 = vmul.f32 1.442695, %v613_v28 }
 0x16e   :  { %2828 = vpow2.f32 %v614_v46 }
 0x17b   :  { %v2829_v61 = vpop.eup %2828 }
 0x17c   :  { %v616_v62 = vadd.f32 1.0, %v2829_v61 }
 0x17e   :  { %2830 = vlog2.f32 %v616_v62 }
 0x17f   :  { %2832 = vtanh.f32 %v610_v59 }
 0x18b   :  { %v2831_v12 = vpop.eup %2830 }
 0x18c   :  { %v618_v3 = vmul.f32 0.6931472, %v2831_v12  ;;  %v2833_v5 = vpop.eup %2832 }
 0x18e   :  { %v619_v4 = vsub.f32 %v611_v63, %v618_v3 }
 0x190   :  { %621 = vrot.lane.b32.xlu1 %v619_v4, %s3047_s1 }
 0x194   :  { %641 = vrot.lane.b32.xlu1 %v2833_v5, %s3042_s23 }
 0x202   :  { %v622_v8 = vpop.permute.xlu1 %621 }
 0x203   :  { %v624_v9 = vadd.f32 %v622_v8, %v548_v7 }
 0x205   :  { %v3315_v10 = vmax.f32 %v610_v59, %v624_v9 }
 0x206   :  { %v642_v23 = vpop.permute.xlu1 %641 }
 0x207   :  { %v632_v11 = vsub.f32 %v610_v59, %v3315_v10  ;;  %v635_v13 = vsub.f32 %v624_v9, %v3315_v10 }
 0x209   :  { %v633_v15 = vmul.f32 1.442695, %v632_v11  ;;  %v636_v16 = vmul.f32 1.442695, %v635_v13 }
 0x20b   :  { %2834 = vpow2.f32 %v633_v15 }
 0x20c   :  { %2836 = vpow2.f32 %v636_v16 }
 0x218   :  { %v2835_v21 = vpop.eup %2834 }
 0x219   :  { %v2837_v24 = vpop.eup %2836  ;;  %v644_v25 = vmul.f32 %v2835_v21, %v642_v23  ;;  %v2785_v23 = vld [vmem:[#allocation12] sm:$0xff]  }
 0x21a   :  { %v646_v26 = vmul.f32 %v2837_v24, %v547_v18  ;;  %v638_v1 = vmul.f32 %v2837_v24, %v546_v19 }
 0x21c   :  { %v3319_v2 = vadd.f32 %v2835_v21, %v646_v26  ;;  %v3321_v29 = vadd.f32 %v644_v25, %v638_v1  ;;  %v2784_v21 = vld [vmem:[#allocation12 + $0x8] sm:$0xff]   ;;  %v482_v25 = vadd.f32 %v3289_v35, %v3291_v36 }
 0x21d   :  { %2615 = vmatpush3.bf16.msra.mxu0 %v2784_v21 }
 0x21e   :  { %2838 = vrcp.f32 %v3319_v2  ;;  %649 = vrot.lane.b32.xlu0 %v3321_v29, %s3047_s1  ;;  %2616 = vmatprep.subr.bf16.mxu0 %v3044_v0 }
 0x21f   :  { %2840 = vpow2.f32 %v627_v37 }
 0x221   :  { %2617 = vmatpush3.bf16.msra.mxu0 %v2785_v23 }
 0x222   :  { %2630 = vmatprep.subr.bf16.mxu0 %v3044_v0 }
 0x22b   :  { %v2839_v32 = vpop.eup %2838 }
 0x22c   :  { %655 = vrot.lane.b32.xlu1 %v2839_v32, %s3047_s1  ;;  %v2841_v39 = vpop.eup %2840 }
 0x22d   :  { %v629_v40 = vadd.f32 1.0, %v2841_v39 }
 0x22f   :  { %2842 = vrcp.f32 %v629_v40 }
 0x230   :  { %514 = vrot.lane.b32.xlu1 %v477_v31, %s3042_s23 }
 0x23c   :  { %v2843_v20 = vpop.eup %2842 }
 0x290   :  { %v650_v42 = vpop.permute.xlu0 %649 }
 0x291   :  { %v652_v43 = vmul.f32 %v2843_v20, %v650_v42 }
 0x29e   :  { %v656_v44 = vpop.permute.xlu1 %655 }
 0x29f   :  { %v3333_v45 = vmul.f32 %v656_v44, %v652_v43 }
 0x2a1   :  { %v666_v47 = vpack.c.bf16 %v3333_v45, %v3333_v45 }
 0x2a2   :  { %v515_v48 = vpop.permute.xlu1 %514 }
 0x2a3   :  { %538 = vst.msk [vmem:[#allocation3 + $0x8] sm:$0xff] %vm536_vm3, %v515_v48  ;;  %672 = vrot.lane.b32.xlu0 %v666_v47, %s3048_s24 }
 0x2aa   :  { %v665_v52 = vld [vmem:[#allocation3 + $0x8] sm:$0xff] }
 0x315   :  { %v673_v49 = vpop.permute.xlu0 %672 }
 0x316   :  { %2611 = vmatmul.mubr.msk.bf16.vlgmr.msra.gmra.mxu1 %vm69_vm0, %v673_v49 }
 0x317   :  { %2626 = vmatprep.mubr.msk.bf16.mxu1 %vm3045_vm1, %v3044_v0 }
 0x3d6   :  { %v723_v53 = vpop.f32.mrf.mxu1 }
 0x3d7   :  { %v729_v38 = vadd.f32 %v723_v53, %v665_v52 }
 0x3d8   :  { %v2612_v54 = vpop.f32.mrf.mxu1 }
 0x3d9   :  { %2844 = vtanh.f32 %v729_v38  ;;  %v731_v55 = vand.u32 2147483647, %v729_v38  ;;  %v730_v46 = vmin.f32 %v729_v38, 0.0  ;;  %v745_v26 = vsub.f32 0.0, %v729_v38 }
 0x3da   :  { %v726_v56 = vpop.f32.mrf.mxu1 }
 0x3db   :  { %v732_v27 = vsub.f32 0.0, %v731_v55  ;;  %v746_v1 = vmul.f32 1.442695, %v745_v26 }
 0x3dc   :  { %v2613_v57 = vpop.f32.mrf.mxu1 }
 0x3dd   :  { %v733_v41 = vmul.f32 1.442695, %v732_v27 }
 0x3df   :  { %2846 = vpow2.f32 %v733_v41 }
 0x3e6   :  { %v2845_v58 = vpop.eup %2844 }
 0x3e7   :  { %760 = vrot.lane.b32.xlu1 %v2845_v58, %s3042_s23 }
 0x3ec   :  { %v2847_v59 = vpop.eup %2846 }
 0x3ed   :  { %v735_v60 = vadd.f32 1.0, %v2847_v59 }
 0x3ef   :  { %2848 = vlog2.f32 %v735_v60 }
 0x3fc   :  { %v2849_v28 = vpop.eup %2848 }
 0x3fd   :  { %v737_v61 = vmul.f32 0.6931472, %v2849_v28 }
 0x3ff   :  { %v738_v62 = vsub.f32 %v730_v46, %v737_v61 }
 0x401   :  { %740 = vrot.lane.b32.xlu0 %v738_v62, %s3047_s1 }
 0x459   :  { %v761_v11 = vpop.permute.xlu1 %760 }
 0x473   :  { %v741_v12 = vpop.permute.xlu0 %740 }
 0x474   :  { %v743_v63 = vadd.f32 %v741_v12, %v3315_v10 }
 0x476   :  { %v3353_v3 = vmax.f32 %v729_v38, %v743_v63 }
 0x478   :  { %v751_v4 = vsub.f32 %v729_v38, %v3353_v3  ;;  %v754_v5 = vsub.f32 %v743_v63, %v3353_v3 }
 0x47a   :  { %v752_v7 = vmul.f32 1.442695, %v751_v4  ;;  %v755_v8 = vmul.f32 1.442695, %v754_v5 }
 0x47c   :  { %2850 = vpow2.f32 %v752_v7 }
 0x47d   :  { %2852 = vpow2.f32 %v755_v8  ;;  %v2786_v8 = vld [vmem:[#allocation12 + $0x8] sm:$0xff]  }
 0x47e   :  { %2623 = vmatpush3.bf16.msra.mxu1 %v2786_v8 }
 0x47f   :  { %2624 = vmatprep.subr.bf16.mxu1 %v3044_v0 }
 0x489   :  { %v2851_v9 = vpop.eup %2850 }
 0x48a   :  { %v2853_v13 = vpop.eup %2852  ;;  %v763_v15 = vmul.f32 %v2851_v9, %v761_v11 }
 0x48b   :  { %v765_v16 = vmul.f32 %v2853_v13, %v3319_v2  ;;  %v757_v18 = vmul.f32 %v2853_v13, %v3321_v29  ;;  %v485_v13 = vadd.f32 %v3327_v30, %v3291_v36 }
 0x48d   :  { %v3359_v19 = vadd.f32 %v2851_v9, %v765_v16  ;;  %v3361_v10 = vadd.f32 %v763_v15, %v757_v18  ;;  %v2787_v9 = vld [vmem:[#allocation12] sm:$0xff]  }
 0x48e   :  { %2625 = vmatpush3.bf16.msra.mxu1 %v2787_v9 }
 0x48f   :  { %2854 = vrcp.f32 %v3359_v19  ;;  %768 = vrot.lane.b32.xlu0 %v3361_v10, %s3047_s1  ;;  %2638 = vmatprep.subr.bf16.mxu1 %v3044_v0 }
 0x490   :  { %2856 = vpow2.f32 %v746_v1 }
 0x49c   :  { %v2855_v24 = vpop.eup %2854 }
 0x49d   :  { %774 = vrot.lane.b32.xlu1 %v2855_v24, %s3047_s1  ;;  %v2857_v2 = vpop.eup %2856 }
 0x49e   :  { %v748_v29 = vadd.f32 1.0, %v2857_v2 }
 0x4a0   :  { %2858 = vrcp.f32 %v748_v29 }
 0x4a1   :  { %516 = vrot.lane.b32.xlu1 %v482_v25, %s3042_s23 }
 0x4ad   :  { %v2859_v14 = vpop.eup %2858 }
 0x501   :  { %v769_v6 = vpop.permute.xlu0 %768 }
 0x502   :  { %v771_v32 = vmul.f32 %v2859_v14, %v769_v6 }
 0x50f   :  { %v775_v33 = vpop.permute.xlu1 %774 }
 0x510   :  { %v3372_v31 = vmul.f32 %v775_v33, %v771_v32 }
 0x512   :  { %v786_v34 = vpack.c.bf16 %v3372_v31, %v3372_v31 }
 0x513   :  { %v517_v37 = vpop.permute.xlu1 %516 }
 0x514   :  { %539 = vst.msk [vmem:[#allocation3 + $0x10] sm:$0xff] %vm536_vm3, %v517_v37  ;;  %792 = vrot.lane.b32.xlu0 %v786_v34, %s3048_s24 }
 0x51b   :  { %v785_v39 = vld [vmem:[#allocation3 + $0x10] sm:$0xff] }
 0x586   :  { %v793_v35 = vpop.permute.xlu0 %792 }
 0x587   :  { %2619 = vmatmul.mubr.msk.bf16.vlgmr.msra.gmra.mxu0 %vm69_vm0, %v793_v35 }
 0x588   :  { %2634 = vmatprep.mubr.msk.bf16.mxu0 %vm3045_vm1, %v3044_v0 }
 0x647   :  { %v843_v40 = vpop.f32.mrf.mxu0 }
 0x648   :  { %v849_v42 = vadd.f32 %v843_v40, %v785_v39 }
 0x649   :  { %v2620_v20 = vpop.f32.mrf.mxu0 }
 0x64a   :  { %2860 = vtanh.f32 %v849_v42  ;;  %v851_v43 = vand.u32 2147483647, %v849_v42  ;;  %v850_v55 = vmin.f32 %v849_v42, 0.0  ;;  %v865_v15 = vsub.f32 0.0, %v849_v42 }
 0x64b   :  { %v846_v44 = vpop.f32.mrf.mxu0 }
 0x64c   :  { %v852_v47 = vsub.f32 0.0, %v851_v43  ;;  %v866_v16 = vmul.f32 1.442695, %v865_v15 }
 0x64d   :  { %v2621_v48 = vpop.f32.mrf.mxu0 }
 0x64e   :  { %v853_v49 = vmul.f32 1.442695, %v852_v47 }
 0x650   :  { %2862 = vpow2.f32 %v853_v49 }
 0x657   :  { %v2861_v52 = vpop.eup %2860 }
 0x658   :  { %880 = vrot.lane.b32.xlu1 %v2861_v52, %s3042_s23 }
 0x65d   :  { %v2863_v53 = vpop.eup %2862 }
 0x65e   :  { %v855_v38 = vadd.f32 1.0, %v2863_v53 }
 0x660   :  { %2864 = vlog2.f32 %v855_v38 }
 0x66d   :  { %v2865_v54 = vpop.eup %2864 }
 0x66e   :  { %v857_v56 = vmul.f32 0.6931472, %v2865_v54 }
 0x670   :  { %v858_v27 = vsub.f32 %v850_v55, %v857_v56 }
 0x672   :  { %860 = vrot.lane.b32.xlu0 %v858_v27, %s3047_s1 }
 0x6ca   :  { %v881_v62 = vpop.permute.xlu1 %880 }
 0x6e4   :  { %v861_v57 = vpop.permute.xlu0 %860 }
 0x6e5   :  { %v863_v41 = vadd.f32 %v861_v57, %v3353_v3 }
 0x6e7   :  { %v3384_v58 = vmax.f32 %v849_v42, %v863_v41 }
 0x6e9   :  { %v871_v59 = vsub.f32 %v849_v42, %v3384_v58  ;;  %v874_v60 = vsub.f32 %v863_v41, %v3384_v58 }
 0x6eb   :  { %v872_v28 = vmul.f32 1.442695, %v871_v59  ;;  %v875_v46 = vmul.f32 1.442695, %v874_v60 }
 0x6ed   :  { %2866 = vpow2.f32 %v872_v28 }
 0x6ee   :  { %2868 = vpow2.f32 %v875_v46  ;;  %v2788_v46 = vld [vmem:[#allocation12 + $0x8] sm:$0xff]  }
 0x6ef   :  { %2631 = vmatpush3.bf16.msra.mxu0 %v2788_v46 }
 0x6f0   :  { %2632 = vmatprep.subr.bf16.mxu0 %v3044_v0 }
 0x6fa   :  { %v2867_v61 = vpop.eup %2866 }
 0x6fb   :  { %v2869_v12 = vpop.eup %2868  ;;  %v883_v63 = vmul.f32 %v2867_v61, %v881_v62 }
 0x6fc   :  { %v885_v4 = vmul.f32 %v2869_v12, %v3359_v19  ;;  %v877_v5 = vmul.f32 %v2869_v12, %v3361_v10  ;;  %v490_v12 = vadd.f32 %v3344_v22, %v3291_v36 }
 0x6fe   :  { %v3390_v7 = vadd.f32 %v2867_v61, %v885_v4  ;;  %v3392_v3 = vadd.f32 %v883_v63, %v877_v5  ;;  %v2789_v61 = vld [vmem:[#allocation12] sm:$0xff]  }
 0x6ff   :  { %2633 = vmatpush3.bf16.msra.mxu0 %v2789_v61 }
 0x700   :  { %2870 = vrcp.f32 %v3390_v7  ;;  %888 = vrot.lane.b32.xlu0 %v3392_v3, %s3047_s1  ;;  %2646 = vmatprep.subr.bf16.mxu0 %v3044_v0 }
 0x701   :  { %2872 = vpow2.f32 %v866_v16 }
 0x70d   :  { %v2871_v11 = vpop.eup %2870 }
 0x70e   :  { %894 = vrot.lane.b32.xlu1 %v2871_v11, %s3047_s1  ;;  %v2873_v18 = vpop.eup %2872 }
 0x70f   :  { %v868_v19 = vadd.f32 1.0, %v2873_v18 }
 0x711   :  { %2874 = vrcp.f32 %v868_v19 }
 0x712   :  { %518 = vrot.lane.b32.xlu1 %v485_v13, %s3042_s23 }
 0x71e   :  { %v2875_v21 = vpop.eup %2874 }
 0x772   :  { %v889_v10 = vpop.permute.xlu0 %888 }
 0x773   :  { %v891_v23 = vmul.f32 %v2875_v21, %v889_v10 }
 0x780   :  { %v895_v24 = vpop.permute.xlu1 %894 }
 0x781   :  { %v3403_v25 = vmul.f32 %v895_v24, %v891_v23 }
 0x783   :  { %v906_v26 = vpack.c.bf16 %v3403_v25, %v3403_v25 }
 0x784   :  { %v519_v1 = vpop.permute.xlu1 %518 }
 0x785   :  { %540 = vst.msk [vmem:[#allocation3 + $0x18] sm:$0xff] %vm536_vm3, %v519_v1  ;;  %912 = vrot.lane.b32.xlu0 %v906_v26, %s3048_s24 }
 0x78c   :  { %v905_v2 = vld [vmem:[#allocation3 + $0x18] sm:$0xff] }
 0x7f7   :  { %v913_v30 = vpop.permute.xlu0 %912 }
 0x7f8   :  { %2627 = vmatmul.mubr.msk.bf16.vlgmr.msra.gmra.mxu1 %vm69_vm0, %v913_v30 }
 0x7f9   :  { %2642 = vmatprep.mubr.msk.bf16.mxu1 %vm3045_vm1, %v3044_v0 }
 0x8b8   :  { %v963_v29 = vpop.f32.mrf.mxu1 }
 0x8b9   :  { %v969_v6 = vadd.f32 %v963_v29, %v905_v2 }
 0x8ba   :  { %v2628_v14 = vpop.f32.mrf.mxu1 }
 0x8bb   :  { %2876 = vtanh.f32 %v969_v6  ;;  %v971_v32 = vand.u32 2147483647, %v969_v6  ;;  %v970_v43 = vmin.f32 %v969_v6, 0.0  ;;  %v985_v63 = vsub.f32 0.0, %v969_v6 }
 0x8bc   :  { %v966_v33 = vpop.f32.mrf.mxu1 }
 0x8bd   :  { %v972_v34 = vsub.f32 0.0, %v971_v32  ;;  %v986_v4 = vmul.f32 1.442695, %v985_v63 }
 0x8be   :  { %v2629_v37 = vpop.f32.mrf.mxu1 }
 0x8bf   :  { %v973_v35 = vmul.f32 1.442695, %v972_v34 }
 0x8c1   :  { %2878 = vpow2.f32 %v973_v35 }
 0x8c8   :  { %v2877_v39 = vpop.eup %2876 }
 0x8c9   :  { %1000 = vrot.lane.b32.xlu1 %v2877_v39, %s3042_s23 }
 0x8ce   :  { %v2879_v40 = vpop.eup %2878 }
 0x8cf   :  { %v975_v42 = vadd.f32 1.0, %v2879_v40 }
 0x8d1   :  { %2880 = vlog2.f32 %v975_v42 }
 0x8de   :  { %v2881_v20 = vpop.eup %2880 }
 0x8df   :  { %v977_v44 = vmul.f32 0.6931472, %v2881_v20 }
 0x8e1   :  { %v978_v47 = vsub.f32 %v970_v43, %v977_v44 }
 0x8e3   :  { %980 = vrot.lane.b32.xlu0 %v978_v47, %s3047_s1 }
 0x93b   :  { %v1001_v27 = vpop.permute.xlu1 %1000 }
 0x955   :  { %v981_v48 = vpop.permute.xlu0 %980 }
 0x956   :  { %v983_v49 = vadd.f32 %v981_v48, %v3384_v58 }
 0x958   :  { %v3415_v52 = vmax.f32 %v969_v6, %v983_v49 }
 0x95a   :  { %v991_v53 = vsub.f32 %v969_v6, %v3415_v52  ;;  %v994_v38 = vsub.f32 %v983_v49, %v3415_v52 }
 0x95c   :  { %v992_v54 = vmul.f32 1.442695, %v991_v53  ;;  %v995_v55 = vmul.f32 1.442695, %v994_v38 }
 0x95e   :  { %2882 = vpow2.f32 %v992_v54 }
 0x95f   :  { %2884 = vpow2.f32 %v995_v55  ;;  %v2790_v55 = vld [vmem:[#allocation12 + $0x8] sm:$0xff]  }
 0x960   :  { %2639 = vmatpush3.bf16.msra.mxu1 %v2790_v55 }
 0x961   :  { %2640 = vmatprep.subr.bf16.mxu1 %v3044_v0 }
 0x96b   :  { %v2883_v56 = vpop.eup %2882 }
 0x96c   :  { %v2885_v57 = vpop.eup %2884  ;;  %v1003_v41 = vmul.f32 %v2883_v56, %v1001_v27 }
 0x96d   :  { %v1005_v59 = vmul.f32 %v2885_v57, %v3390_v7  ;;  %v997_v60 = vmul.f32 %v2885_v57, %v3392_v3  ;;  %v493_v57 = vadd.f32 %v3348_v51, %v3291_v36 }
 0x96f   :  { %v3421_v28 = vadd.f32 %v2883_v56, %v1005_v59  ;;  %v3423_v58 = vadd.f32 %v1003_v41, %v997_v60  ;;  %v2791_v56 = vld [vmem:[#allocation12] sm:$0xff]  }
 0x970   :  { %2641 = vmatpush3.bf16.msra.mxu1 %v2791_v56 }
 0x971   :  { %2886 = vrcp.f32 %v3421_v28  ;;  %1008 = vrot.lane.b32.xlu0 %v3423_v58, %s3047_s1  ;;  %2654 = vmatprep.subr.bf16.mxu1 %v3044_v0 }
 0x972   :  { %2888 = vpow2.f32 %v986_v4 }
 0x97e   :  { %v2887_v62 = vpop.eup %2886 }
 0x97f   :  { %1014 = vrot.lane.b32.xlu1 %v2887_v62, %s3047_s1  ;;  %v2889_v5 = vpop.eup %2888 }
 0x980   :  { %v988_v7 = vadd.f32 1.0, %v2889_v5 }
 0x982   :  { %2890 = vrcp.f32 %v988_v7 }
 0x983   :  { %520 = vrot.lane.b32.xlu1 %v490_v12, %s3042_s23 }
 0x98f   :  { %v2891_v8 = vpop.eup %2890 }
 0x9e3   :  { %v1009_v3 = vpop.permute.xlu0 %1008 }
 0x9e4   :  { %v1011_v9 = vmul.f32 %v2891_v8, %v1009_v3 }
 0x9f1   :  { %v1015_v11 = vpop.permute.xlu1 %1014 }
 0x9f2   :  { %v3434_v13 = vmul.f32 %v1015_v11, %v1011_v9 }
 0x9f4   :  { %v1026_v15 = vpack.c.bf16 %v3434_v13, %v3434_v13 }
 0x9f5   :  { %v521_v16 = vpop.permute.xlu1 %520 }
 0x9f6   :  { %541 = vst.msk [vmem:[#allocation3 + $0x20] sm:$0xff] %vm536_vm3, %v521_v16  ;;  %1032 = vrot.lane.b32.xlu0 %v1026_v15, %s3048_s24 }
 0x9fd   :  { %v1025_v18 = vld [vmem:[#allocation3 + $0x20] sm:$0xff] }
 0xa68   :  { %v1033_v22 = vpop.permute.xlu0 %1032 }
 0xa69   :  { %2635 = vmatmul.mubr.msk.bf16.vlgmr.msra.gmra.mxu0 %vm69_vm0, %v1033_v22 }
 0xa6a   :  { %2650 = vmatprep.mubr.msk.bf16.mxu0 %vm3045_vm1, %v3044_v0 }
 0xb29   :  { %v1083_v19 = vpop.f32.mrf.mxu0 }
 0xb2a   :  { %v1089_v10 = vadd.f32 %v1083_v19, %v1025_v18 }
 0xb2b   :  { %v2636_v21 = vpop.f32.mrf.mxu0 }
 0xb2c   :  { %2892 = vtanh.f32 %v1089_v10  ;;  %v1091_v23 = vand.u32 2147483647, %v1089_v10  ;;  %v1090_v32 = vmin.f32 %v1089_v10, 0.0  ;;  %v1105_v41 = vsub.f32 0.0, %v1089_v10 }
 0xb2d   :  { %v1086_v24 = vpop.f32.mrf.mxu0 }
 0xb2e   :  { %v1092_v26 = vsub.f32 0.0, %v1091_v23  ;;  %v1106_v59 = vmul.f32 1.442695, %v1105_v41 }
 0xb2f   :  { %v2637_v1 = vpop.f32.mrf.mxu0 }
 0xb30   :  { %v1093_v30 = vmul.f32 1.442695, %v1092_v26 }
 0xb32   :  { %2894 = vpow2.f32 %v1093_v30 }
 0xb39   :  { %v2893_v2 = vpop.eup %2892 }
 0xb3a   :  { %1120 = vrot.lane.b32.xlu1 %v2893_v2, %s3042_s23 }
 0xb3f   :  { %v2895_v29 = vpop.eup %2894 }
 0xb40   :  { %v1095_v6 = vadd.f32 1.0, %v2895_v29 }
 0xb42   :  { %2896 = vlog2.f32 %v1095_v6 }
 0xb4f   :  { %v2897_v14 = vpop.eup %2896 }
 0xb50   :  { %v1097_v33 = vmul.f32 0.6931472, %v2897_v14 }
 0xb52   :  { %v1098_v34 = vsub.f32 %v1090_v32, %v1097_v33 }
 0xb54   :  { %1100 = vrot.lane.b32.xlu0 %v1098_v34, %s3047_s1 }
 0xbac   :  { %v1121_v47 = vpop.permute.xlu1 %1120 }
 0xbc6   :  { %v1101_v37 = vpop.permute.xlu0 %1100 }
 0xbc7   :  { %v1103_v35 = vadd.f32 %v1101_v37, %v3415_v52 }
 0xbc9   :  { %v3446_v39 = vmax.f32 %v1089_v10, %v1103_v35 }
 0xbcb   :  { %v1111_v40 = vsub.f32 %v1089_v10, %v3446_v39  ;;  %v1114_v42 = vsub.f32 %v1103_v35, %v3446_v39 }
 0xbcd   :  { %v1112_v20 = vmul.f32 1.442695, %v1111_v40  ;;  %v1115_v43 = vmul.f32 1.442695, %v1114_v42 }
 0xbcf   :  { %2898 = vpow2.f32 %v1112_v20 }
 0xbd0   :  { %2900 = vpow2.f32 %v1115_v43  ;;  %v2792_v43 = vld [vmem:[#allocation12 + $0x8] sm:$0xff]  }
 0xbd1   :  { %2647 = vmatpush3.bf16.msra.mxu0 %v2792_v43 }
 0xbd2   :  { %2648 = vmatprep.subr.bf16.mxu0 %v3044_v0 }
 0xbdc   :  { %v2899_v44 = vpop.eup %2898 }
 0xbdd   :  { %v2901_v48 = vpop.eup %2900  ;;  %v1123_v49 = vmul.f32 %v2899_v44, %v1121_v47 }
 0xbde   :  { %v1125_v53 = vmul.f32 %v2901_v48, %v3421_v28  ;;  %v1117_v38 = vmul.f32 %v2901_v48, %v3423_v58  ;;  %v498_v48 = vadd.f32 %v3342_v17, %v3291_v36 }
 0xbe0   :  { %v3452_v54 = vadd.f32 %v2899_v44, %v1125_v53  ;;  %v3454_v52 = vadd.f32 %v1123_v49, %v1117_v38  ;;  %v2793_v44 = vld [vmem:[#allocation12] sm:$0xff]  }
 0xbe1   :  { %2649 = vmatpush3.bf16.msra.mxu0 %v2793_v44 }
 0xbe2   :  { %2902 = vrcp.f32 %v3452_v54  ;;  %1128 = vrot.lane.b32.xlu0 %v3454_v52, %s3047_s1 }
 0xbe3   :  { %2904 = vpow2.f32 %v1106_v59 }
 0xbef   :  { %v2903_v27 = vpop.eup %2902 }
 0xbf0   :  { %1134 = vrot.lane.b32.xlu1 %v2903_v27, %s3047_s1  ;;  %v2905_v60 = vpop.eup %2904 }
 0xbf1   :  { %v1108_v28 = vadd.f32 1.0, %v2905_v60 }
 0xbf3   :  { %2906 = vrcp.f32 %v1108_v28 }
 0xbf4   :  { %522 = vrot.lane.b32.xlu1 %v493_v57, %s3042_s23 }
 0xc00   :  { %v2907_v46 = vpop.eup %2906 }
 0xc54   :  { %v1129_v58 = vpop.permute.xlu0 %1128 }
 0xc55   :  { %v1131_v61 = vmul.f32 %v2907_v46, %v1129_v58 }
 0xc62   :  { %v1135_v62 = vpop.permute.xlu1 %1134 }
 0xc63   :  { %v3465_v12 = vmul.f32 %v1135_v62, %v1131_v61 }
 0xc65   :  { %v1146_v63 = vpack.c.bf16 %v3465_v12, %v3465_v12 }
 0xc66   :  { %v523_v4 = vpop.permute.xlu1 %522 }
 0xc67   :  { %542 = vst.msk [vmem:[#allocation3 + $0x28] sm:$0xff] %vm536_vm3, %v523_v4  ;;  %1152 = vrot.lane.b32.xlu0 %v1146_v63, %s3048_s24 }
 0xc6e   :  { %v1145_v5 = vld [vmem:[#allocation3 + $0x28] sm:$0xff] }
 0xcd9   :  { %v1153_v51 = vpop.permute.xlu0 %1152 }
 0xcda   :  { %2643 = vmatmul.mubr.msk.bf16.vlgmr.msra.gmra.mxu1 %vm69_vm0, %v1153_v51 }
 0xcdb   :  { %2658 = vmatprep.mubr.msk.bf16.mxu1 %vm3045_vm1, %v3044_v0 }
 0xd9a   :  { %v1203_v7 = vpop.f32.mrf.mxu1 }
 0xd9b   :  { %v1209_v3 = vadd.f32 %v1203_v7, %v1145_v5 }
 0xd9c   :  { %v2644_v8 = vpop.f32.mrf.mxu1 }
 0xd9d   :  { %2908 = vtanh.f32 %v1209_v3  ;;  %v1211_v9 = vand.u32 2147483647, %v1209_v3  ;;  %v1210_v23 = vmin.f32 %v1209_v3, 0.0  ;;  %v1225_v49 = vsub.f32 0.0, %v1209_v3 }
 0xd9e   :  { %v1206_v11 = vpop.f32.mrf.mxu1 }
 0xd9f   :  { %v1212_v15 = vsub.f32 0.0, %v1211_v9  ;;  %v1226_v53 = vmul.f32 1.442695, %v1225_v49 }
 0xda0   :  { %v2645_v16 = vpop.f32.mrf.mxu1 }
 0xda1   :  { %v1213_v22 = vmul.f32 1.442695, %v1212_v15 }
 0xda3   :  { %2910 = vpow2.f32 %v1213_v22 }
 0xdaa   :  { %v2909_v18 = vpop.eup %2908 }
 0xdab   :  { %1240 = vrot.lane.b32.xlu1 %v2909_v18, %s3042_s23 }
 0xdb0   :  { %v2911_v19 = vpop.eup %2910 }
 0xdb1   :  { %v1215_v10 = vadd.f32 1.0, %v2911_v19 }
 0xdb3   :  { %2912 = vlog2.f32 %v1215_v10 }
 0xdc0   :  { %v2913_v21 = vpop.eup %2912 }
 0xdc1   :  { %v1217_v24 = vmul.f32 0.6931472, %v2913_v21 }
 0xdc3   :  { %v1218_v26 = vsub.f32 %v1210_v23, %v1217_v24 }
 0xdc5   :  { %1220 = vrot.lane.b32.xlu0 %v1218_v26, %s3047_s1 }
 0xe1d   :  { %v1241_v34 = vpop.permute.xlu1 %1240 }
 0xe37   :  { %v1221_v1 = vpop.permute.xlu0 %1220 }
 0xe38   :  { %v1223_v30 = vadd.f32 %v1221_v1, %v3446_v39 }
 0xe3a   :  { %v3477_v2 = vmax.f32 %v1209_v3, %v1223_v30 }
 0xe3c   :  { %v1231_v29 = vsub.f32 %v1209_v3, %v3477_v2  ;;  %v1234_v6 = vsub.f32 %v1223_v30, %v3477_v2 }
 0xe3e   :  { %v1232_v14 = vmul.f32 1.442695, %v1231_v29  ;;  %v1235_v32 = vmul.f32 1.442695, %v1234_v6 }
 0xe40   :  { %2914 = vpow2.f32 %v1232_v14 }
 0xe41   :  { %2916 = vpow2.f32 %v1235_v32  ;;  %v2794_v32 = vld [vmem:[#allocation12 + $0x8] sm:$0xff]  }
 0xe42   :  { %2655 = vmatpush3.bf16.msra.mxu1 %v2794_v32 }
 0xe43   :  { %2656 = vmatprep.subr.bf16.mxu1 %v3044_v0 }
 0xe4d   :  { %v2915_v33 = vpop.eup %2914 }
 0xe4e   :  { %v2917_v37 = vpop.eup %2916  ;;  %v1243_v35 = vmul.f32 %v2915_v33, %v1241_v34 }
 0xe4f   :  { %v1245_v40 = vmul.f32 %v2917_v37, %v3452_v54  ;;  %v1237_v42 = vmul.f32 %v2917_v37, %v3454_v52  ;;  %v501_v37 = vadd.f32 %v3346_v50, %v3291_v36 }
 0xe51   :  { %v3483_v20 = vadd.f32 %v2915_v33, %v1245_v40  ;;  %v3485_v39 = vadd.f32 %v1243_v35, %v1237_v42  ;;  %v2795_v33 = vld [vmem:[#allocation12] sm:$0xff]  }
 0xe52   :  { %2657 = vmatpush3.bf16.msra.mxu1 %v2795_v33 }
 0xe53   :  { %2918 = vrcp.f32 %v3483_v20  ;;  %1248 = vrot.lane.b32.xlu0 %v3485_v39, %s3047_s1 }
 0xe54   :  { %2920 = vpow2.f32 %v1226_v53 }
 0xe60   :  { %v2919_v47 = vpop.eup %2918 }
 0xe61   :  { %1254 = vrot.lane.b32.xlu1 %v2919_v47, %s3047_s1  ;;  %v2921_v38 = vpop.eup %2920 }
 0xe62   :  { %v1228_v54 = vadd.f32 1.0, %v2921_v38 }
 0xe64   :  { %2922 = vrcp.f32 %v1228_v54 }
 0xe65   :  { %524 = vrot.lane.b32.xlu1 %v498_v48, %s3042_s23 }
 0xe71   :  { %v2923_v55 = vpop.eup %2922 }
 0xec5   :  { %v1249_v52 = vpop.permute.xlu0 %1248 }
 0xec6   :  { %v1251_v56 = vmul.f32 %v2923_v55, %v1249_v52 }
 0xed3   :  { %v1255_v27 = vpop.permute.xlu1 %1254 }
 0xed4   :  { %v3495_v57 = vmul.f32 %v1255_v27, %v1251_v56 }
 0xed6   :  { %v1266_v41 = vpack.c.bf16 %v3495_v57, %v3495_v57 }
 0xed7   :  { %v525_v59 = vpop.permute.xlu1 %524 }
 0xed8   :  { %543 = vst.msk [vmem:[#allocation3 + $0x30] sm:$0xff] %vm536_vm3, %v525_v59  ;;  %1272 = vrot.lane.b32.xlu0 %v1266_v41, %s3048_s24 }
 0xedf   :  { %v1265_v60 = vld [vmem:[#allocation3 + $0x30] sm:$0xff] }
 0xf4a   :  { %v1273_v17 = vpop.permute.xlu0 %1272 }
 0xf4b   :  { %2651 = vmatmul.mubr.msk.bf16.vlgmr.msra.gmra.mxu0 %vm69_vm0, %v1273_v17 }
0x100b   :  { %v1323_v28 = vpop.f32.mrf.mxu0 }
0x100c   :  { %v1329_v58 = vadd.f32 %v1323_v28, %v1265_v60 }
0x100d   :  { %v2652_v46 = vpop.f32.mrf.mxu0 }
0x100e   :  { %2924 = vtanh.f32 %v1329_v58  ;;  %v1331_v61 = vand.u32 2147483647, %v1329_v58  ;;  %v1330_v9 = vmin.f32 %v1329_v58, 0.0  ;;  %v1345_v35 = vsub.f32 0.0, %v1329_v58 }
0x100f   :  { %v1326_v62 = vpop.f32.mrf.mxu0 }
0x1010   :  { %v1332_v63 = vsub.f32 0.0, %v1331_v61  ;;  %v1346_v40 = vmul.f32 1.442695, %v1345_v35 }
0x1011   :  { %v2653_v4 = vpop.f32.mrf.mxu0 }
0x1012   :  { %v1333_v51 = vmul.f32 1.442695, %v1332_v63 }
0x1014   :  { %2926 = vpow2.f32 %v1333_v51 }
0x101b   :  { %v2925_v5 = vpop.eup %2924 }
0x101c   :  { %1360 = vrot.lane.b32.xlu1 %v2925_v5, %s3042_s23 }
0x1021   :  { %v2927_v7 = vpop.eup %2926 }
0x1022   :  { %v1335_v3 = vadd.f32 1.0, %v2927_v7 }
0x1024   :  { %2928 = vlog2.f32 %v1335_v3 }
0x1031   :  { %v2929_v8 = vpop.eup %2928 }
0x1032   :  { %v1337_v11 = vmul.f32 0.6931472, %v2929_v8 }
0x1034   :  { %v1338_v15 = vsub.f32 %v1330_v9, %v1337_v11 }
0x1036   :  { %1340 = vrot.lane.b32.xlu0 %v1338_v15, %s3047_s1 }
0x108e   :  { %v1361_v26 = vpop.permute.xlu1 %1360 }
0x10a8   :  { %v1341_v16 = vpop.permute.xlu0 %1340 }
0x10a9   :  { %v1343_v22 = vadd.f32 %v1341_v16, %v3477_v2 }
0x10ab   :  { %v3505_v18 = vmax.f32 %v1329_v58, %v1343_v22 }
0x10ad   :  { %v1351_v19 = vsub.f32 %v1329_v58, %v3505_v18  ;;  %v1354_v10 = vsub.f32 %v1343_v22, %v3505_v18 }
0x10af   :  { %v1352_v21 = vmul.f32 1.442695, %v1351_v19  ;;  %v1355_v23 = vmul.f32 1.442695, %v1354_v10  ;;  %v3551_v10 = vld [vmem:[%s3750_s8 + $0x18] sm:$0xff] }
0x10b0   :  { %2662 = vmatprep.subr.mxu0 %v3551_v10 }
0x10b1   :  { %2930 = vpow2.f32 %v1352_v21  ;;  %v3557_v21 = vld [vmem:[%s3750_s8 + $0x10] sm:$0xff]  ;;  %2663 = vmatpush3.msra.mxu0 %v3551_v10 }
0x10b2   :  { %2932 = vpow2.f32 %v1355_v23  ;;  %2664 = vmatprep.subr.mxu0 %v3557_v21  ;;  %v3573_v23 = vld [vmem:[%s3750_s8] sm:$0xff] }
0x10b3   :  { %2665 = vmatpush3.msra.mxu0 %v3557_v21 }
0x10be   :  { %v2931_v24 = vpop.eup %2930 }
0x10bf   :  { %v2933_v1 = vpop.eup %2932  ;;  %v1363_v30 = vmul.f32 %v2931_v24, %v1361_v26 }
0x10c0   :  { %v1365_v29 = vmul.f32 %v2933_v1, %v3483_v20  ;;  %v1357_v6 = vmul.f32 %v2933_v1, %v3485_v39 }
0x10c2   :  { %v3511_v14 = vadd.f32 %v2931_v24, %v1365_v29  ;;  %v3513_v2 = vadd.f32 %v1363_v30, %v1357_v6 }
0x10c4   :  { %2934 = vrcp.f32 %v3511_v14  ;;  %1368 = vrot.lane.b32.xlu0 %v3513_v2, %s3047_s1 }
0x10c5   :  { %2936 = vpow2.f32 %v1346_v40 }
0x10d1   :  { %v2935_v34 = vpop.eup %2934 }
0x10d2   :  { %1374 = vrot.lane.b32.xlu1 %v2935_v34, %s3047_s1  ;;  %v2937_v42 = vpop.eup %2936 }
0x10d3   :  { %v1348_v20 = vadd.f32 1.0, %v2937_v42 }
0x10d5   :  { %2938 = vrcp.f32 %v1348_v20 }
0x10d6   :  { %526 = vrot.lane.b32.xlu1 %v501_v37, %s3042_s23 }
0x10e2   :  { %v2939_v43 = vpop.eup %2938 }
0x1136   :  { %v1369_v39 = vpop.permute.xlu0 %1368 }
0x1137   :  { %v1371_v44 = vmul.f32 %v2939_v43, %v1369_v39 }
0x1144   :  { %v1375_v47 = vpop.permute.xlu1 %1374 }
0x1145   :  { %v3523_v0 = vmul.f32 %v1375_v47, %v1371_v44  ;;  %v3620_v47 = vld [vmem:[%s3751_s9] sm:$0xf] }
0x1146   :  { %2682 = vmatprep.subr.msk.mxu1 %vm1675_vm4, %v3620_v47 }
0x1147   :  { %v1386_v48 = vpack.c.bf16 %v3523_v0, %v3523_v0 }
0x1148   :  { %v527_v49 = vpop.permute.xlu1 %526 }
0x1149   :  { %544 = vst.msk [vmem:[#allocation3 + $0x38] sm:$0xff] %vm536_vm3, %v527_v49  ;;  %1392 = vrot.lane.b32.xlu0 %v1386_v48, %s3048_s24 }
0x1150   :  { %v1385_v50 = vld [vmem:[#allocation3 + $0x38] sm:$0xff] }
0x11bb   :  { %v1393_v36 = vpop.permute.xlu0 %1392 }
0x11bc   :  { %2659 = vmatmul.mubr.msk.bf16.vlgmr.msra.gmra.mxu1 %vm69_vm0, %v1393_v36 }
0x11bd   :  { %2683 = vmatpush3.msk.msra.mxu1 %vm1675_vm4, %v3620_v47 }
0x11be   :  { %2716 = vmatprep.subr.msk.mxu1 %vm1675_vm4, %v3620_v47 }
0x127c   :  { %v1443_v53 = vpop.f32.mrf.mxu1 }
0x127d   :  { %v3530_v38 = vadd.f32 %v1443_v53, %v1385_v50 }
0x127e   :  { %v2660_v54 = vpop.f32.mrf.mxu1 }
0x127f   :  { %2940 = vtanh.f32 %v3530_v38  ;;  %v1451_v52 = vand.u32 2147483647, %v3530_v38  ;;  %v1450_v58 = vmin.f32 %v3530_v38, 0.0 }
0x1280   :  { %v1446_v55 = vpop.f32.mrf.mxu1 }
0x1281   :  { %v1452_v56 = vsub.f32 0.0, %v1451_v52 }
0x1282   :  { %v2661_v27 = vpop.f32.mrf.mxu1 }
0x1283   :  { %v1453_v41 = vmul.f32 1.442695, %v1452_v56 }
0x1285   :  { %2942 = vpow2.f32 %v1453_v41 }
0x128c   :  { %v2941_v59 = vpop.eup %2940 }
0x128d   :  { %1480 = vrot.lane.b32.xlu1 %v2941_v59, %s3042_s23 }
0x1292   :  { %v2943_v17 = vpop.eup %2942 }
0x1293   :  { %v1455_v60 = vadd.f32 1.0, %v2943_v17 }
0x1295   :  { %2944 = vlog2.f32 %v1455_v60 }
0x12a2   :  { %v2945_v28 = vpop.eup %2944 }
0x12a3   :  { %v1457_v46 = vmul.f32 0.6931472, %v2945_v28 }
0x12a5   :  { %v1458_v61 = vsub.f32 %v1450_v58, %v1457_v46 }
0x12a7   :  { %1460 = vrot.lane.b32.xlu0 %v1458_v61, %s3047_s1 }
0x12ff   :  { %v1481_v9 = vpop.permute.xlu1 %1480 }
0x1319   :  { %v1461_v62 = vpop.permute.xlu0 %1460 }
0x131a   :  { %v1463_v63 = vadd.f32 %v1461_v62, %v3505_v18 }
0x131c   :  { %v1464_v4 = vmax.f32 %v3530_v38, %v1463_v63 }
0x131e   :  { %v1471_v51 = vsub.f32 %v3530_v38, %v1464_v4  ;;  %v1474_v5 = vsub.f32 %v1463_v63, %v1464_v4  ;;  %1507 = vst.msk [vmem:[#allocation8] sm:$0xff] %vm69_vm0, %v1464_v4 }
0x1320   :  { %v1472_v7 = vmul.f32 1.442695, %v1471_v51  ;;  %v1475_v3 = vmul.f32 1.442695, %v1474_v5 }
0x1322   :  { %2946 = vpow2.f32 %v1472_v7 }
0x1323   :  { %2948 = vpow2.f32 %v1475_v3 }
0x132f   :  { %v2947_v8 = vpop.eup %2946 }
0x1330   :  { %v2949_v11 = vpop.eup %2948  ;;  %v1483_v15 = vmul.f32 %v2947_v8, %v1481_v9 }
0x1331   :  { %v1485_v16 = vmul.f32 %v2949_v11, %v3511_v14  ;;  %v1477_v22 = vmul.f32 %v2949_v11, %v3513_v2 }
0x1333   :  { %v1486_v18 = vadd.f32 %v2947_v8, %v1485_v16  ;;  %v1484_v19 = vadd.f32 %v1483_v15, %v1477_v22 }
0x1335   :  { %2950 = vrcp.f32 %v1486_v18  ;;  %1506 = vst.msk [vmem:[#allocation7] sm:$0xff] %vm69_vm0, %v1486_v18  ;;  %1488 = vrot.lane.b32.xlu0 %v1484_v19, %s3047_s1  ;;  %1505 = vst.msk [vmem:[#allocation6] sm:$0xff] %vm69_vm0, %v1484_v19 }
0x1339   :  { %660 = vrot.lane.b32.xlu0 %v3333_v45, %s3048_s24  ;;  %v3567_v45 = vld [vmem:[%s3750_s8 + $0x8] sm:$0xff] }
0x133a   :  { %2666 = vmatprep.subr.mxu0 %v3567_v45 }
0x133b   :  { %2667 = vmatpush3.msra.mxu0 %v3567_v45 }
0x133c   :  { %2668 = vmatprep.subr.mxu0 %v3573_v23 }
0x133d   :  { %899 = vrot.lane.b32.xlu0 %v3403_v25, %s3048_s24  ;;  %2669 = vmatpush3.msra.mxu0 %v3573_v23 }
0x133e   :  { %2696 = vmatprep.subr.mxu0 %v3551_v10 }
0x1341   :  { %1139 = vrot.lane.b32.xlu0 %v3465_v12, %s3048_s24  ;;  %v1465_v12 = vsub.f32 0.0, %v3530_v38 }
0x1342   :  { %v2951_v25 = vpop.eup %2950 }
0x1343   :  { %1494 = vrot.lane.b32.xlu1 %v2951_v25, %s3047_s1  ;;  %v1466_v24 = vmul.f32 1.442695, %v1465_v12 }
0x1345   :  { %1379 = vrot.lane.b32.xlu0 %v3523_v0, %s3048_s24  ;;  %2952 = vpow2.f32 %v1466_v24 }
0x1347   :  { %779 = vrot.lane.b32.xlu1 %v3372_v31, %s3048_s24 }
0x134b   :  { %1019 = vrot.lane.b32.xlu1 %v3434_v13, %s3048_s24 }
0x134f   :  { %1259 = vrot.lane.b32.xlu1 %v3495_v57, %s3048_s24 }
0x1352   :  { %v2953_v26 = vpop.eup %2952 }
0x1353   :  { %v1468_v1 = vadd.f32 1.0, %v2953_v26 }
0x1355   :  { %2954 = vrcp.f32 %v1468_v1 }
0x1362   :  { %v2955_v31 = vpop.eup %2954 }
0x13a7   :  { %v1489_v30 = vpop.permute.xlu0 %1488 }
0x13a8   :  { %v1491_v2 = vmul.f32 %v2955_v31, %v1489_v30 }
0x13ab   :  { %v661_v29 = vpop.permute.xlu0 %660 }
0x13ac   :  { %663 = vst.msk [vmem:[#allocation4] sm:$0xff] %vm69_vm0, %v661_v29 }
0x13af   :  { %v900_v6 = vpop.permute.xlu0 %899 }
0x13b0   :  { %903 = vst.msk [vmem:[#allocation4 + $0x10] sm:$0xff] %vm69_vm0, %v900_v6 }
0x13b3   :  { %v1140_v14 = vpop.permute.xlu0 %1139  ;;  %v3593_v13 = vld [vmem:[#allocation4] sm:$0xff] }
0x13b4   :  { %1143 = vst.msk [vmem:[#allocation4 + $0x20] sm:$0xff] %vm69_vm0, %v1140_v14  ;;  %2670 = vmatprep.mubr.msk.f32.mxu0 %vm69_vm0, %v3593_v13 }
0x13b5   :  { %v1495_v57 = vpop.permute.xlu1 %1494 }
0x13b6   :  { %v1497_v32 = vmul.f32 %v1495_v57, %v1491_v2 }
0x13b7   :  { %v1380_v33 = vpop.permute.xlu0 %1379  ;;  %v1510_v42 = vld [vmem:[#allocation4 + $0x10] sm:$0xff] }
0x13b8   :  { %1383 = vst.msk [vmem:[#allocation4 + $0x30] sm:$0xff] %vm69_vm0, %v1380_v33  ;;  %1499 = vrot.lane.b32.xlu1 %v1497_v32, %s3048_s24 }
0x13b9   :  { %v780_v34 = vpop.permute.xlu1 %779 }
0x13ba   :  { %783 = vst.msk [vmem:[#allocation4 + $0x8] sm:$0xff] %vm69_vm0, %v780_v34 }
0x13bb   :  { %v1512_v39 = vld [vmem:[#allocation4 + $0x20] sm:$0xff] }
0x13bd   :  { %v1020_v37 = vpop.permute.xlu1 %1019 }
0x13be   :  { %1023 = vst.msk [vmem:[#allocation4 + $0x18] sm:$0xff] %vm69_vm0, %v1020_v37 }
0x13bf   :  { %v1514_v44 = vld [vmem:[#allocation4 + $0x30] sm:$0xff] }
0x13c1   :  { %v1260_v35 = vpop.permute.xlu1 %1259  ;;  %v1509_v40 = vld [vmem:[#allocation4 + $0x8] sm:$0xff] }
0x13c2   :  { %1263 = vst.msk [vmem:[#allocation4 + $0x28] sm:$0xff] %vm69_vm0, %v1260_v35  ;;  %2671 = vmatmul.mubr.msk.f32.vlgmr.msra.gmra.mxu0 %vm69_vm0, %v1509_v40 }
0x13c3   :  { %2673 = vmatprep.mubr.msk.f32.mxu0 %vm69_vm0, %v1510_v42  ;;  %2697 = vmatpush3.msra.mxu0 %v3551_v10 }
0x13c4   :  { %2698 = vmatprep.subr.mxu0 %v3557_v21 }
0x13c5   :  { %v1511_v20 = vld [vmem:[#allocation4 + $0x18] sm:$0xff]  ;;  %2699 = vmatpush3.msra.mxu0 %v3557_v21 }
0x13c6   :  { %2674 = vmatmul.mubr.msk.f32.gmra.mxu0 %vm69_vm0, %v1511_v20  ;;  %2700 = vmatprep.subr.mxu0 %v3567_v45 }
0x13c7   :  { %2676 = vmatprep.mubr.msk.f32.mxu0 %vm69_vm0, %v1512_v39  ;;  %2701 = vmatpush3.msra.mxu0 %v3567_v45 }
0x13c8   :  { %2702 = vmatprep.subr.mxu0 %v3573_v23 }
0x13c9   :  { %v1513_v43 = vld [vmem:[#allocation4 + $0x28] sm:$0xff]  ;;  %2703 = vmatpush3.msra.mxu0 %v3573_v23 }
0x13ca   :  { %2677 = vmatmul.mubr.msk.f32.gmra.mxu0 %vm69_vm0, %v1513_v43  ;;  %2730 = vmatprep.subr.mxu0 %v3551_v10 }
0x13cb   :  { %2679 = vmatprep.mubr.msk.f32.mxu0 %vm69_vm0, %v1514_v44 }
0x142a   :  { %v1500_v0 = vpop.permute.xlu1 %1499 }
0x142b   :  { %1503 = vst.msk [vmem:[#allocation4 + $0x38] sm:$0xff] %vm69_vm0, %v1500_v0  ;;  %1504 = vst.msk [vmem:[#allocation5] sm:$0xff] %vm69_vm0, %v1500_v0 }
0x1432   :  { %v1515_v48 = vld [vmem:[#allocation4 + $0x38] sm:$0xff] }
0x1433   :  { %2680 = vmatmul.mubr.msk.f32.gmra.mxu0 %vm69_vm0, %v1515_v48 }
0x1482   :  { %v2672_v49 = vpop.f32.mrf.mxu0 }
0x1484   :  { %v1610_v36 = vpop.f32.mrf.mxu0 }
0x1485   :  { %2684 = vmatprep.mubr.msk.f32.mxu1 %vm1650_vm5, %v1610_v36 }
0x1486   :  { %v2675_v50 = vpop.f32.mrf.mxu0  ;;  %2685 = vmatmul.mubr.msk.f32.vlgmr.msra.gmra.mxu1 %vm1650_vm5, %v2672_v49 }
0x1487   :  { %2717 = vmatpush3.msk.msra.mxu1 %vm1675_vm4, %v3620_v47 }
0x1488   :  { %v1620_v53 = vpop.f32.mrf.mxu0  ;;  %2750 = vmatprep.subr.msk.mxu1 %vm1675_vm4, %v3620_v47 }
0x1489   :  { %2687 = vmatprep.mubr.msk.f32.mxu1 %vm1650_vm5, %v1620_v53 }
0x148a   :  { %v2678_v38 = vpop.f32.mrf.mxu0  ;;  %2688 = vmatmul.mubr.msk.f32.gmra.mxu1 %vm1650_vm5, %v2675_v50 }
0x148c   :  { %v1630_v54 = vpop.f32.mrf.mxu0 }
0x148d   :  { %2690 = vmatprep.mubr.msk.f32.mxu1 %vm1650_vm5, %v1630_v54 }
0x148e   :  { %2691 = vmatmul.mubr.msk.f32.gmra.mxu1 %vm1650_vm5, %v2678_v38 }
0x14f3   :  { %v2681_v52 = vpop.f32.mrf.mxu0 }
0x14f5   :  { %v1640_v55 = vpop.f32.mrf.mxu0 }
0x14f6   :  { %2693 = vmatprep.mubr.msk.f32.mxu1 %vm1650_vm5, %v1640_v55 }
0x14f7   :  { %2694 = vmatmul.mubr.msk.f32.gmra.mxu1 %vm1650_vm5, %v2681_v52 }
0x1546   :  { %v2686_v56 = vpop.f32.mrf.mxu1 }
0x1547   :  { %v1785_v59 = vsub.f32 %v1509_v40, %v2686_v56 }
0x1548   :  { %v1745_v27 = vpop.f32.mrf.mxu1 }
0x1549   :  { %v1784_v41 = vsub.f32 %v3593_v13, %v1745_v27 }
0x154a   :  { %v2689_v17 = vpop.f32.mrf.mxu1 }
0x154b   :  { %2704 = vmatprep.mubr.msk.f32.mxu0 %vm69_vm0, %v1784_v41  ;;  %v1787_v58 = vsub.f32 %v1511_v20, %v2689_v17  ;;  %v2465_v17 = vld [vmem:[%s3749_s7] ss:$0 sm:$0xff]  ;;  %s3049_s7 = smov [#allocation14]  }
0x154c   :  { %v1755_v60 = vpop.f32.mrf.mxu1  ;;  %2705 = vmatmul.mubr.msk.f32.vlgmr.msra.gmra.mxu0 %vm69_vm0, %v1785_v59  ;;  %s2368_s11 = sshll.u32 %s3049_s7, 4  ;;  %s2369_s11 = int_to_ptr.vmem [resolvable:$true] %s2368_s11 }
0x154d   :  { %v1786_v28 = vsub.f32 %v1510_v42, %v1755_v60  ;;  %2731 = vmatpush3.msra.mxu0 %v3551_v10  ;;  %s3012_s6 = scalar_lea.vmem %s2369_s11, 1024  ;;  %p3017_p11 = scmp.lt.s32.totalorder %s2369_s11, %s2369_s11 }
0x154e   :  { %v2692_v46 = vpop.f32.mrf.mxu1  ;;  %2732 = vmatprep.subr.mxu0 %v3557_v21  ;;  %p3013_p10 = scmp.ne.s32.totalorder %s2369_s11, %s3012_s6  ;;  %p3018_p12 = scmp.lt.s32.totalorder %s3012_s6, %s3012_s6 }
0x154f   :  { %2707 = vmatprep.mubr.msk.f32.mxu0 %vm69_vm0, %v1786_v28  ;;  %2733 = vmatpush3.msra.mxu0 %v3557_v21  ;;  %v1789_v63 = vsub.f32 %v1513_v43, %v2692_v46 }
0x1550   :  { %v1765_v61 = vpop.f32.mrf.mxu1  ;;  %2708 = vmatmul.mubr.msk.f32.gmra.mxu0 %vm69_vm0, %v1787_v58  ;;  %2734 = vmatprep.subr.mxu0 %v3567_v45  ;;  %p3019_p13 = por %p3018_p12, %p3017_p11 }
0x1551   :  { %v1788_v62 = vsub.f32 %v1512_v39, %v1765_v61  ;;  %2735 = vmatpush3.msra.mxu0 %v3567_v45 }
0x1552   :  { %2736 = vmatprep.subr.mxu0 %v3573_v23  ;;  %p3020_p0 = pnand %p3019_p13, %p3013_p10 }
0x1553   :  { %2710 = vmatprep.mubr.msk.f32.mxu0 %vm69_vm0, %v1788_v62  ;;  %2737 = vmatpush3.msra.mxu0 %v3573_v23 }
0x1554   :  { %2711 = vmatmul.mubr.msk.f32.gmra.mxu0 %vm69_vm0, %v1789_v63 }
0x15b7   :  { %v2695_v4 = vpop.f32.mrf.mxu1 }
0x15b8   :  { %v1791_v7 = vsub.f32 %v1515_v48, %v2695_v4 }
0x15b9   :  { %v1775_v51 = vpop.f32.mrf.mxu1 }
0x15ba   :  { %v1790_v5 = vsub.f32 %v1514_v44, %v1775_v51 }
0x15bc   :  { %2713 = vmatprep.mubr.msk.f32.mxu0 %vm69_vm0, %v1790_v5 }
0x15bd   :  { %2714 = vmatmul.mubr.msk.f32.gmra.mxu0 %vm69_vm0, %v1791_v7 }
0x160c   :  { %v2706_v3 = vpop.f32.mrf.mxu0 }
0x160e   :  { %v1882_v8 = vpop.f32.mrf.mxu0 }
0x160f   :  { %2718 = vmatprep.mubr.msk.f32.mxu1 %vm1650_vm5, %v1882_v8 }
0x1610   :  { %v2709_v9 = vpop.f32.mrf.mxu0  ;;  %2719 = vmatmul.mubr.msk.f32.vlgmr.msra.gmra.mxu1 %vm1650_vm5, %v2706_v3 }
0x1611   :  { %2751 = vmatpush3.msk.msra.mxu1 %vm1675_vm4, %v3620_v47 }
0x1612   :  { %v1892_v11 = vpop.f32.mrf.mxu0 }
0x1613   :  { %2721 = vmatprep.mubr.msk.f32.mxu1 %vm1650_vm5, %v1892_v11 }
0x1614   :  { %v2712_v15 = vpop.f32.mrf.mxu0  ;;  %2722 = vmatmul.mubr.msk.f32.gmra.mxu1 %vm1650_vm5, %v2709_v9 }
0x1616   :  { %v1902_v16 = vpop.f32.mrf.mxu0 }
0x1617   :  { %2724 = vmatprep.mubr.msk.f32.mxu1 %vm1650_vm5, %v1902_v16 }
0x1618   :  { %2725 = vmatmul.mubr.msk.f32.gmra.mxu1 %vm1650_vm5, %v2712_v15 }
0x167d   :  { %v2715_v22 = vpop.f32.mrf.mxu0 }
0x167f   :  { %v1912_v18 = vpop.f32.mrf.mxu0 }
0x1680   :  { %2727 = vmatprep.mubr.msk.f32.mxu1 %vm1650_vm5, %v1912_v18 }
0x1681   :  { %2728 = vmatmul.mubr.msk.f32.gmra.mxu1 %vm1650_vm5, %v2715_v22 }
0x16d0   :  { %v2720_v19 = vpop.f32.mrf.mxu1 }
0x16d1   :  { %v3669_v10 = vsub.f32 %v1785_v59, %v2720_v19 }
0x16d2   :  { %v2011_v21 = vpop.f32.mrf.mxu1 }
0x16d3   :  { %v3671_v45 = vsub.f32 %v1784_v41, %v2011_v21  ;;  %v2059_v12 = vmul.f32 %v3669_v10, %v3669_v10  ;;  %v2203_v60 = vmul.f32 %v2465_v17, %v3669_v10 }
0x16d4   :  { %v2723_v23 = vpop.f32.mrf.mxu1 }
0x16d5   :  { %v2058_v25 = vmul.f32 %v3671_v45, %v3671_v45  ;;  %v3677_v24 = vsub.f32 %v1787_v58, %v2723_v23  ;;  %v2202_v58 = vmul.f32 %v2465_v17, %v3671_v45 }
0x16d6   :  { %v2021_v26 = vpop.f32.mrf.mxu1 }
0x16d7   :  { %v3679_v1 = vsub.f32 %v1786_v28, %v2021_v26  ;;  %2738 = vmatprep.mubr.msk.f32.mxu0 %vm69_vm0, %v2058_v25  ;;  %v2061_v6 = vmul.f32 %v3677_v24, %v3677_v24 }
0x16d8   :  { %v2726_v30 = vpop.f32.mrf.mxu1  ;;  %2739 = vmatmul.mubr.msk.f32.vlgmr.msra.gmra.mxu0 %vm69_vm0, %v2059_v12 }
0x16d9   :  { %v2060_v29 = vmul.f32 %v3679_v1, %v3679_v1  ;;  %v3687_v31 = vsub.f32 %v1789_v63, %v2726_v30  ;;  %v2204_v51 = vmul.f32 %v2465_v17, %v3679_v1 }
0x16da   :  { %v2031_v14 = vpop.f32.mrf.mxu1 }
0x16db   :  { %v3689_v13 = vsub.f32 %v1788_v62, %v2031_v14  ;;  %2741 = vmatprep.mubr.msk.f32.mxu0 %vm69_vm0, %v2060_v29  ;;  %v2063_v57 = vmul.f32 %v3687_v31, %v3687_v31  ;;  %v2205_v62 = vmul.f32 %v2465_v17, %v3677_v24  ;;  %v2207_v3 = vmul.f32 %v2465_v17, %v3687_v31 }
0x16dc   :  { %2742 = vmatmul.mubr.msk.f32.gmra.mxu0 %vm69_vm0, %v2061_v6 }
0x16dd   :  { %v2062_v2 = vmul.f32 %v3689_v13, %v3689_v13  ;;  %v2206_v11 = vmul.f32 %v2465_v17, %v3689_v13 }
0x16df   :  { %2744 = vmatprep.mubr.msk.f32.mxu0 %vm69_vm0, %v2062_v2 }
0x16e0   :  { %2745 = vmatmul.mubr.msk.f32.gmra.mxu0 %vm69_vm0, %v2063_v57 }
0x1741   :  { %v2729_v32 = vpop.f32.mrf.mxu1 }
0x1742   :  { %v3699_v33 = vsub.f32 %v1791_v7, %v2729_v32 }
0x1743   :  { %v2041_v34 = vpop.f32.mrf.mxu1 }
0x1744   :  { %v3701_v37 = vsub.f32 %v1790_v5, %v2041_v34  ;;  %v2065_v40 = vmul.f32 %v3699_v33, %v3699_v33  ;;  %v2209_v45 = vmul.f32 %v2465_v17, %v3699_v33 }
0x1746   :  { %v2064_v35 = vmul.f32 %v3701_v37, %v3701_v37  ;;  %v2208_v25 = vmul.f32 %v2465_v17, %v3701_v37 }
0x1748   :  { %2747 = vmatprep.mubr.msk.f32.mxu0 %vm69_vm0, %v2064_v35 }
0x1749   :  { %2748 = vmatmul.mubr.msk.f32.gmra.mxu0 %vm69_vm0, %v2065_v40 }
0x1798   :  { %v2740_v42 = vpop.f32.mrf.mxu0 }
0x179a   :  { %v2156_v20 = vpop.f32.mrf.mxu0 }
0x179b   :  { %2752 = vmatprep.mubr.msk.f32.mxu1 %vm1650_vm5, %v2156_v20 }
0x179c   :  { %v2743_v39 = vpop.f32.mrf.mxu0  ;;  %2753 = vmatmul.mubr.msk.f32.vlgmr.msra.gmra.mxu1 %vm1650_vm5, %v2740_v42 }
0x179e   :  { %v2166_v43 = vpop.f32.mrf.mxu0 }
0x179f   :  { %2755 = vmatprep.mubr.msk.f32.mxu1 %vm1650_vm5, %v2166_v43 }
0x17a0   :  { %v2746_v44 = vpop.f32.mrf.mxu0  ;;  %2756 = vmatmul.mubr.msk.f32.gmra.mxu1 %vm1650_vm5, %v2743_v39 }
0x17a2   :  { %v2176_v47 = vpop.f32.mrf.mxu0 }
0x17a3   :  { %2758 = vmatprep.mubr.msk.f32.mxu1 %vm1650_vm5, %v2176_v47 }
0x17a4   :  { %2759 = vmatmul.mubr.msk.f32.gmra.mxu1 %vm1650_vm5, %v2746_v44 }
0x1809   :  { %v2749_v0 = vpop.f32.mrf.mxu0 }
0x180b   :  { %v2186_v48 = vpop.f32.mrf.mxu0 }
0x180c   :  { %2761 = vmatprep.mubr.msk.f32.mxu1 %vm1650_vm5, %v2186_v48 }
0x180d   :  { %2762 = vmatmul.mubr.msk.f32.gmra.mxu1 %vm1650_vm5, %v2749_v0 }
0x185c   :  { %v2754_v49 = vpop.f32.mrf.mxu1 }
0x185d   :  { %v2306_v36 = vadd.f32 1e-05, %v2754_v49 }
0x185e   :  { %v2300_v50 = vpop.f32.mrf.mxu1 }
0x185f   :  { %2956 = vrsqrt.f32 %v2306_v36  ;;  %v2301_v53 = vadd.f32 1e-05, %v2300_v50 }
0x1860   :  { %v2757_v38 = vpop.f32.mrf.mxu1 }
0x1861   :  { %2958 = vrsqrt.f32 %v2301_v53  ;;  %v2316_v54 = vadd.f32 1e-05, %v2757_v38 }
0x1862   :  { %v2310_v52 = vpop.f32.mrf.mxu1 }
0x1863   :  { %2960 = vrsqrt.f32 %v2316_v54  ;;  %v2311_v55 = vadd.f32 1e-05, %v2310_v52 }
0x1864   :  { %v2760_v56 = vpop.f32.mrf.mxu1 }
0x1865   :  { %2962 = vrsqrt.f32 %v2311_v55  ;;  %v2326_v27 = vadd.f32 1e-05, %v2760_v56 }
0x1866   :  { %v2320_v41 = vpop.f32.mrf.mxu1 }
0x1867   :  { %2964 = vrsqrt.f32 %v2326_v27  ;;  %v2321_v59 = vadd.f32 1e-05, %v2320_v41 }
0x1869   :  { %2966 = vrsqrt.f32 %v2321_v59 }
0x186c   :  { %v2957_v28 = vpop.eup %2956 }
0x186d   :  { %v2348_v46 = vmul.f32 %v2957_v28, %v2203_v60 }
0x186e   :  { %v2959_v61 = vpop.eup %2958 }
0x186f   :  { %2356 = vst.msk [vmem:[#allocation14 + $0x8] sm:$0xff] %vm69_vm0, %v2348_v46  ;;  %v2347_v63 = vmul.f32 %v2959_v61, %v2202_v58 }
0x1870   :  { %v2961_v4 = vpop.eup %2960 }
0x1871   :  { %2355 = vst.msk [vmem:[#allocation14] sm:$0xff] %vm69_vm0, %v2347_v63  ;;  %v2350_v5 = vmul.f32 %v2961_v4, %v2205_v62 }
0x1872   :  { %v2963_v7 = vpop.eup %2962 }
0x1873   :  { %2358 = vst.msk [vmem:[#allocation14 + $0x18] sm:$0xff] %vm69_vm0, %v2350_v5  ;;  %v2349_v8 = vmul.f32 %v2963_v7, %v2204_v51 }
0x1874   :  { %v2965_v9 = vpop.eup %2964 }
0x1875   :  { %2357 = vst.msk [vmem:[#allocation14 + $0x10] sm:$0xff] %vm69_vm0, %v2349_v8  ;;  %v2352_v15 = vmul.f32 %v2965_v9, %v2207_v3 }
0x1876   :  { %v2967_v16 = vpop.eup %2966 }
0x1877   :  { %2360 = vst.msk [vmem:[#allocation14 + $0x28] sm:$0xff] %vm69_vm0, %v2352_v15  ;;  %v2351_v22 = vmul.f32 %v2967_v16, %v2206_v11 }
0x1879   :  { %2359 = vst.msk [vmem:[#allocation14 + $0x20] sm:$0xff] %vm69_vm0, %v2351_v22 }
0x18cd   :  { %v2763_v18 = vpop.f32.mrf.mxu1 }
0x18ce   :  { %v2336_v19 = vadd.f32 1e-05, %v2763_v18 }
0x18cf   :  { %v2330_v10 = vpop.f32.mrf.mxu1 }
0x18d0   :  { %2968 = vrsqrt.f32 %v2336_v19  ;;  %v2331_v21 = vadd.f32 1e-05, %v2330_v10 }
0x18d2   :  { %2970 = vrsqrt.f32 %v2331_v21 }
0x18dd   :  { %v2969_v23 = vpop.eup %2968 }
0x18de   :  { %v2354_v12 = vmul.f32 %v2969_v23, %v2209_v45 }
0x18df   :  { %v2971_v24 = vpop.eup %2970 }
0x18e0   :  { %2362 = vst.msk [vmem:[#allocation14 + $0x38] sm:$0xff] %vm69_vm0, %v2354_v12  ;;  %v2353_v26 = vmul.f32 %v2971_v24, %v2208_v25 }
0x18e2   :  { %2361 = vst.msk [vmem:[#allocation14 + $0x30] sm:$0xff] %vm69_vm0, %v2353_v26 }
0x18e3   :  { %3023 = shalt.err (!%p3020_p0)
}
0x18e4   :  { %2374 = dma.vmem_to_hbm [thread:$0]  %s2369_s11, 1024, %s3752_s10, [#allocation11], %s3039_s16, %s3039_s16, %s3040_s17  }
0x18e5   :  { %3036 = dma.done.wait [#allocation11], 1024  }
0x18e6   :  { %3037 = vsyncadd [#allocation11], 4294966272 }
0x18e7   :  { %2378 = vsyncpa [#allocation10], 1 }
0x18e8   :  { %2379 = vsyncpa [#allocation13], 1 }
0x18e9   :  { %2380 = vsyncpa [#allocation11], 1 }

</bundles_post_ra>
